<compile_context>
chip_gen: v7x
topology: tpu7x:2x2x1
jax: 0.10.0
libtpu: 0.0.40
codegen_flags: <defaults>
</compile_context>

<pallas_src>
import functools
import math

import jax
import jax.numpy as jnp
from jax import lax
from jax.experimental import pallas as pl
from jax.experimental.pallas import tpu as pltpu

EPS = 1e-5
_INV_SQRT2 = 0.7071067811865476
CP_PAD = 128           # lane-padded channel width for the dense/transition stage


# ----------------------------- in-kernel helpers -----------------------------

def _gelu(x):
    # exact (erf-based) GELU, matching torch.nn.GELU() default
    return 0.5 * x * (1.0 + lax.erf(x * _INV_SQRT2))


def _bn(x, gamma, beta):
    # x: (R, C) flat (batch*length) rows; training-mode batch stats, biased var.
    mean = jnp.mean(x, axis=0, keepdims=True)
    var = jnp.mean((x - mean) ** 2, axis=0, keepdims=True)
    return (x - mean) * lax.rsqrt(var + EPS) * gamma + beta


def _ln(x, gamma, beta):
    # x: (R, D); gamma/beta: (1, D)
    mean = jnp.mean(x, axis=-1, keepdims=True)
    var = jnp.mean((x - mean) ** 2, axis=-1, keepdims=True)
    return (x - mean) * lax.rsqrt(var + EPS) * gamma + beta


# ------------------------------ fused kernel ---------------------------------

def fused_kernel(x_ref, dvec_ref, dw_ref, vpack_ref, wmat_ref, o_ref, *,
                 num_layers, embed_dim, num_heads):
    B, L, f_in = x_ref.shape
    CP = dw_ref.shape[1]
    D = embed_dim
    dh = D // num_heads
    BL = B * L
    f32 = jnp.float32
    bf16 = jnp.bfloat16

    dvec = dvec_ref[...]                     # (3, NL, CP) f32: BN gamma / beta / conv bias
    vp = vpack_ref[...]                      # (16, CP) f32 packed vectors (see pack_params)

    # ---- stage 0: lane-pad the f_in input channels to CP, flatten (B,L) rows --
    # (per-channel select instead of an unaligned lane concat / wrapper pad)
    x = x_ref[...]
    lane = lax.broadcasted_iota(jnp.int32, (B, L, CP), 2)
    h3 = jnp.zeros((B, L, CP), f32)
    for j in range(f_in):
        h3 = h3 + jnp.where(lane == j, x[:, :, j:j + 1], 0.0)
    h = h3.reshape(BL, CP)                   # loop-carried feature map (4 vregs)

    # hoisted masks for the k=3 conv shifts (sequence ends within each batch)
    pos = lax.broadcasted_iota(jnp.int32, (BL, CP), 0) % L
    m_first = (pos != 0).astype(f32)         # row l==0 has no l-1 neighbour
    m_last = (pos != (L - 1)).astype(f32)    # row l==L-1 has no l+1 neighbour

    # ---- dense block: channels grow in place in the loop-carried value -------
    for i in range(num_layers):
        xn = _gelu(_bn(h, dvec[0, i:i + 1, :], dvec[1, i:i + 1, :]))
        # k=3 / pad=1 conv as ONE bf16 matmul; tap t's outputs sit at lanes
        # [t*CP + c, t*CP + c + G) so every slice below is 128-aligned.
        z = jnp.dot(xn.astype(bf16), dw_ref[i], preferred_element_type=f32)
        tap0 = jnp.roll(z[:, 0:CP], 1, axis=0) * m_first            # x[l-1] @ w0
        tap1 = z[:, CP:2 * CP]                                       # x[l]   @ w1
        tap2 = jnp.roll(z[:, 2 * CP:3 * CP], -1, axis=0) * m_last    # x[l+1] @ w2
        # conv output + pre-placed bias live only in lanes [c, c+G); everything
        # else is zero, so the DenseLayer channel-concat is a full-width add.
        h = h + (tap0 + tap1 + tap2 + dvec[2, i:i + 1, :])

    # ---- transition: BN + GELU + (1x1 conv fused with projection) -----------
    xn = _gelu(_bn(h, vp[0:1, :], vp[1:2, :]))
    yproj = jnp.dot(xn.astype(bf16), wmat_ref[:, 0:D],
                    preferred_element_type=f32)                      # (BL, D)

    # AvgPool1d(k=2, s=2): average each (2m, 2m+1) row pair in place.  The
    # transformer below has no positional encoding, so running it over the L
    # rows with each pooled value duplicated is mathematically identical to
    # running it over the M = L//2 compacted rows (softmax weights halve per
    # copy, per-row ops are unchanged, and the final mean is unchanged).
    is_even = (lax.broadcasted_iota(jnp.int32, (BL, D), 0) % 2) == 0
    pair = jnp.where(is_even, jnp.roll(yproj, -1, axis=0),
                     jnp.roll(yproj, 1, axis=0))
    hp = 0.5 * (yproj + pair) + vp[2:3, 0:D]                         # (BL, D)

    # ---- regional transformer -------------------------------------------------
    hp_bf = hp.astype(bf16)
    q = jnp.dot(hp_bf, wmat_ref[0:D, CP:CP + D],
                preferred_element_type=f32) + vp[3:4, 0:D]           # q scale pre-folded
    k = jnp.dot(hp_bf, wmat_ref[0:D, 2 * CP:2 * CP + D],
                preferred_element_type=f32) + vp[4:5, 0:D]
    v = jnp.dot(hp_bf, wmat_ref[0:D, 3 * CP:3 * CP + D],
                preferred_element_type=f32) + vp[5:6, 0:D]
    q3 = q.astype(bf16).reshape(B, L, D)
    k3 = k.astype(bf16).reshape(B, L, D)
    v3 = v.astype(bf16).reshape(B, L, D)

    attn = jnp.zeros((BL, D), f32)
    for hh in range(num_heads):
        lo = hh * dh
        s = jnp.einsum('bld,bmd->blm', q3[:, :, lo:lo + dh],
                       k3[:, :, lo:lo + dh], preferred_element_type=f32)
        s = s - jnp.max(s, axis=-1, keepdims=True)
        p = jnp.exp(s)
        p = p * pl.reciprocal(jnp.sum(p, axis=-1, keepdims=True), approx=True)
        oh = jnp.einsum('blm,bmd->bld', p.astype(bf16), v3[:, :, lo:lo + dh],
                        preferred_element_type=f32)                  # (B, L, dh)
        # fold the output projection into the head loop (no head concat)
        attn = attn + jnp.dot(oh.reshape(BL, dh).astype(bf16),
                              wmat_ref[lo:lo + dh, 4 * CP:4 * CP + D],
                              preferred_element_type=f32)

    x1 = _ln(hp + attn + vp[6:7, 0:D], vp[7:8, 0:D], vp[8:9, 0:D])
    f = _gelu(jnp.dot(x1.astype(bf16), wmat_ref[0:D, 5 * CP:5 * CP + 2 * D],
                      preferred_element_type=f32) + vp[9:10, 0:2 * D])
    f = jnp.dot(f.astype(bf16), wmat_ref[0:2 * D, 6 * CP:6 * CP + D],
                preferred_element_type=f32) + vp[10:11, 0:D]
    x2 = _ln(x1 + f, vp[11:12, 0:D], vp[12:13, 0:D])

    # mean over the sequence (duplicated pairs average to the pooled mean)
    pooled = jnp.mean(x2.reshape(B, L, D), axis=1)                   # (B, D)
    out = jnp.dot(pooled.astype(bf16), wmat_ref[0:D, 7 * CP:7 * CP + D],
                  preferred_element_type=f32) + vp[13:14, 0:D]
    o_ref[...] = out.astype(o_ref.dtype)


# ------------------------ parameter init & packing ----------------------------

def init_params(key, input_features, growth_rate=12, num_layers=6,
                embed_dim=64, num_heads=4):
    keys = iter(jax.random.split(key, 64))

    def nrm(shape, scale=0.05):
        return jax.random.normal(next(keys), shape, jnp.float32) * scale

    dense_layers = []
    c = input_features
    for _ in range(num_layers):
        dense_layers.append((
            jnp.ones((1, c), jnp.float32),            # BN gamma
            jnp.zeros((1, c), jnp.float32),           # BN beta
            nrm((3, c, growth_rate)),                 # Conv1d(k=3) weight (tap, Cin, G)
            nrm((1, growth_rate)),                    # Conv1d bias
        ))
        c += growth_rate
    cout = c // 2
    trans = (jnp.ones((1, c), jnp.float32), jnp.zeros((1, c), jnp.float32),
             nrm((c, cout)), nrm((1, cout)))
    tp = {
        "proj_w": nrm((cout, embed_dim)), "proj_b": nrm((1, embed_dim)),
        "in_w": nrm((embed_dim, 3 * embed_dim)), "in_b": nrm((1, 3 * embed_dim)),
        "out_w": nrm((embed_dim, embed_dim)), "out_b": nrm((1, embed_dim)),
        "ln1_g": jnp.ones((1, embed_dim), jnp.float32),
        "ln1_b": jnp.zeros((1, embed_dim), jnp.float32),
        "ffn1_w": nrm((embed_dim, 2 * embed_dim)), "ffn1_b": nrm((1, 2 * embed_dim)),
        "ffn2_w": nrm((2 * embed_dim, embed_dim)), "ffn2_b": nrm((1, embed_dim)),
        "ln2_g": jnp.ones((1, embed_dim), jnp.float32),
        "ln2_b": jnp.zeros((1, embed_dim), jnp.float32),
        "final_w": nrm((embed_dim, embed_dim)), "final_b": nrm((1, embed_dim)),
    }
    return {"dense_layers": dense_layers, "transition": trans,
            "transformer": tp, "num_heads": num_heads}


def pack_params(params, input_features, cp=CP_PAD):
    """Pack all parameters into 4 lane-dense operands (dvec, dw, vpack, wmat).

    INVARIANT: gamma/beta rows of `dvec` and vpack rows 0/1 must be ZERO in the
    padded lanes so BatchNorm maps padded channels to exactly 0 - the matmul
    packing relies on padded channels staying identically zero.
    """
    dl = params["dense_layers"]
    nl = len(dl)
    g = dl[0][2].shape[-1]
    tp = params["transformer"]
    D = tp["proj_w"].shape[1]
    H = params["num_heads"]
    dh = D // H

    dvec = jnp.zeros((3, nl, cp), jnp.float32)          # gamma / beta / conv bias
    dw = jnp.zeros((nl, cp, 3 * cp), jnp.float32)       # 128-aligned tap blocks
    c = input_features
    for i, (gamma, beta, w, b) in enumerate(dl):
        dvec = dvec.at[0, i, :c].set(gamma[0])
        dvec = dvec.at[1, i, :c].set(beta[0])
        dvec = dvec.at[2, i, c:c + g].set(b[0])          # bias at the output lanes
        for t in range(3):
            dw = dw.at[i, :c, t * cp + c:t * cp + c + g].set(w[t])
        c += g
    assert c <= cp, (c, cp)

    tg, tb, tw, tbias = params["transition"]             # tw: (c, c//2)
    # Fuse the 1x1 transition conv with the transformer input projection
    # (both per-position linear; the avg-pool between them commutes).
    w_tp = jnp.zeros((cp, D), jnp.float32).at[:c, :].set(jnp.dot(tw, tp["proj_w"]))
    b_tp = jnp.dot(tbias, tp["proj_w"]) + tp["proj_b"]   # (1, D)

    # Fold the attention q-scaling (1/sqrt(dh)) into the packed q weight/bias.
    scale = 1.0 / math.sqrt(dh)
    wq = tp["in_w"][:, 0:D] * scale
    wk = tp["in_w"][:, D:2 * D]
    wv = tp["in_w"][:, 2 * D:3 * D]
    qb = tp["in_b"][:, 0:D] * scale
    kb = tp["in_b"][:, D:2 * D]
    vb = tp["in_b"][:, 2 * D:3 * D]

    # One bf16 weight matrix; every weight starts at a 128-aligned column block:
    #   blk0: fused transition+proj (cp x D)   blk4: attn out_w (D x D)
    #   blk1: q_w (D x D, pre-scaled)          blk5: ffn1_w (D x 2D)
    #   blk2: k_w (D x D)                      blk6: ffn2_w (2D x D)
    #   blk3: v_w (D x D)                      blk7: final_w (D x D)
    wmat = jnp.zeros((cp, 8 * cp), jnp.float32)
    wmat = wmat.at[:, 0:D].set(w_tp)
    wmat = wmat.at[0:D, cp:cp + D].set(wq)
    wmat = wmat.at[0:D, 2 * cp:2 * cp + D].set(wk)
    wmat = wmat.at[0:D, 3 * cp:3 * cp + D].set(wv)
    wmat = wmat.at[0:D, 4 * cp:4 * cp + D].set(tp["out_w"])
    wmat = wmat.at[0:D, 5 * cp:5 * cp + 2 * D].set(tp["ffn1_w"])
    wmat = wmat.at[0:2 * D, 6 * cp:6 * cp + D].set(tp["ffn2_w"])
    wmat = wmat.at[0:D, 7 * cp:7 * cp + D].set(tp["final_w"])

    def _row(v):
        v = jnp.reshape(v, (-1,))
        return jnp.zeros((cp,), jnp.float32).at[:v.shape[0]].set(v)

    rows = [
        _row(tg[0]),          # 0 transition BN gamma (zero in padded lanes)
        _row(tb[0]),          # 1 transition BN beta  (zero in padded lanes)
        _row(b_tp),           # 2 fused conv-bias@proj + proj bias
        _row(qb),             # 3
        _row(kb),             # 4
        _row(vb),             # 5
        _row(tp["out_b"]),    # 6
        _row(tp["ln1_g"]),    # 7
        _row(tp["ln1_b"]),    # 8
        _row(tp["ffn1_b"]),   # 9  (width 2D == 128)
        _row(tp["ffn2_b"]),   # 10
        _row(tp["ln2_g"]),    # 11
        _row(tp["ln2_b"]),    # 12
        _row(tp["final_b"]),  # 13
    ]
    vpack = jnp.zeros((16, cp), jnp.float32).at[0:len(rows), :].set(
        jnp.stack(rows, axis=0))

    return {"dvec": dvec, "dw": dw.astype(jnp.bfloat16), "vpack": vpack,
            "wmat": wmat.astype(jnp.bfloat16),
            "num_layers": nl, "growth": g, "c0": input_features,
            "embed_dim": D, "num_heads": H, "cp": cp}


# ------------------------------- forward wrapper ------------------------------

def hybrid_regional_block(x, packed):
    # x: (B, E, F) == channel-last (B, L, C); torch's transpose(1, 2) is implicit
    B, L, f_in = x.shape
    assert L % 2 == 0, "AvgPool1d(kernel=2, stride=2) requires an even length"
    D = packed["embed_dim"]
    kern = functools.partial(
        fused_kernel, num_layers=packed["num_layers"], embed_dim=D,
        num_heads=packed["num_heads"])
    return pl.pallas_call(
        kern,
        out_shape=jax.ShapeDtypeStruct((B, D), jnp.float32),
        grid=(1,),
        in_specs=[
            pl.BlockSpec((B, L, f_in), lambda i: (0, 0, 0)),
            pl.BlockSpec(packed["dvec"].shape, lambda i: (0, 0, 0)),
            pl.BlockSpec(packed["dw"].shape, lambda i: (0, 0, 0)),
            pl.BlockSpec(packed["vpack"].shape, lambda i: (0, 0)),
            pl.BlockSpec(packed["wmat"].shape, lambda i: (0, 0)),
        ],
        out_specs=pl.BlockSpec((B, D), lambda i: (0, 0)),
        compiler_params=pltpu.CompilerParams(
            dimension_semantics=("arbitrary",)),
    )(x, packed["dvec"], packed["dw"], packed["vpack"], packed["wmat"])


# --------------------------- pure-JAX reference -------------------------------

def reference_forward(x, params):
    def gelu(t): return 0.5 * t * (1.0 + lax.erf(t * _INV_SQRT2))

    def bn(t, g, b):
        m = jnp.mean(t, axis=(0, 1), keepdims=True)
        v = jnp.mean((t - m) ** 2, axis=(0, 1), keepdims=True)
        return (t - m) / jnp.sqrt(v + EPS) * g + b

    def ln(t, g, b):
        m = jnp.mean(t, axis=-1, keepdims=True)
        v = jnp.mean((t - m) ** 2, axis=-1, keepdims=True)
        return (t - m) / jnp.sqrt(v + EPS) * g + b

    h = x
    for (gamma, beta, w, b) in params["dense_layers"]:
        B, L, _ = h.shape
        xn = gelu(bn(h, gamma, beta))
        xpd = jnp.pad(xn, ((0, 0), (1, 1), (0, 0)))
        y = (xpd[:, 0:L] @ w[0] + xpd[:, 1:L + 1] @ w[1]
             + xpd[:, 2:L + 2] @ w[2]) + b
        h = jnp.concatenate([h, y], axis=-1)
    tg, tb, tw, tbias = params["transition"]
    y = gelu(bn(h, tg, tb)) @ tw + tbias
    y = 0.5 * (y[:, 0::2, :] + y[:, 1::2, :])             # AvgPool1d(2, 2)
    tp = params["transformer"]
    B, M, _ = y.shape
    hm = y @ tp["proj_w"] + tp["proj_b"]
    D = hm.shape[-1]
    H = params["num_heads"]
    dh = D // H
    qkv = hm @ tp["in_w"] + tp["in_b"]
    q, k, v = qkv[..., :D] / math.sqrt(dh), qkv[..., D:2 * D], qkv[..., 2 * D:]

    def split(t):
        return t.reshape(B, M, H, dh).transpose(0, 2, 1, 3)

    s = jnp.einsum('bhld,bhmd->bhlm', split(q), split(k))
    s = s - jnp.max(s, axis=-1, keepdims=True)
    p = jnp.exp(s)
    p = p / jnp.sum(p, axis=-1, keepdims=True)
    o = jnp.einsum('bhlm,bhmd->bhld', p, split(v)).transpose(0, 2, 1, 3)
    attn = o.reshape(B, M, D) @ tp["out_w"] + tp["out_b"]
    x1 = ln(hm + attn, tp["ln1_g"], tp["ln1_b"])
    f = gelu(x1 @ tp["ffn1_w"] + tp["ffn1_b"]) @ tp["ffn2_w"] + tp["ffn2_b"]
    x2 = ln(x1 + f, tp["ln2_g"], tp["ln2_b"])
    return x2.mean(axis=1) @ tp["final_w"] + tp["final_b"]


# ----------------------------------- main -------------------------------------

if __name__ == "__main__":
    key = jax.random.PRNGKey(0)
    B, E, F_in = 2, 16, 4
    kx, kp = jax.random.split(key)
    x = jax.random.normal(kx, (B, E, F_in), jnp.float32)
    params = init_params(kp, F_in)
    packed = pack_params(params, F_in)

    out = hybrid_regional_block(x, packed)
    out = jax.block_until_ready(out)
    assert out.shape == (B, 64), out.shape
    assert bool(jnp.all(jnp.isfinite(out)))

    ref = reference_forward(x, params)
    err = float(jnp.max(jnp.abs(out - ref)))
    # bf16 matmul operands (f32 accumulation) -> slightly looser than pure f32.
    assert jnp.allclose(out, ref, rtol=2e-2, atol=2e-2), err
    print("KERNEL_OK")
</pallas_src>

<mosaic_0001>
module attributes {stable_mosaic.version = 11 : i64} {
  func.func @fused_kernel(%arg0: i32, %arg1: memref<2x16x4xf32, #tpu.memory_space<vmem>>, %arg2: memref<3x6x128xf32, #tpu.memory_space<vmem>>, %arg3: memref<6x128x384xbf16, #tpu.memory_space<vmem>>, %arg4: memref<16x128xf32, #tpu.memory_space<vmem>>, %arg5: memref<128x1024xbf16, #tpu.memory_space<vmem>>, %arg6: memref<2x64xf32, #tpu.memory_space<vmem>>) attributes {dimension_semantics = [#tpu.dimension_semantics<arbitrary>], iteration_bounds = array<i64: 1>, scalar_prefetch = 0 : i64, scratch_operands = 0 : i64, tpu.core_type = #tpu.core_type<tc>, window_params = [{pipeline_mode = #tpu.pipeline_mode<synchronous>, transform_indices = @transform_0, window_bounds = array<i64: 2, 16, 4>}, {pipeline_mode = #tpu.pipeline_mode<synchronous>, transform_indices = @transform_1, window_bounds = array<i64: 3, 6, 128>}, {pipeline_mode = #tpu.pipeline_mode<synchronous>, transform_indices = @transform_2, window_bounds = array<i64: 6, 128, 384>}, {pipeline_mode = #tpu.pipeline_mode<synchronous>, transform_indices = @transform_3, window_bounds = array<i64: 16, 128>}, {pipeline_mode = #tpu.pipeline_mode<synchronous>, transform_indices = @transform_4, window_bounds = array<i64: 128, 1024>}, {pipeline_mode = #tpu.pipeline_mode<synchronous>, transform_indices = @transform_5, window_bounds = array<i64: 2, 64>}]} {
    %c0 = arith.constant 0 : index
    %c0_0 = arith.constant 0 : index
    %c0_1 = arith.constant 0 : index
    %0 = vector.load %arg2[%c0, %c0_0, %c0_1] : memref<3x6x128xf32, #tpu.memory_space<vmem>>, vector<3x6x128xf32>
    %c0_2 = arith.constant 0 : index
    %c0_3 = arith.constant 0 : index
    %1 = vector.load %arg4[%c0_2, %c0_3] : memref<16x128xf32, #tpu.memory_space<vmem>>, vector<16x128xf32>
    %c0_4 = arith.constant 0 : index
    %c0_5 = arith.constant 0 : index
    %c0_6 = arith.constant 0 : index
    %2 = vector.load %arg1[%c0_4, %c0_5, %c0_6] : memref<2x16x4xf32, #tpu.memory_space<vmem>>, vector<2x16x4xf32>
    %3 = tpu.iota {dimensions = array<i32: 2>} : vector<2x16x128xi32>
    %cst = arith.constant 0.000000e+00 : f32
    %4 = vector.broadcast %cst : f32 to vector<2x16x128xf32>
    %c0_i32 = arith.constant 0 : i32
    %5 = vector.broadcast %c0_i32 : i32 to vector<2x16x128xi32>
    %6 = arith.cmpi eq, %3, %5 : vector<2x16x128xi32>
    %7 = vector.extract_strided_slice %2 {offsets = [0, 0, 0], sizes = [2, 16, 1], strides = [1, 1, 1]} : vector<2x16x4xf32> to vector<2x16x1xf32>
    %cst_7 = arith.constant 0.000000e+00 : f32
    %8 = vector.shape_cast %7 : vector<2x16x1xf32> to vector<2x16x1xf32>
    %9 = vector.broadcast %8 : vector<2x16x1xf32> to vector<2x16x128xf32>
    %10 = vector.broadcast %cst_7 : f32 to vector<2x16x128xf32>
    %11 = arith.select %6, %9, %10 : vector<2x16x128xi1>, vector<2x16x128xf32>
    %12 = arith.addf %4, %11 : vector<2x16x128xf32>
    %c1_i32 = arith.constant 1 : i32
    %13 = vector.broadcast %c1_i32 : i32 to vector<2x16x128xi32>
    %14 = arith.cmpi eq, %3, %13 : vector<2x16x128xi32>
    %15 = vector.extract_strided_slice %2 {offsets = [0, 0, 1], sizes = [2, 16, 1], strides = [1, 1, 1]} : vector<2x16x4xf32> to vector<2x16x1xf32>
    %cst_8 = arith.constant 0.000000e+00 : f32
    %16 = vector.shape_cast %15 : vector<2x16x1xf32> to vector<2x16x1xf32>
    %17 = vector.broadcast %16 : vector<2x16x1xf32> to vector<2x16x128xf32>
    %18 = vector.broadcast %cst_8 : f32 to vector<2x16x128xf32>
    %19 = arith.select %14, %17, %18 : vector<2x16x128xi1>, vector<2x16x128xf32>
    %20 = arith.addf %12, %19 : vector<2x16x128xf32>
    %c2_i32 = arith.constant 2 : i32
    %21 = vector.broadcast %c2_i32 : i32 to vector<2x16x128xi32>
    %22 = arith.cmpi eq, %3, %21 : vector<2x16x128xi32>
    %23 = vector.extract_strided_slice %2 {offsets = [0, 0, 2], sizes = [2, 16, 1], strides = [1, 1, 1]} : vector<2x16x4xf32> to vector<2x16x1xf32>
    %cst_9 = arith.constant 0.000000e+00 : f32
    %24 = vector.shape_cast %23 : vector<2x16x1xf32> to vector<2x16x1xf32>
    %25 = vector.broadcast %24 : vector<2x16x1xf32> to vector<2x16x128xf32>
    %26 = vector.broadcast %cst_9 : f32 to vector<2x16x128xf32>
    %27 = arith.select %22, %25, %26 : vector<2x16x128xi1>, vector<2x16x128xf32>
    %28 = arith.addf %20, %27 : vector<2x16x128xf32>
    %c3_i32 = arith.constant 3 : i32
    %29 = vector.broadcast %c3_i32 : i32 to vector<2x16x128xi32>
    %30 = arith.cmpi eq, %3, %29 : vector<2x16x128xi32>
    %31 = vector.extract_strided_slice %2 {offsets = [0, 0, 3], sizes = [2, 16, 1], strides = [1, 1, 1]} : vector<2x16x4xf32> to vector<2x16x1xf32>
    %cst_10 = arith.constant 0.000000e+00 : f32
    %32 = vector.shape_cast %31 : vector<2x16x1xf32> to vector<2x16x1xf32>
    %33 = vector.broadcast %32 : vector<2x16x1xf32> to vector<2x16x128xf32>
    %34 = vector.broadcast %cst_10 : f32 to vector<2x16x128xf32>
    %35 = arith.select %30, %33, %34 : vector<2x16x128xi1>, vector<2x16x128xf32>
    %36 = arith.addf %28, %35 : vector<2x16x128xf32>
    %37 = vector.shape_cast %36 : vector<2x16x128xf32> to vector<32x128xf32>
    %38 = tpu.iota {dimensions = array<i32: 0>} : vector<32x128xi32>
    %c16_i32 = arith.constant 16 : i32
    %c0_i32_11 = arith.constant 0 : i32
    %39 = arith.cmpi eq, %c16_i32, %c0_i32_11 : i32
    %c1_i32_12 = arith.constant 1 : i32
    %40 = arith.select %39, %c1_i32_12, %c16_i32 : i32
    %41 = vector.broadcast %40 : i32 to vector<32x128xi32>
    %42 = arith.remsi %38, %41 : vector<32x128xi32>
    %c0_i32_13 = arith.constant 0 : i32
    %43 = vector.broadcast %c0_i32_13 : i32 to vector<32x128xi32>
    %44 = arith.cmpi ne, %42, %43 : vector<32x128xi32>
    %c0_i32_14 = arith.constant 0 : i32
    %45 = vector.broadcast %c0_i32_14 : i32 to vector<32x128xi32>
    %46 = arith.cmpi slt, %42, %45 : vector<32x128xi32>
    %c0_i32_15 = arith.constant 0 : i32
    %47 = arith.cmpi slt, %40, %c0_i32_15 : i32
    %48 = vector.broadcast %47 : i1 to vector<32x128xi1>
    %49 = vector.broadcast %48 : vector<32x128xi1> to vector<32x128xi1>
    %50 = arith.xori %46, %49 : vector<32x128xi1>
    %51 = arith.andi %50, %44 : vector<32x128xi1>
    %52 = vector.broadcast %40 : i32 to vector<32x128xi32>
    %53 = arith.addi %42, %52 : vector<32x128xi32>
    %54 = arith.select %51, %53, %42 : vector<32x128xi1>, vector<32x128xi32>
    %c0_i32_16 = arith.constant 0 : i32
    %55 = vector.broadcast %c0_i32_16 : i32 to vector<32x128xi32>
    %56 = arith.cmpi ne, %54, %55 : vector<32x128xi32>
    %57 = arith.extui %56 : vector<32x128xi1> to vector<32x128xi32>
    %58 = arith.sitofp %57 : vector<32x128xi32> to vector<32x128xf32>
    %c15_i32 = arith.constant 15 : i32
    %59 = vector.broadcast %c15_i32 : i32 to vector<32x128xi32>
    %60 = arith.cmpi ne, %54, %59 : vector<32x128xi32>
    %61 = arith.extui %60 : vector<32x128xi1> to vector<32x128xi32>
    %62 = arith.sitofp %61 : vector<32x128xi32> to vector<32x128xf32>
    %63 = vector.extract_strided_slice %0 {offsets = [0, 0, 0], sizes = [1, 1, 128], strides = [1, 1, 1]} : vector<3x6x128xf32> to vector<1x1x128xf32>
    %64 = vector.shape_cast %63 : vector<1x1x128xf32> to vector<1x128xf32>
    %65 = vector.extract_strided_slice %0 {offsets = [1, 0, 0], sizes = [1, 1, 128], strides = [1, 1, 1]} : vector<3x6x128xf32> to vector<1x1x128xf32>
    %66 = vector.shape_cast %65 : vector<1x1x128xf32> to vector<1x128xf32>
    %cst_17 = arith.constant dense<0.000000e+00> : vector<128xf32>
    %67 = vector.multi_reduction <add>, %37, %cst_17 [0] : vector<32x128xf32> to vector<128xf32>
    %68 = vector.shape_cast %67 : vector<128xf32> to vector<1x128xf32>
    %cst_18 = arith.constant 3.200000e+01 : f32
    %69 = vector.broadcast %cst_18 : f32 to vector<1x128xf32>
    %70 = arith.divf %68, %69 : vector<1x128xf32>
    %71 = vector.broadcast %70 : vector<1x128xf32> to vector<32x128xf32>
    %72 = arith.subf %37, %71 : vector<32x128xf32>
    %73 = arith.mulf %72, %72 : vector<32x128xf32>
    %cst_19 = arith.constant dense<0.000000e+00> : vector<128xf32>
    %74 = vector.multi_reduction <add>, %73, %cst_19 [0] : vector<32x128xf32> to vector<128xf32>
    %75 = vector.shape_cast %74 : vector<128xf32> to vector<1x128xf32>
    %cst_20 = arith.constant 3.200000e+01 : f32
    %76 = vector.broadcast %cst_20 : f32 to vector<1x128xf32>
    %77 = arith.divf %75, %76 : vector<1x128xf32>
    %78 = vector.broadcast %70 : vector<1x128xf32> to vector<32x128xf32>
    %79 = arith.subf %37, %78 : vector<32x128xf32>
    %cst_21 = arith.constant 9.99999974E-6 : f32
    %80 = vector.broadcast %cst_21 : f32 to vector<1x128xf32>
    %81 = arith.addf %77, %80 : vector<1x128xf32>
    %82 = math.rsqrt %81 : vector<1x128xf32>
    %83 = vector.broadcast %82 : vector<1x128xf32> to vector<32x128xf32>
    %84 = arith.mulf %79, %83 : vector<32x128xf32>
    %85 = vector.broadcast %64 : vector<1x128xf32> to vector<32x128xf32>
    %86 = arith.mulf %84, %85 : vector<32x128xf32>
    %87 = vector.broadcast %66 : vector<1x128xf32> to vector<32x128xf32>
    %88 = arith.addf %86, %87 : vector<32x128xf32>
    %cst_22 = arith.constant 5.000000e-01 : f32
    %89 = vector.broadcast %cst_22 : f32 to vector<32x128xf32>
    %90 = arith.mulf %89, %88 : vector<32x128xf32>
    %cst_23 = arith.constant 0.707106769 : f32
    %91 = vector.broadcast %cst_23 : f32 to vector<32x128xf32>
    %92 = arith.mulf %88, %91 : vector<32x128xf32>
    %93 = math.erf %92 : vector<32x128xf32>
    %cst_24 = arith.constant 1.000000e+00 : f32
    %94 = vector.broadcast %cst_24 : f32 to vector<32x128xf32>
    %95 = arith.addf %94, %93 : vector<32x128xf32>
    %96 = arith.mulf %90, %95 : vector<32x128xf32>
    %97 = arith.truncf %96 : vector<32x128xf32> to vector<32x128xbf16>
    %c0_25 = arith.constant 0 : index
    %c0_26 = arith.constant 0 : index
    %c0_27 = arith.constant 0 : index
    %98 = vector.load %arg3[%c0_25, %c0_26, %c0_27] : memref<6x128x384xbf16, #tpu.memory_space<vmem>>, vector<1x128x384xbf16>
    %99 = vector.shape_cast %98 : vector<1x128x384xbf16> to vector<128x384xbf16>
    %cst_28 = arith.constant dense<0.000000e+00> : vector<32x384xf32>
    %100 = tpu.matmul %97, %99, %cst_28 {dimension_numbers = #tpu.dot_dimension_numbers<[1], [0], [0], [1], [0, 0, 1, 1], [], []>} : vector<32x128xbf16>, vector<128x384xbf16>, vector<32x384xf32> -> vector<32x384xf32>
    %101 = vector.extract_strided_slice %100 {offsets = [0, 0], sizes = [32, 128], strides = [1, 1]} : vector<32x384xf32> to vector<32x128xf32>
    %102 = vector.extract_strided_slice %101 {offsets = [31, 0], sizes = [1, 128], strides = [1, 1]} : vector<32x128xf32> to vector<1x128xf32>
    %103 = vector.extract_strided_slice %101 {offsets = [0, 0], sizes = [31, 128], strides = [1, 1]} : vector<32x128xf32> to vector<31x128xf32>
    %104 = tpu.concatenate %102, %103 in 0 : vector<1x128xf32>, vector<31x128xf32> -> vector<32x128xf32>
    %105 = arith.mulf %104, %58 : vector<32x128xf32>
    %106 = vector.extract_strided_slice %100 {offsets = [0, 128], sizes = [32, 128], strides = [1, 1]} : vector<32x384xf32> to vector<32x128xf32>
    %107 = vector.extract_strided_slice %100 {offsets = [0, 256], sizes = [32, 128], strides = [1, 1]} : vector<32x384xf32> to vector<32x128xf32>
    %108 = vector.extract_strided_slice %107 {offsets = [1, 0], sizes = [31, 128], strides = [1, 1]} : vector<32x128xf32> to vector<31x128xf32>
    %109 = vector.extract_strided_slice %107 {offsets = [0, 0], sizes = [1, 128], strides = [1, 1]} : vector<32x128xf32> to vector<1x128xf32>
    %110 = tpu.concatenate %108, %109 in 0 : vector<31x128xf32>, vector<1x128xf32> -> vector<32x128xf32>
    %111 = arith.mulf %110, %62 : vector<32x128xf32>
    %112 = arith.addf %105, %106 : vector<32x128xf32>
    %113 = arith.addf %112, %111 : vector<32x128xf32>
    %114 = vector.extract_strided_slice %0 {offsets = [2, 0, 0], sizes = [1, 1, 128], strides = [1, 1, 1]} : vector<3x6x128xf32> to vector<1x1x128xf32>
    %115 = vector.shape_cast %114 : vector<1x1x128xf32> to vector<1x128xf32>
    %116 = vector.broadcast %115 : vector<1x128xf32> to vector<32x128xf32>
    %117 = arith.addf %113, %116 : vector<32x128xf32>
    %118 = arith.addf %37, %117 : vector<32x128xf32>
    %119 = vector.extract_strided_slice %0 {offsets = [0, 1, 0], sizes = [1, 1, 128], strides = [1, 1, 1]} : vector<3x6x128xf32> to vector<1x1x128xf32>
    %120 = vector.shape_cast %119 : vector<1x1x128xf32> to vector<1x128xf32>
    %121 = vector.extract_strided_slice %0 {offsets = [1, 1, 0], sizes = [1, 1, 128], strides = [1, 1, 1]} : vector<3x6x128xf32> to vector<1x1x128xf32>
    %122 = vector.shape_cast %121 : vector<1x1x128xf32> to vector<1x128xf32>
    %cst_29 = arith.constant dense<0.000000e+00> : vector<128xf32>
    %123 = vector.multi_reduction <add>, %118, %cst_29 [0] : vector<32x128xf32> to vector<128xf32>
    %124 = vector.shape_cast %123 : vector<128xf32> to vector<1x128xf32>
    %cst_30 = arith.constant 3.200000e+01 : f32
    %125 = vector.broadcast %cst_30 : f32 to vector<1x128xf32>
    %126 = arith.divf %124, %125 : vector<1x128xf32>
    %127 = vector.broadcast %126 : vector<1x128xf32> to vector<32x128xf32>
    %128 = arith.subf %118, %127 : vector<32x128xf32>
    %129 = arith.mulf %128, %128 : vector<32x128xf32>
    %cst_31 = arith.constant dense<0.000000e+00> : vector<128xf32>
    %130 = vector.multi_reduction <add>, %129, %cst_31 [0] : vector<32x128xf32> to vector<128xf32>
    %131 = vector.shape_cast %130 : vector<128xf32> to vector<1x128xf32>
    %cst_32 = arith.constant 3.200000e+01 : f32
    %132 = vector.broadcast %cst_32 : f32 to vector<1x128xf32>
    %133 = arith.divf %131, %132 : vector<1x128xf32>
    %134 = vector.broadcast %126 : vector<1x128xf32> to vector<32x128xf32>
    %135 = arith.subf %118, %134 : vector<32x128xf32>
    %cst_33 = arith.constant 9.99999974E-6 : f32
    %136 = vector.broadcast %cst_33 : f32 to vector<1x128xf32>
    %137 = arith.addf %133, %136 : vector<1x128xf32>
    %138 = math.rsqrt %137 : vector<1x128xf32>
    %139 = vector.broadcast %138 : vector<1x128xf32> to vector<32x128xf32>
    %140 = arith.mulf %135, %139 : vector<32x128xf32>
    %141 = vector.broadcast %120 : vector<1x128xf32> to vector<32x128xf32>
    %142 = arith.mulf %140, %141 : vector<32x128xf32>
    %143 = vector.broadcast %122 : vector<1x128xf32> to vector<32x128xf32>
    %144 = arith.addf %142, %143 : vector<32x128xf32>
    %cst_34 = arith.constant 5.000000e-01 : f32
    %145 = vector.broadcast %cst_34 : f32 to vector<32x128xf32>
    %146 = arith.mulf %145, %144 : vector<32x128xf32>
    %cst_35 = arith.constant 0.707106769 : f32
    %147 = vector.broadcast %cst_35 : f32 to vector<32x128xf32>
    %148 = arith.mulf %144, %147 : vector<32x128xf32>
    %149 = math.erf %148 : vector<32x128xf32>
    %cst_36 = arith.constant 1.000000e+00 : f32
    %150 = vector.broadcast %cst_36 : f32 to vector<32x128xf32>
    %151 = arith.addf %150, %149 : vector<32x128xf32>
    %152 = arith.mulf %146, %151 : vector<32x128xf32>
    %153 = arith.truncf %152 : vector<32x128xf32> to vector<32x128xbf16>
    %c1 = arith.constant 1 : index
    %c0_37 = arith.constant 0 : index
    %c0_38 = arith.constant 0 : index
    %154 = vector.load %arg3[%c1, %c0_37, %c0_38] : memref<6x128x384xbf16, #tpu.memory_space<vmem>>, vector<1x128x384xbf16>
    %155 = vector.shape_cast %154 : vector<1x128x384xbf16> to vector<128x384xbf16>
    %cst_39 = arith.constant dense<0.000000e+00> : vector<32x384xf32>
    %156 = tpu.matmul %153, %155, %cst_39 {dimension_numbers = #tpu.dot_dimension_numbers<[1], [0], [0], [1], [0, 0, 1, 1], [], []>} : vector<32x128xbf16>, vector<128x384xbf16>, vector<32x384xf32> -> vector<32x384xf32>
    %157 = vector.extract_strided_slice %156 {offsets = [0, 0], sizes = [32, 128], strides = [1, 1]} : vector<32x384xf32> to vector<32x128xf32>
    %158 = vector.extract_strided_slice %157 {offsets = [31, 0], sizes = [1, 128], strides = [1, 1]} : vector<32x128xf32> to vector<1x128xf32>
    %159 = vector.extract_strided_slice %157 {offsets = [0, 0], sizes = [31, 128], strides = [1, 1]} : vector<32x128xf32> to vector<31x128xf32>
    %160 = tpu.concatenate %158, %159 in 0 : vector<1x128xf32>, vector<31x128xf32> -> vector<32x128xf32>
    %161 = arith.mulf %160, %58 : vector<32x128xf32>
    %162 = vector.extract_strided_slice %156 {offsets = [0, 128], sizes = [32, 128], strides = [1, 1]} : vector<32x384xf32> to vector<32x128xf32>
    %163 = vector.extract_strided_slice %156 {offsets = [0, 256], sizes = [32, 128], strides = [1, 1]} : vector<32x384xf32> to vector<32x128xf32>
    %164 = vector.extract_strided_slice %163 {offsets = [1, 0], sizes = [31, 128], strides = [1, 1]} : vector<32x128xf32> to vector<31x128xf32>
    %165 = vector.extract_strided_slice %163 {offsets = [0, 0], sizes = [1, 128], strides = [1, 1]} : vector<32x128xf32> to vector<1x128xf32>
    %166 = tpu.concatenate %164, %165 in 0 : vector<31x128xf32>, vector<1x128xf32> -> vector<32x128xf32>
    %167 = arith.mulf %166, %62 : vector<32x128xf32>
    %168 = arith.addf %161, %162 : vector<32x128xf32>
    %169 = arith.addf %168, %167 : vector<32x128xf32>
    %170 = vector.extract_strided_slice %0 {offsets = [2, 1, 0], sizes = [1, 1, 128], strides = [1, 1, 1]} : vector<3x6x128xf32> to vector<1x1x128xf32>
    %171 = vector.shape_cast %170 : vector<1x1x128xf32> to vector<1x128xf32>
    %172 = vector.broadcast %171 : vector<1x128xf32> to vector<32x128xf32>
    %173 = arith.addf %169, %172 : vector<32x128xf32>
    %174 = arith.addf %118, %173 : vector<32x128xf32>
    %175 = vector.extract_strided_slice %0 {offsets = [0, 2, 0], sizes = [1, 1, 128], strides = [1, 1, 1]} : vector<3x6x128xf32> to vector<1x1x128xf32>
    %176 = vector.shape_cast %175 : vector<1x1x128xf32> to vector<1x128xf32>
    %177 = vector.extract_strided_slice %0 {offsets = [1, 2, 0], sizes = [1, 1, 128], strides = [1, 1, 1]} : vector<3x6x128xf32> to vector<1x1x128xf32>
    %178 = vector.shape_cast %177 : vector<1x1x128xf32> to vector<1x128xf32>
    %cst_40 = arith.constant dense<0.000000e+00> : vector<128xf32>
    %179 = vector.multi_reduction <add>, %174, %cst_40 [0] : vector<32x128xf32> to vector<128xf32>
    %180 = vector.shape_cast %179 : vector<128xf32> to vector<1x128xf32>
    %cst_41 = arith.constant 3.200000e+01 : f32
    %181 = vector.broadcast %cst_41 : f32 to vector<1x128xf32>
    %182 = arith.divf %180, %181 : vector<1x128xf32>
    %183 = vector.broadcast %182 : vector<1x128xf32> to vector<32x128xf32>
    %184 = arith.subf %174, %183 : vector<32x128xf32>
    %185 = arith.mulf %184, %184 : vector<32x128xf32>
    %cst_42 = arith.constant dense<0.000000e+00> : vector<128xf32>
    %186 = vector.multi_reduction <add>, %185, %cst_42 [0] : vector<32x128xf32> to vector<128xf32>
    %187 = vector.shape_cast %186 : vector<128xf32> to vector<1x128xf32>
    %cst_43 = arith.constant 3.200000e+01 : f32
    %188 = vector.broadcast %cst_43 : f32 to vector<1x128xf32>
    %189 = arith.divf %187, %188 : vector<1x128xf32>
    %190 = vector.broadcast %182 : vector<1x128xf32> to vector<32x128xf32>
    %191 = arith.subf %174, %190 : vector<32x128xf32>
    %cst_44 = arith.constant 9.99999974E-6 : f32
    %192 = vector.broadcast %cst_44 : f32 to vector<1x128xf32>
    %193 = arith.addf %189, %192 : vector<1x128xf32>
    %194 = math.rsqrt %193 : vector<1x128xf32>
    %195 = vector.broadcast %194 : vector<1x128xf32> to vector<32x128xf32>
    %196 = arith.mulf %191, %195 : vector<32x128xf32>
    %197 = vector.broadcast %176 : vector<1x128xf32> to vector<32x128xf32>
    %198 = arith.mulf %196, %197 : vector<32x128xf32>
    %199 = vector.broadcast %178 : vector<1x128xf32> to vector<32x128xf32>
    %200 = arith.addf %198, %199 : vector<32x128xf32>
    %cst_45 = arith.constant 5.000000e-01 : f32
    %201 = vector.broadcast %cst_45 : f32 to vector<32x128xf32>
    %202 = arith.mulf %201, %200 : vector<32x128xf32>
    %cst_46 = arith.constant 0.707106769 : f32
    %203 = vector.broadcast %cst_46 : f32 to vector<32x128xf32>
    %204 = arith.mulf %200, %203 : vector<32x128xf32>
    %205 = math.erf %204 : vector<32x128xf32>
    %cst_47 = arith.constant 1.000000e+00 : f32
    %206 = vector.broadcast %cst_47 : f32 to vector<32x128xf32>
    %207 = arith.addf %206, %205 : vector<32x128xf32>
    %208 = arith.mulf %202, %207 : vector<32x128xf32>
    %209 = arith.truncf %208 : vector<32x128xf32> to vector<32x128xbf16>
    %c2 = arith.constant 2 : index
    %c0_48 = arith.constant 0 : index
    %c0_49 = arith.constant 0 : index
    %210 = vector.load %arg3[%c2, %c0_48, %c0_49] : memref<6x128x384xbf16, #tpu.memory_space<vmem>>, vector<1x128x384xbf16>
    %211 = vector.shape_cast %210 : vector<1x128x384xbf16> to vector<128x384xbf16>
    %cst_50 = arith.constant dense<0.000000e+00> : vector<32x384xf32>
    %212 = tpu.matmul %209, %211, %cst_50 {dimension_numbers = #tpu.dot_dimension_numbers<[1], [0], [0], [1], [0, 0, 1, 1], [], []>} : vector<32x128xbf16>, vector<128x384xbf16>, vector<32x384xf32> -> vector<32x384xf32>
    %213 = vector.extract_strided_slice %212 {offsets = [0, 0], sizes = [32, 128], strides = [1, 1]} : vector<32x384xf32> to vector<32x128xf32>
    %214 = vector.extract_strided_slice %213 {offsets = [31, 0], sizes = [1, 128], strides = [1, 1]} : vector<32x128xf32> to vector<1x128xf32>
    %215 = vector.extract_strided_slice %213 {offsets = [0, 0], sizes = [31, 128], strides = [1, 1]} : vector<32x128xf32> to vector<31x128xf32>
    %216 = tpu.concatenate %214, %215 in 0 : vector<1x128xf32>, vector<31x128xf32> -> vector<32x128xf32>
    %217 = arith.mulf %216, %58 : vector<32x128xf32>
    %218 = vector.extract_strided_slice %212 {offsets = [0, 128], sizes = [32, 128], strides = [1, 1]} : vector<32x384xf32> to vector<32x128xf32>
    %219 = vector.extract_strided_slice %212 {offsets = [0, 256], sizes = [32, 128], strides = [1, 1]} : vector<32x384xf32> to vector<32x128xf32>
    %220 = vector.extract_strided_slice %219 {offsets = [1, 0], sizes = [31, 128], strides = [1, 1]} : vector<32x128xf32> to vector<31x128xf32>
    %221 = vector.extract_strided_slice %219 {offsets = [0, 0], sizes = [1, 128], strides = [1, 1]} : vector<32x128xf32> to vector<1x128xf32>
    %222 = tpu.concatenate %220, %221 in 0 : vector<31x128xf32>, vector<1x128xf32> -> vector<32x128xf32>
    %223 = arith.mulf %222, %62 : vector<32x128xf32>
    %224 = arith.addf %217, %218 : vector<32x128xf32>
    %225 = arith.addf %224, %223 : vector<32x128xf32>
    %226 = vector.extract_strided_slice %0 {offsets = [2, 2, 0], sizes = [1, 1, 128], strides = [1, 1, 1]} : vector<3x6x128xf32> to vector<1x1x128xf32>
    %227 = vector.shape_cast %226 : vector<1x1x128xf32> to vector<1x128xf32>
    %228 = vector.broadcast %227 : vector<1x128xf32> to vector<32x128xf32>
    %229 = arith.addf %225, %228 : vector<32x128xf32>
    %230 = arith.addf %174, %229 : vector<32x128xf32>
    %231 = vector.extract_strided_slice %0 {offsets = [0, 3, 0], sizes = [1, 1, 128], strides = [1, 1, 1]} : vector<3x6x128xf32> to vector<1x1x128xf32>
    %232 = vector.shape_cast %231 : vector<1x1x128xf32> to vector<1x128xf32>
    %233 = vector.extract_strided_slice %0 {offsets = [1, 3, 0], sizes = [1, 1, 128], strides = [1, 1, 1]} : vector<3x6x128xf32> to vector<1x1x128xf32>
    %234 = vector.shape_cast %233 : vector<1x1x128xf32> to vector<1x128xf32>
    %cst_51 = arith.constant dense<0.000000e+00> : vector<128xf32>
    %235 = vector.multi_reduction <add>, %230, %cst_51 [0] : vector<32x128xf32> to vector<128xf32>
    %236 = vector.shape_cast %235 : vector<128xf32> to vector<1x128xf32>
    %cst_52 = arith.constant 3.200000e+01 : f32
    %237 = vector.broadcast %cst_52 : f32 to vector<1x128xf32>
    %238 = arith.divf %236, %237 : vector<1x128xf32>
    %239 = vector.broadcast %238 : vector<1x128xf32> to vector<32x128xf32>
    %240 = arith.subf %230, %239 : vector<32x128xf32>
    %241 = arith.mulf %240, %240 : vector<32x128xf32>
    %cst_53 = arith.constant dense<0.000000e+00> : vector<128xf32>
    %242 = vector.multi_reduction <add>, %241, %cst_53 [0] : vector<32x128xf32> to vector<128xf32>
    %243 = vector.shape_cast %242 : vector<128xf32> to vector<1x128xf32>
    %cst_54 = arith.constant 3.200000e+01 : f32
    %244 = vector.broadcast %cst_54 : f32 to vector<1x128xf32>
    %245 = arith.divf %243, %244 : vector<1x128xf32>
    %246 = vector.broadcast %238 : vector<1x128xf32> to vector<32x128xf32>
    %247 = arith.subf %230, %246 : vector<32x128xf32>
    %cst_55 = arith.constant 9.99999974E-6 : f32
    %248 = vector.broadcast %cst_55 : f32 to vector<1x128xf32>
    %249 = arith.addf %245, %248 : vector<1x128xf32>
    %250 = math.rsqrt %249 : vector<1x128xf32>
    %251 = vector.broadcast %250 : vector<1x128xf32> to vector<32x128xf32>
    %252 = arith.mulf %247, %251 : vector<32x128xf32>
    %253 = vector.broadcast %232 : vector<1x128xf32> to vector<32x128xf32>
    %254 = arith.mulf %252, %253 : vector<32x128xf32>
    %255 = vector.broadcast %234 : vector<1x128xf32> to vector<32x128xf32>
    %256 = arith.addf %254, %255 : vector<32x128xf32>
    %cst_56 = arith.constant 5.000000e-01 : f32
    %257 = vector.broadcast %cst_56 : f32 to vector<32x128xf32>
    %258 = arith.mulf %257, %256 : vector<32x128xf32>
    %cst_57 = arith.constant 0.707106769 : f32
    %259 = vector.broadcast %cst_57 : f32 to vector<32x128xf32>
    %260 = arith.mulf %256, %259 : vector<32x128xf32>
    %261 = math.erf %260 : vector<32x128xf32>
    %cst_58 = arith.constant 1.000000e+00 : f32
    %262 = vector.broadcast %cst_58 : f32 to vector<32x128xf32>
    %263 = arith.addf %262, %261 : vector<32x128xf32>
    %264 = arith.mulf %258, %263 : vector<32x128xf32>
    %265 = arith.truncf %264 : vector<32x128xf32> to vector<32x128xbf16>
    %c3 = arith.constant 3 : index
    %c0_59 = arith.constant 0 : index
    %c0_60 = arith.constant 0 : index
    %266 = vector.load %arg3[%c3, %c0_59, %c0_60] : memref<6x128x384xbf16, #tpu.memory_space<vmem>>, vector<1x128x384xbf16>
    %267 = vector.shape_cast %266 : vector<1x128x384xbf16> to vector<128x384xbf16>
    %cst_61 = arith.constant dense<0.000000e+00> : vector<32x384xf32>
    %268 = tpu.matmul %265, %267, %cst_61 {dimension_numbers = #tpu.dot_dimension_numbers<[1], [0], [0], [1], [0, 0, 1, 1], [], []>} : vector<32x128xbf16>, vector<128x384xbf16>, vector<32x384xf32> -> vector<32x384xf32>
    %269 = vector.extract_strided_slice %268 {offsets = [0, 0], sizes = [32, 128], strides = [1, 1]} : vector<32x384xf32> to vector<32x128xf32>
    %270 = vector.extract_strided_slice %269 {offsets = [31, 0], sizes = [1, 128], strides = [1, 1]} : vector<32x128xf32> to vector<1x128xf32>
    %271 = vector.extract_strided_slice %269 {offsets = [0, 0], sizes = [31, 128], strides = [1, 1]} : vector<32x128xf32> to vector<31x128xf32>
    %272 = tpu.concatenate %270, %271 in 0 : vector<1x128xf32>, vector<31x128xf32> -> vector<32x128xf32>
    %273 = arith.mulf %272, %58 : vector<32x128xf32>
    %274 = vector.extract_strided_slice %268 {offsets = [0, 128], sizes = [32, 128], strides = [1, 1]} : vector<32x384xf32> to vector<32x128xf32>
    %275 = vector.extract_strided_slice %268 {offsets = [0, 256], sizes = [32, 128], strides = [1, 1]} : vector<32x384xf32> to vector<32x128xf32>
    %276 = vector.extract_strided_slice %275 {offsets = [1, 0], sizes = [31, 128], strides = [1, 1]} : vector<32x128xf32> to vector<31x128xf32>
    %277 = vector.extract_strided_slice %275 {offsets = [0, 0], sizes = [1, 128], strides = [1, 1]} : vector<32x128xf32> to vector<1x128xf32>
    %278 = tpu.concatenate %276, %277 in 0 : vector<31x128xf32>, vector<1x128xf32> -> vector<32x128xf32>
    %279 = arith.mulf %278, %62 : vector<32x128xf32>
    %280 = arith.addf %273, %274 : vector<32x128xf32>
    %281 = arith.addf %280, %279 : vector<32x128xf32>
    %282 = vector.extract_strided_slice %0 {offsets = [2, 3, 0], sizes = [1, 1, 128], strides = [1, 1, 1]} : vector<3x6x128xf32> to vector<1x1x128xf32>
    %283 = vector.shape_cast %282 : vector<1x1x128xf32> to vector<1x128xf32>
    %284 = vector.broadcast %283 : vector<1x128xf32> to vector<32x128xf32>
    %285 = arith.addf %281, %284 : vector<32x128xf32>
    %286 = arith.addf %230, %285 : vector<32x128xf32>
    %287 = vector.extract_strided_slice %0 {offsets = [0, 4, 0], sizes = [1, 1, 128], strides = [1, 1, 1]} : vector<3x6x128xf32> to vector<1x1x128xf32>
    %288 = vector.shape_cast %287 : vector<1x1x128xf32> to vector<1x128xf32>
    %289 = vector.extract_strided_slice %0 {offsets = [1, 4, 0], sizes = [1, 1, 128], strides = [1, 1, 1]} : vector<3x6x128xf32> to vector<1x1x128xf32>
    %290 = vector.shape_cast %289 : vector<1x1x128xf32> to vector<1x128xf32>
    %cst_62 = arith.constant dense<0.000000e+00> : vector<128xf32>
    %291 = vector.multi_reduction <add>, %286, %cst_62 [0] : vector<32x128xf32> to vector<128xf32>
    %292 = vector.shape_cast %291 : vector<128xf32> to vector<1x128xf32>
    %cst_63 = arith.constant 3.200000e+01 : f32
    %293 = vector.broadcast %cst_63 : f32 to vector<1x128xf32>
    %294 = arith.divf %292, %293 : vector<1x128xf32>
    %295 = vector.broadcast %294 : vector<1x128xf32> to vector<32x128xf32>
    %296 = arith.subf %286, %295 : vector<32x128xf32>
    %297 = arith.mulf %296, %296 : vector<32x128xf32>
    %cst_64 = arith.constant dense<0.000000e+00> : vector<128xf32>
    %298 = vector.multi_reduction <add>, %297, %cst_64 [0] : vector<32x128xf32> to vector<128xf32>
    %299 = vector.shape_cast %298 : vector<128xf32> to vector<1x128xf32>
    %cst_65 = arith.constant 3.200000e+01 : f32
    %300 = vector.broadcast %cst_65 : f32 to vector<1x128xf32>
    %301 = arith.divf %299, %300 : vector<1x128xf32>
    %302 = vector.broadcast %294 : vector<1x128xf32> to vector<32x128xf32>
    %303 = arith.subf %286, %302 : vector<32x128xf32>
    %cst_66 = arith.constant 9.99999974E-6 : f32
    %304 = vector.broadcast %cst_66 : f32 to vector<1x128xf32>
    %305 = arith.addf %301, %304 : vector<1x128xf32>
    %306 = math.rsqrt %305 : vector<1x128xf32>
    %307 = vector.broadcast %306 : vector<1x128xf32> to vector<32x128xf32>
    %308 = arith.mulf %303, %307 : vector<32x128xf32>
    %309 = vector.broadcast %288 : vector<1x128xf32> to vector<32x128xf32>
    %310 = arith.mulf %308, %309 : vector<32x128xf32>
    %311 = vector.broadcast %290 : vector<1x128xf32> to vector<32x128xf32>
    %312 = arith.addf %310, %311 : vector<32x128xf32>
    %cst_67 = arith.constant 5.000000e-01 : f32
    %313 = vector.broadcast %cst_67 : f32 to vector<32x128xf32>
    %314 = arith.mulf %313, %312 : vector<32x128xf32>
    %cst_68 = arith.constant 0.707106769 : f32
    %315 = vector.broadcast %cst_68 : f32 to vector<32x128xf32>
    %316 = arith.mulf %312, %315 : vector<32x128xf32>
    %317 = math.erf %316 : vector<32x128xf32>
    %cst_69 = arith.constant 1.000000e+00 : f32
    %318 = vector.broadcast %cst_69 : f32 to vector<32x128xf32>
    %319 = arith.addf %318, %317 : vector<32x128xf32>
    %320 = arith.mulf %314, %319 : vector<32x128xf32>
    %321 = arith.truncf %320 : vector<32x128xf32> to vector<32x128xbf16>
    %c4 = arith.constant 4 : index
    %c0_70 = arith.constant 0 : index
    %c0_71 = arith.constant 0 : index
    %322 = vector.load %arg3[%c4, %c0_70, %c0_71] : memref<6x128x384xbf16, #tpu.memory_space<vmem>>, vector<1x128x384xbf16>
    %323 = vector.shape_cast %322 : vector<1x128x384xbf16> to vector<128x384xbf16>
    %cst_72 = arith.constant dense<0.000000e+00> : vector<32x384xf32>
    %324 = tpu.matmul %321, %323, %cst_72 {dimension_numbers = #tpu.dot_dimension_numbers<[1], [0], [0], [1], [0, 0, 1, 1], [], []>} : vector<32x128xbf16>, vector<128x384xbf16>, vector<32x384xf32> -> vector<32x384xf32>
    %325 = vector.extract_strided_slice %324 {offsets = [0, 0], sizes = [32, 128], strides = [1, 1]} : vector<32x384xf32> to vector<32x128xf32>
    %326 = vector.extract_strided_slice %325 {offsets = [31, 0], sizes = [1, 128], strides = [1, 1]} : vector<32x128xf32> to vector<1x128xf32>
    %327 = vector.extract_strided_slice %325 {offsets = [0, 0], sizes = [31, 128], strides = [1, 1]} : vector<32x128xf32> to vector<31x128xf32>
    %328 = tpu.concatenate %326, %327 in 0 : vector<1x128xf32>, vector<31x128xf32> -> vector<32x128xf32>
    %329 = arith.mulf %328, %58 : vector<32x128xf32>
    %330 = vector.extract_strided_slice %324 {offsets = [0, 128], sizes = [32, 128], strides = [1, 1]} : vector<32x384xf32> to vector<32x128xf32>
    %331 = vector.extract_strided_slice %324 {offsets = [0, 256], sizes = [32, 128], strides = [1, 1]} : vector<32x384xf32> to vector<32x128xf32>
    %332 = vector.extract_strided_slice %331 {offsets = [1, 0], sizes = [31, 128], strides = [1, 1]} : vector<32x128xf32> to vector<31x128xf32>
    %333 = vector.extract_strided_slice %331 {offsets = [0, 0], sizes = [1, 128], strides = [1, 1]} : vector<32x128xf32> to vector<1x128xf32>
    %334 = tpu.concatenate %332, %333 in 0 : vector<31x128xf32>, vector<1x128xf32> -> vector<32x128xf32>
    %335 = arith.mulf %334, %62 : vector<32x128xf32>
    %336 = arith.addf %329, %330 : vector<32x128xf32>
    %337 = arith.addf %336, %335 : vector<32x128xf32>
    %338 = vector.extract_strided_slice %0 {offsets = [2, 4, 0], sizes = [1, 1, 128], strides = [1, 1, 1]} : vector<3x6x128xf32> to vector<1x1x128xf32>
    %339 = vector.shape_cast %338 : vector<1x1x128xf32> to vector<1x128xf32>
    %340 = vector.broadcast %339 : vector<1x128xf32> to vector<32x128xf32>
    %341 = arith.addf %337, %340 : vector<32x128xf32>
    %342 = arith.addf %286, %341 : vector<32x128xf32>
    %343 = vector.extract_strided_slice %0 {offsets = [0, 5, 0], sizes = [1, 1, 128], strides = [1, 1, 1]} : vector<3x6x128xf32> to vector<1x1x128xf32>
    %344 = vector.shape_cast %343 : vector<1x1x128xf32> to vector<1x128xf32>
    %345 = vector.extract_strided_slice %0 {offsets = [1, 5, 0], sizes = [1, 1, 128], strides = [1, 1, 1]} : vector<3x6x128xf32> to vector<1x1x128xf32>
    %346 = vector.shape_cast %345 : vector<1x1x128xf32> to vector<1x128xf32>
    %cst_73 = arith.constant dense<0.000000e+00> : vector<128xf32>
    %347 = vector.multi_reduction <add>, %342, %cst_73 [0] : vector<32x128xf32> to vector<128xf32>
    %348 = vector.shape_cast %347 : vector<128xf32> to vector<1x128xf32>
    %cst_74 = arith.constant 3.200000e+01 : f32
    %349 = vector.broadcast %cst_74 : f32 to vector<1x128xf32>
    %350 = arith.divf %348, %349 : vector<1x128xf32>
    %351 = vector.broadcast %350 : vector<1x128xf32> to vector<32x128xf32>
    %352 = arith.subf %342, %351 : vector<32x128xf32>
    %353 = arith.mulf %352, %352 : vector<32x128xf32>
    %cst_75 = arith.constant dense<0.000000e+00> : vector<128xf32>
    %354 = vector.multi_reduction <add>, %353, %cst_75 [0] : vector<32x128xf32> to vector<128xf32>
    %355 = vector.shape_cast %354 : vector<128xf32> to vector<1x128xf32>
    %cst_76 = arith.constant 3.200000e+01 : f32
    %356 = vector.broadcast %cst_76 : f32 to vector<1x128xf32>
    %357 = arith.divf %355, %356 : vector<1x128xf32>
    %358 = vector.broadcast %350 : vector<1x128xf32> to vector<32x128xf32>
    %359 = arith.subf %342, %358 : vector<32x128xf32>
    %cst_77 = arith.constant 9.99999974E-6 : f32
    %360 = vector.broadcast %cst_77 : f32 to vector<1x128xf32>
    %361 = arith.addf %357, %360 : vector<1x128xf32>
    %362 = math.rsqrt %361 : vector<1x128xf32>
    %363 = vector.broadcast %362 : vector<1x128xf32> to vector<32x128xf32>
    %364 = arith.mulf %359, %363 : vector<32x128xf32>
    %365 = vector.broadcast %344 : vector<1x128xf32> to vector<32x128xf32>
    %366 = arith.mulf %364, %365 : vector<32x128xf32>
    %367 = vector.broadcast %346 : vector<1x128xf32> to vector<32x128xf32>
    %368 = arith.addf %366, %367 : vector<32x128xf32>
    %cst_78 = arith.constant 5.000000e-01 : f32
    %369 = vector.broadcast %cst_78 : f32 to vector<32x128xf32>
    %370 = arith.mulf %369, %368 : vector<32x128xf32>
    %cst_79 = arith.constant 0.707106769 : f32
    %371 = vector.broadcast %cst_79 : f32 to vector<32x128xf32>
    %372 = arith.mulf %368, %371 : vector<32x128xf32>
    %373 = math.erf %372 : vector<32x128xf32>
    %cst_80 = arith.constant 1.000000e+00 : f32
    %374 = vector.broadcast %cst_80 : f32 to vector<32x128xf32>
    %375 = arith.addf %374, %373 : vector<32x128xf32>
    %376 = arith.mulf %370, %375 : vector<32x128xf32>
    %377 = arith.truncf %376 : vector<32x128xf32> to vector<32x128xbf16>
    %c5 = arith.constant 5 : index
    %c0_81 = arith.constant 0 : index
    %c0_82 = arith.constant 0 : index
    %378 = vector.load %arg3[%c5, %c0_81, %c0_82] : memref<6x128x384xbf16, #tpu.memory_space<vmem>>, vector<1x128x384xbf16>
    %379 = vector.shape_cast %378 : vector<1x128x384xbf16> to vector<128x384xbf16>
    %cst_83 = arith.constant dense<0.000000e+00> : vector<32x384xf32>
    %380 = tpu.matmul %377, %379, %cst_83 {dimension_numbers = #tpu.dot_dimension_numbers<[1], [0], [0], [1], [0, 0, 1, 1], [], []>} : vector<32x128xbf16>, vector<128x384xbf16>, vector<32x384xf32> -> vector<32x384xf32>
    %381 = vector.extract_strided_slice %380 {offsets = [0, 0], sizes = [32, 128], strides = [1, 1]} : vector<32x384xf32> to vector<32x128xf32>
    %382 = vector.extract_strided_slice %381 {offsets = [31, 0], sizes = [1, 128], strides = [1, 1]} : vector<32x128xf32> to vector<1x128xf32>
    %383 = vector.extract_strided_slice %381 {offsets = [0, 0], sizes = [31, 128], strides = [1, 1]} : vector<32x128xf32> to vector<31x128xf32>
    %384 = tpu.concatenate %382, %383 in 0 : vector<1x128xf32>, vector<31x128xf32> -> vector<32x128xf32>
    %385 = arith.mulf %384, %58 : vector<32x128xf32>
    %386 = vector.extract_strided_slice %380 {offsets = [0, 128], sizes = [32, 128], strides = [1, 1]} : vector<32x384xf32> to vector<32x128xf32>
    %387 = vector.extract_strided_slice %380 {offsets = [0, 256], sizes = [32, 128], strides = [1, 1]} : vector<32x384xf32> to vector<32x128xf32>
    %388 = vector.extract_strided_slice %387 {offsets = [1, 0], sizes = [31, 128], strides = [1, 1]} : vector<32x128xf32> to vector<31x128xf32>
    %389 = vector.extract_strided_slice %387 {offsets = [0, 0], sizes = [1, 128], strides = [1, 1]} : vector<32x128xf32> to vector<1x128xf32>
    %390 = tpu.concatenate %388, %389 in 0 : vector<31x128xf32>, vector<1x128xf32> -> vector<32x128xf32>
    %391 = arith.mulf %390, %62 : vector<32x128xf32>
    %392 = arith.addf %385, %386 : vector<32x128xf32>
    %393 = arith.addf %392, %391 : vector<32x128xf32>
    %394 = vector.extract_strided_slice %0 {offsets = [2, 5, 0], sizes = [1, 1, 128], strides = [1, 1, 1]} : vector<3x6x128xf32> to vector<1x1x128xf32>
    %395 = vector.shape_cast %394 : vector<1x1x128xf32> to vector<1x128xf32>
    %396 = vector.broadcast %395 : vector<1x128xf32> to vector<32x128xf32>
    %397 = arith.addf %393, %396 : vector<32x128xf32>
    %398 = arith.addf %342, %397 : vector<32x128xf32>
    %399 = vector.extract_strided_slice %1 {offsets = [0, 0], sizes = [1, 128], strides = [1, 1]} : vector<16x128xf32> to vector<1x128xf32>
    %400 = vector.extract_strided_slice %1 {offsets = [1, 0], sizes = [1, 128], strides = [1, 1]} : vector<16x128xf32> to vector<1x128xf32>
    %cst_84 = arith.constant dense<0.000000e+00> : vector<128xf32>
    %401 = vector.multi_reduction <add>, %398, %cst_84 [0] : vector<32x128xf32> to vector<128xf32>
    %402 = vector.shape_cast %401 : vector<128xf32> to vector<1x128xf32>
    %cst_85 = arith.constant 3.200000e+01 : f32
    %403 = vector.broadcast %cst_85 : f32 to vector<1x128xf32>
    %404 = arith.divf %402, %403 : vector<1x128xf32>
    %405 = vector.broadcast %404 : vector<1x128xf32> to vector<32x128xf32>
    %406 = arith.subf %398, %405 : vector<32x128xf32>
    %407 = arith.mulf %406, %406 : vector<32x128xf32>
    %cst_86 = arith.constant dense<0.000000e+00> : vector<128xf32>
    %408 = vector.multi_reduction <add>, %407, %cst_86 [0] : vector<32x128xf32> to vector<128xf32>
    %409 = vector.shape_cast %408 : vector<128xf32> to vector<1x128xf32>
    %cst_87 = arith.constant 3.200000e+01 : f32
    %410 = vector.broadcast %cst_87 : f32 to vector<1x128xf32>
    %411 = arith.divf %409, %410 : vector<1x128xf32>
    %412 = vector.broadcast %404 : vector<1x128xf32> to vector<32x128xf32>
    %413 = arith.subf %398, %412 : vector<32x128xf32>
    %cst_88 = arith.constant 9.99999974E-6 : f32
    %414 = vector.broadcast %cst_88 : f32 to vector<1x128xf32>
    %415 = arith.addf %411, %414 : vector<1x128xf32>
    %416 = math.rsqrt %415 : vector<1x128xf32>
    %417 = vector.broadcast %416 : vector<1x128xf32> to vector<32x128xf32>
    %418 = arith.mulf %413, %417 : vector<32x128xf32>
    %419 = vector.broadcast %399 : vector<1x128xf32> to vector<32x128xf32>
    %420 = arith.mulf %418, %419 : vector<32x128xf32>
    %421 = vector.broadcast %400 : vector<1x128xf32> to vector<32x128xf32>
    %422 = arith.addf %420, %421 : vector<32x128xf32>
    %cst_89 = arith.constant 5.000000e-01 : f32
    %423 = vector.broadcast %cst_89 : f32 to vector<32x128xf32>
    %424 = arith.mulf %423, %422 : vector<32x128xf32>
    %cst_90 = arith.constant 0.707106769 : f32
    %425 = vector.broadcast %cst_90 : f32 to vector<32x128xf32>
    %426 = arith.mulf %422, %425 : vector<32x128xf32>
    %427 = math.erf %426 : vector<32x128xf32>
    %cst_91 = arith.constant 1.000000e+00 : f32
    %428 = vector.broadcast %cst_91 : f32 to vector<32x128xf32>
    %429 = arith.addf %428, %427 : vector<32x128xf32>
    %430 = arith.mulf %424, %429 : vector<32x128xf32>
    %431 = arith.truncf %430 : vector<32x128xf32> to vector<32x128xbf16>
    %c0_92 = arith.constant 0 : index
    %c0_93 = arith.constant 0 : index
    %432 = vector.load %arg5[%c0_92, %c0_93] : memref<128x1024xbf16, #tpu.memory_space<vmem>>, vector<128x64xbf16>
    %cst_94 = arith.constant dense<0.000000e+00> : vector<32x64xf32>
    %433 = tpu.matmul %431, %432, %cst_94 {dimension_numbers = #tpu.dot_dimension_numbers<[1], [0], [0], [1], [0, 0, 1, 1], [], []>} : vector<32x128xbf16>, vector<128x64xbf16>, vector<32x64xf32> -> vector<32x64xf32>
    %434 = tpu.iota {dimensions = array<i32: 0>} : vector<32x64xi32>
    %c2_i32_95 = arith.constant 2 : i32
    %c0_i32_96 = arith.constant 0 : i32
    %435 = arith.cmpi eq, %c2_i32_95, %c0_i32_96 : i32
    %c1_i32_97 = arith.constant 1 : i32
    %436 = arith.select %435, %c1_i32_97, %c2_i32_95 : i32
    %437 = vector.broadcast %436 : i32 to vector<32x64xi32>
    %438 = arith.remsi %434, %437 : vector<32x64xi32>
    %c0_i32_98 = arith.constant 0 : i32
    %439 = vector.broadcast %c0_i32_98 : i32 to vector<32x64xi32>
    %440 = arith.cmpi ne, %438, %439 : vector<32x64xi32>
    %c0_i32_99 = arith.constant 0 : i32
    %441 = vector.broadcast %c0_i32_99 : i32 to vector<32x64xi32>
    %442 = arith.cmpi slt, %438, %441 : vector<32x64xi32>
    %c0_i32_100 = arith.constant 0 : i32
    %443 = arith.cmpi slt, %436, %c0_i32_100 : i32
    %444 = vector.broadcast %443 : i1 to vector<32x64xi1>
    %445 = vector.broadcast %444 : vector<32x64xi1> to vector<32x64xi1>
    %446 = arith.xori %442, %445 : vector<32x64xi1>
    %447 = arith.andi %446, %440 : vector<32x64xi1>
    %448 = vector.broadcast %436 : i32 to vector<32x64xi32>
    %449 = arith.addi %438, %448 : vector<32x64xi32>
    %450 = arith.select %447, %449, %438 : vector<32x64xi1>, vector<32x64xi32>
    %c0_i32_101 = arith.constant 0 : i32
    %451 = vector.broadcast %c0_i32_101 : i32 to vector<32x64xi32>
    %452 = arith.cmpi eq, %450, %451 : vector<32x64xi32>
    %453 = vector.extract_strided_slice %433 {offsets = [1, 0], sizes = [31, 64], strides = [1, 1]} : vector<32x64xf32> to vector<31x64xf32>
    %454 = vector.extract_strided_slice %433 {offsets = [0, 0], sizes = [1, 64], strides = [1, 1]} : vector<32x64xf32> to vector<1x64xf32>
    %455 = tpu.concatenate %453, %454 in 0 : vector<31x64xf32>, vector<1x64xf32> -> vector<32x64xf32>
    %456 = vector.extract_strided_slice %433 {offsets = [31, 0], sizes = [1, 64], strides = [1, 1]} : vector<32x64xf32> to vector<1x64xf32>
    %457 = vector.extract_strided_slice %433 {offsets = [0, 0], sizes = [31, 64], strides = [1, 1]} : vector<32x64xf32> to vector<31x64xf32>
    %458 = tpu.concatenate %456, %457 in 0 : vector<1x64xf32>, vector<31x64xf32> -> vector<32x64xf32>
    %459 = arith.select %452, %455, %458 : vector<32x64xi1>, vector<32x64xf32>
    %460 = arith.addf %433, %459 : vector<32x64xf32>
    %cst_102 = arith.constant 5.000000e-01 : f32
    %461 = vector.broadcast %cst_102 : f32 to vector<32x64xf32>
    %462 = arith.mulf %461, %460 : vector<32x64xf32>
    %463 = vector.extract_strided_slice %1 {offsets = [2, 0], sizes = [1, 64], strides = [1, 1]} : vector<16x128xf32> to vector<1x64xf32>
    %464 = vector.broadcast %463 : vector<1x64xf32> to vector<32x64xf32>
    %465 = arith.addf %462, %464 : vector<32x64xf32>
    %466 = arith.truncf %465 : vector<32x64xf32> to vector<32x64xbf16>
    %c0_103 = arith.constant 0 : index
    %c128 = arith.constant 128 : index
    %467 = vector.load %arg5[%c0_103, %c128] : memref<128x1024xbf16, #tpu.memory_space<vmem>>, vector<64x64xbf16>
    %cst_104 = arith.constant dense<0.000000e+00> : vector<32x64xf32>
    %468 = tpu.matmul %466, %467, %cst_104 {dimension_numbers = #tpu.dot_dimension_numbers<[1], [0], [0], [1], [0, 0, 1, 1], [], []>} : vector<32x64xbf16>, vector<64x64xbf16>, vector<32x64xf32> -> vector<32x64xf32>
    %469 = vector.extract_strided_slice %1 {offsets = [3, 0], sizes = [1, 64], strides = [1, 1]} : vector<16x128xf32> to vector<1x64xf32>
    %470 = vector.broadcast %469 : vector<1x64xf32> to vector<32x64xf32>
    %471 = arith.addf %468, %470 : vector<32x64xf32>
    %c0_105 = arith.constant 0 : index
    %c256 = arith.constant 256 : index
    %472 = vector.load %arg5[%c0_105, %c256] : memref<128x1024xbf16, #tpu.memory_space<vmem>>, vector<64x64xbf16>
    %cst_106 = arith.constant dense<0.000000e+00> : vector<32x64xf32>
    %473 = tpu.matmul %466, %472, %cst_106 {dimension_numbers = #tpu.dot_dimension_numbers<[1], [0], [0], [1], [0, 0, 1, 1], [], []>} : vector<32x64xbf16>, vector<64x64xbf16>, vector<32x64xf32> -> vector<32x64xf32>
    %474 = vector.extract_strided_slice %1 {offsets = [4, 0], sizes = [1, 64], strides = [1, 1]} : vector<16x128xf32> to vector<1x64xf32>
    %475 = vector.broadcast %474 : vector<1x64xf32> to vector<32x64xf32>
    %476 = arith.addf %473, %475 : vector<32x64xf32>
    %c0_107 = arith.constant 0 : index
    %c384 = arith.constant 384 : index
    %477 = vector.load %arg5[%c0_107, %c384] : memref<128x1024xbf16, #tpu.memory_space<vmem>>, vector<64x64xbf16>
    %cst_108 = arith.constant dense<0.000000e+00> : vector<32x64xf32>
    %478 = tpu.matmul %466, %477, %cst_108 {dimension_numbers = #tpu.dot_dimension_numbers<[1], [0], [0], [1], [0, 0, 1, 1], [], []>} : vector<32x64xbf16>, vector<64x64xbf16>, vector<32x64xf32> -> vector<32x64xf32>
    %479 = vector.extract_strided_slice %1 {offsets = [5, 0], sizes = [1, 64], strides = [1, 1]} : vector<16x128xf32> to vector<1x64xf32>
    %480 = vector.broadcast %479 : vector<1x64xf32> to vector<32x64xf32>
    %481 = arith.addf %478, %480 : vector<32x64xf32>
    %482 = arith.truncf %471 : vector<32x64xf32> to vector<32x64xbf16>
    %483 = vector.shape_cast %482 : vector<32x64xbf16> to vector<2x16x64xbf16>
    %484 = arith.truncf %476 : vector<32x64xf32> to vector<32x64xbf16>
    %485 = vector.shape_cast %484 : vector<32x64xbf16> to vector<2x16x64xbf16>
    %486 = arith.truncf %481 : vector<32x64xf32> to vector<32x64xbf16>
    %487 = vector.shape_cast %486 : vector<32x64xbf16> to vector<2x16x64xbf16>
    %cst_109 = arith.constant 0.000000e+00 : f32
    %488 = vector.broadcast %cst_109 : f32 to vector<32x64xf32>
    %489 = vector.extract_strided_slice %483 {offsets = [0, 0, 0], sizes = [2, 16, 16], strides = [1, 1, 1]} : vector<2x16x64xbf16> to vector<2x16x16xbf16>
    %490 = vector.extract_strided_slice %485 {offsets = [0, 0, 0], sizes = [2, 16, 16], strides = [1, 1, 1]} : vector<2x16x64xbf16> to vector<2x16x16xbf16>
    "tpu.trace_start"() <{level = 10 : i32, message = "bld,bmd->blm"}> : () -> ()
    %cst_110 = arith.constant dense<0.000000e+00> : vector<2x16x16xf32>
    %491 = tpu.matmul %489, %490, %cst_110 {dimension_numbers = #tpu.dot_dimension_numbers<[2], [2], [1], [1], [0, 0, 0, 1, 1, 1], [0], [0]>} : vector<2x16x16xbf16>, vector<2x16x16xbf16>, vector<2x16x16xf32> -> vector<2x16x16xf32>
    "tpu.trace_stop"() : () -> ()
    %cst_111 = arith.constant dense<0xFF800000> : vector<2x16xf32>
    %492 = vector.multi_reduction <maximumf>, %491, %cst_111 [2] : vector<2x16x16xf32> to vector<2x16xf32>
    %493 = vector.shape_cast %492 : vector<2x16xf32> to vector<2x16x1xf32>
    %494 = vector.broadcast %493 : vector<2x16x1xf32> to vector<2x16x16xf32>
    %495 = arith.subf %491, %494 : vector<2x16x16xf32>
    %496 = math.exp %495 : vector<2x16x16xf32>
    %cst_112 = arith.constant dense<0.000000e+00> : vector<2x16xf32>
    %497 = vector.multi_reduction <add>, %496, %cst_112 [2] : vector<2x16x16xf32> to vector<2x16xf32>
    %498 = vector.shape_cast %497 : vector<2x16xf32> to vector<2x16x1xf32>
    %499 = tpu.reciprocal %498 {approx = true} : vector<2x16x1xf32> -> vector<2x16x1xf32>
    %500 = vector.broadcast %499 : vector<2x16x1xf32> to vector<2x16x16xf32>
    %501 = arith.mulf %496, %500 : vector<2x16x16xf32>
    %502 = arith.truncf %501 : vector<2x16x16xf32> to vector<2x16x16xbf16>
    %503 = vector.extract_strided_slice %487 {offsets = [0, 0, 0], sizes = [2, 16, 16], strides = [1, 1, 1]} : vector<2x16x64xbf16> to vector<2x16x16xbf16>
    "tpu.trace_start"() <{level = 10 : i32, message = "blm,bmd->bld"}> : () -> ()
    %cst_113 = arith.constant dense<0.000000e+00> : vector<2x16x16xf32>
    %504 = tpu.matmul %502, %503, %cst_113 {dimension_numbers = #tpu.dot_dimension_numbers<[2], [1], [1], [2], [0, 0, 0, 1, 1, 2], [0], [0]>} : vector<2x16x16xbf16>, vector<2x16x16xbf16>, vector<2x16x16xf32> -> vector<2x16x16xf32>
    "tpu.trace_stop"() : () -> ()
    %505 = vector.shape_cast %504 : vector<2x16x16xf32> to vector<32x16xf32>
    %506 = arith.truncf %505 : vector<32x16xf32> to vector<32x16xbf16>
    %c0_114 = arith.constant 0 : index
    %c512 = arith.constant 512 : index
    %507 = vector.load %arg5[%c0_114, %c512] : memref<128x1024xbf16, #tpu.memory_space<vmem>>, vector<16x64xbf16>
    %cst_115 = arith.constant dense<0.000000e+00> : vector<32x64xf32>
    %508 = tpu.matmul %506, %507, %cst_115 {dimension_numbers = #tpu.dot_dimension_numbers<[1], [0], [0], [1], [0, 0, 1, 1], [], []>} : vector<32x16xbf16>, vector<16x64xbf16>, vector<32x64xf32> -> vector<32x64xf32>
    %509 = arith.addf %488, %508 : vector<32x64xf32>
    %510 = vector.extract_strided_slice %483 {offsets = [0, 0, 16], sizes = [2, 16, 16], strides = [1, 1, 1]} : vector<2x16x64xbf16> to vector<2x16x16xbf16>
    %511 = vector.extract_strided_slice %485 {offsets = [0, 0, 16], sizes = [2, 16, 16], strides = [1, 1, 1]} : vector<2x16x64xbf16> to vector<2x16x16xbf16>
    "tpu.trace_start"() <{level = 10 : i32, message = "bld,bmd->blm"}> : () -> ()
    %cst_116 = arith.constant dense<0.000000e+00> : vector<2x16x16xf32>
    %512 = tpu.matmul %510, %511, %cst_116 {dimension_numbers = #tpu.dot_dimension_numbers<[2], [2], [1], [1], [0, 0, 0, 1, 1, 1], [0], [0]>} : vector<2x16x16xbf16>, vector<2x16x16xbf16>, vector<2x16x16xf32> -> vector<2x16x16xf32>
    "tpu.trace_stop"() : () -> ()
    %cst_117 = arith.constant dense<0xFF800000> : vector<2x16xf32>
    %513 = vector.multi_reduction <maximumf>, %512, %cst_117 [2] : vector<2x16x16xf32> to vector<2x16xf32>
    %514 = vector.shape_cast %513 : vector<2x16xf32> to vector<2x16x1xf32>
    %515 = vector.broadcast %514 : vector<2x16x1xf32> to vector<2x16x16xf32>
    %516 = arith.subf %512, %515 : vector<2x16x16xf32>
    %517 = math.exp %516 : vector<2x16x16xf32>
    %cst_118 = arith.constant dense<0.000000e+00> : vector<2x16xf32>
    %518 = vector.multi_reduction <add>, %517, %cst_118 [2] : vector<2x16x16xf32> to vector<2x16xf32>
    %519 = vector.shape_cast %518 : vector<2x16xf32> to vector<2x16x1xf32>
    %520 = tpu.reciprocal %519 {approx = true} : vector<2x16x1xf32> -> vector<2x16x1xf32>
    %521 = vector.broadcast %520 : vector<2x16x1xf32> to vector<2x16x16xf32>
    %522 = arith.mulf %517, %521 : vector<2x16x16xf32>
    %523 = arith.truncf %522 : vector<2x16x16xf32> to vector<2x16x16xbf16>
    %524 = vector.extract_strided_slice %487 {offsets = [0, 0, 16], sizes = [2, 16, 16], strides = [1, 1, 1]} : vector<2x16x64xbf16> to vector<2x16x16xbf16>
    "tpu.trace_start"() <{level = 10 : i32, message = "blm,bmd->bld"}> : () -> ()
    %cst_119 = arith.constant dense<0.000000e+00> : vector<2x16x16xf32>
    %525 = tpu.matmul %523, %524, %cst_119 {dimension_numbers = #tpu.dot_dimension_numbers<[2], [1], [1], [2], [0, 0, 0, 1, 1, 2], [0], [0]>} : vector<2x16x16xbf16>, vector<2x16x16xbf16>, vector<2x16x16xf32> -> vector<2x16x16xf32>
    "tpu.trace_stop"() : () -> ()
    %526 = vector.shape_cast %525 : vector<2x16x16xf32> to vector<32x16xf32>
    %527 = arith.truncf %526 : vector<32x16xf32> to vector<32x16xbf16>
    %c16 = arith.constant 16 : index
    %c512_120 = arith.constant 512 : index
    %528 = vector.load %arg5[%c16, %c512_120] : memref<128x1024xbf16, #tpu.memory_space<vmem>>, vector<16x64xbf16>
    %cst_121 = arith.constant dense<0.000000e+00> : vector<32x64xf32>
    %529 = tpu.matmul %527, %528, %cst_121 {dimension_numbers = #tpu.dot_dimension_numbers<[1], [0], [0], [1], [0, 0, 1, 1], [], []>} : vector<32x16xbf16>, vector<16x64xbf16>, vector<32x64xf32> -> vector<32x64xf32>
    %530 = arith.addf %509, %529 : vector<32x64xf32>
    %531 = vector.extract_strided_slice %483 {offsets = [0, 0, 32], sizes = [2, 16, 16], strides = [1, 1, 1]} : vector<2x16x64xbf16> to vector<2x16x16xbf16>
    %532 = vector.extract_strided_slice %485 {offsets = [0, 0, 32], sizes = [2, 16, 16], strides = [1, 1, 1]} : vector<2x16x64xbf16> to vector<2x16x16xbf16>
    "tpu.trace_start"() <{level = 10 : i32, message = "bld,bmd->blm"}> : () -> ()
    %cst_122 = arith.constant dense<0.000000e+00> : vector<2x16x16xf32>
    %533 = tpu.matmul %531, %532, %cst_122 {dimension_numbers = #tpu.dot_dimension_numbers<[2], [2], [1], [1], [0, 0, 0, 1, 1, 1], [0], [0]>} : vector<2x16x16xbf16>, vector<2x16x16xbf16>, vector<2x16x16xf32> -> vector<2x16x16xf32>
    "tpu.trace_stop"() : () -> ()
    %cst_123 = arith.constant dense<0xFF800000> : vector<2x16xf32>
    %534 = vector.multi_reduction <maximumf>, %533, %cst_123 [2] : vector<2x16x16xf32> to vector<2x16xf32>
    %535 = vector.shape_cast %534 : vector<2x16xf32> to vector<2x16x1xf32>
    %536 = vector.broadcast %535 : vector<2x16x1xf32> to vector<2x16x16xf32>
    %537 = arith.subf %533, %536 : vector<2x16x16xf32>
    %538 = math.exp %537 : vector<2x16x16xf32>
    %cst_124 = arith.constant dense<0.000000e+00> : vector<2x16xf32>
    %539 = vector.multi_reduction <add>, %538, %cst_124 [2] : vector<2x16x16xf32> to vector<2x16xf32>
    %540 = vector.shape_cast %539 : vector<2x16xf32> to vector<2x16x1xf32>
    %541 = tpu.reciprocal %540 {approx = true} : vector<2x16x1xf32> -> vector<2x16x1xf32>
    %542 = vector.broadcast %541 : vector<2x16x1xf32> to vector<2x16x16xf32>
    %543 = arith.mulf %538, %542 : vector<2x16x16xf32>
    %544 = arith.truncf %543 : vector<2x16x16xf32> to vector<2x16x16xbf16>
    %545 = vector.extract_strided_slice %487 {offsets = [0, 0, 32], sizes = [2, 16, 16], strides = [1, 1, 1]} : vector<2x16x64xbf16> to vector<2x16x16xbf16>
    "tpu.trace_start"() <{level = 10 : i32, message = "blm,bmd->bld"}> : () -> ()
    %cst_125 = arith.constant dense<0.000000e+00> : vector<2x16x16xf32>
    %546 = tpu.matmul %544, %545, %cst_125 {dimension_numbers = #tpu.dot_dimension_numbers<[2], [1], [1], [2], [0, 0, 0, 1, 1, 2], [0], [0]>} : vector<2x16x16xbf16>, vector<2x16x16xbf16>, vector<2x16x16xf32> -> vector<2x16x16xf32>
    "tpu.trace_stop"() : () -> ()
    %547 = vector.shape_cast %546 : vector<2x16x16xf32> to vector<32x16xf32>
    %548 = arith.truncf %547 : vector<32x16xf32> to vector<32x16xbf16>
    %c32 = arith.constant 32 : index
    %c512_126 = arith.constant 512 : index
    %549 = vector.load %arg5[%c32, %c512_126] : memref<128x1024xbf16, #tpu.memory_space<vmem>>, vector<16x64xbf16>
    %cst_127 = arith.constant dense<0.000000e+00> : vector<32x64xf32>
    %550 = tpu.matmul %548, %549, %cst_127 {dimension_numbers = #tpu.dot_dimension_numbers<[1], [0], [0], [1], [0, 0, 1, 1], [], []>} : vector<32x16xbf16>, vector<16x64xbf16>, vector<32x64xf32> -> vector<32x64xf32>
    %551 = arith.addf %530, %550 : vector<32x64xf32>
    %552 = vector.extract_strided_slice %483 {offsets = [0, 0, 48], sizes = [2, 16, 16], strides = [1, 1, 1]} : vector<2x16x64xbf16> to vector<2x16x16xbf16>
    %553 = vector.extract_strided_slice %485 {offsets = [0, 0, 48], sizes = [2, 16, 16], strides = [1, 1, 1]} : vector<2x16x64xbf16> to vector<2x16x16xbf16>
    "tpu.trace_start"() <{level = 10 : i32, message = "bld,bmd->blm"}> : () -> ()
    %cst_128 = arith.constant dense<0.000000e+00> : vector<2x16x16xf32>
    %554 = tpu.matmul %552, %553, %cst_128 {dimension_numbers = #tpu.dot_dimension_numbers<[2], [2], [1], [1], [0, 0, 0, 1, 1, 1], [0], [0]>} : vector<2x16x16xbf16>, vector<2x16x16xbf16>, vector<2x16x16xf32> -> vector<2x16x16xf32>
    "tpu.trace_stop"() : () -> ()
    %cst_129 = arith.constant dense<0xFF800000> : vector<2x16xf32>
    %555 = vector.multi_reduction <maximumf>, %554, %cst_129 [2] : vector<2x16x16xf32> to vector<2x16xf32>
    %556 = vector.shape_cast %555 : vector<2x16xf32> to vector<2x16x1xf32>
    %557 = vector.broadcast %556 : vector<2x16x1xf32> to vector<2x16x16xf32>
    %558 = arith.subf %554, %557 : vector<2x16x16xf32>
    %559 = math.exp %558 : vector<2x16x16xf32>
    %cst_130 = arith.constant dense<0.000000e+00> : vector<2x16xf32>
    %560 = vector.multi_reduction <add>, %559, %cst_130 [2] : vector<2x16x16xf32> to vector<2x16xf32>
    %561 = vector.shape_cast %560 : vector<2x16xf32> to vector<2x16x1xf32>
    %562 = tpu.reciprocal %561 {approx = true} : vector<2x16x1xf32> -> vector<2x16x1xf32>
    %563 = vector.broadcast %562 : vector<2x16x1xf32> to vector<2x16x16xf32>
    %564 = arith.mulf %559, %563 : vector<2x16x16xf32>
    %565 = arith.truncf %564 : vector<2x16x16xf32> to vector<2x16x16xbf16>
    %566 = vector.extract_strided_slice %487 {offsets = [0, 0, 48], sizes = [2, 16, 16], strides = [1, 1, 1]} : vector<2x16x64xbf16> to vector<2x16x16xbf16>
    "tpu.trace_start"() <{level = 10 : i32, message = "blm,bmd->bld"}> : () -> ()
    %cst_131 = arith.constant dense<0.000000e+00> : vector<2x16x16xf32>
    %567 = tpu.matmul %565, %566, %cst_131 {dimension_numbers = #tpu.dot_dimension_numbers<[2], [1], [1], [2], [0, 0, 0, 1, 1, 2], [0], [0]>} : vector<2x16x16xbf16>, vector<2x16x16xbf16>, vector<2x16x16xf32> -> vector<2x16x16xf32>
    "tpu.trace_stop"() : () -> ()
    %568 = vector.shape_cast %567 : vector<2x16x16xf32> to vector<32x16xf32>
    %569 = arith.truncf %568 : vector<32x16xf32> to vector<32x16xbf16>
    %c48 = arith.constant 48 : index
    %c512_132 = arith.constant 512 : index
    %570 = vector.load %arg5[%c48, %c512_132] : memref<128x1024xbf16, #tpu.memory_space<vmem>>, vector<16x64xbf16>
    %cst_133 = arith.constant dense<0.000000e+00> : vector<32x64xf32>
    %571 = tpu.matmul %569, %570, %cst_133 {dimension_numbers = #tpu.dot_dimension_numbers<[1], [0], [0], [1], [0, 0, 1, 1], [], []>} : vector<32x16xbf16>, vector<16x64xbf16>, vector<32x64xf32> -> vector<32x64xf32>
    %572 = arith.addf %551, %571 : vector<32x64xf32>
    %573 = arith.addf %465, %572 : vector<32x64xf32>
    %574 = vector.extract_strided_slice %1 {offsets = [6, 0], sizes = [1, 64], strides = [1, 1]} : vector<16x128xf32> to vector<1x64xf32>
    %575 = vector.broadcast %574 : vector<1x64xf32> to vector<32x64xf32>
    %576 = arith.addf %573, %575 : vector<32x64xf32>
    %577 = vector.extract_strided_slice %1 {offsets = [7, 0], sizes = [1, 64], strides = [1, 1]} : vector<16x128xf32> to vector<1x64xf32>
    %578 = vector.extract_strided_slice %1 {offsets = [8, 0], sizes = [1, 64], strides = [1, 1]} : vector<16x128xf32> to vector<1x64xf32>
    %cst_134 = arith.constant dense<0.000000e+00> : vector<32xf32>
    %579 = vector.multi_reduction <add>, %576, %cst_134 [1] : vector<32x64xf32> to vector<32xf32>
    %580 = vector.shape_cast %579 : vector<32xf32> to vector<32x1xf32>
    %cst_135 = arith.constant 6.400000e+01 : f32
    %581 = vector.broadcast %cst_135 : f32 to vector<32x1xf32>
    %582 = arith.divf %580, %581 : vector<32x1xf32>
    %583 = vector.broadcast %582 : vector<32x1xf32> to vector<32x64xf32>
    %584 = arith.subf %576, %583 : vector<32x64xf32>
    %585 = arith.mulf %584, %584 : vector<32x64xf32>
    %cst_136 = arith.constant dense<0.000000e+00> : vector<32xf32>
    %586 = vector.multi_reduction <add>, %585, %cst_136 [1] : vector<32x64xf32> to vector<32xf32>
    %587 = vector.shape_cast %586 : vector<32xf32> to vector<32x1xf32>
    %cst_137 = arith.constant 6.400000e+01 : f32
    %588 = vector.broadcast %cst_137 : f32 to vector<32x1xf32>
    %589 = arith.divf %587, %588 : vector<32x1xf32>
    %590 = vector.broadcast %582 : vector<32x1xf32> to vector<32x64xf32>
    %591 = arith.subf %576, %590 : vector<32x64xf32>
    %cst_138 = arith.constant 9.99999974E-6 : f32
    %592 = vector.broadcast %cst_138 : f32 to vector<32x1xf32>
    %593 = arith.addf %589, %592 : vector<32x1xf32>
    %594 = math.rsqrt %593 : vector<32x1xf32>
    %595 = vector.broadcast %594 : vector<32x1xf32> to vector<32x64xf32>
    %596 = arith.mulf %591, %595 : vector<32x64xf32>
    %597 = vector.broadcast %577 : vector<1x64xf32> to vector<32x64xf32>
    %598 = arith.mulf %596, %597 : vector<32x64xf32>
    %599 = vector.broadcast %578 : vector<1x64xf32> to vector<32x64xf32>
    %600 = arith.addf %598, %599 : vector<32x64xf32>
    %601 = arith.truncf %600 : vector<32x64xf32> to vector<32x64xbf16>
    %c0_139 = arith.constant 0 : index
    %c640 = arith.constant 640 : index
    %602 = vector.load %arg5[%c0_139, %c640] : memref<128x1024xbf16, #tpu.memory_space<vmem>>, vector<64x128xbf16>
    %cst_140 = arith.constant dense<0.000000e+00> : vector<32x128xf32>
    %603 = tpu.matmul %601, %602, %cst_140 {dimension_numbers = #tpu.dot_dimension_numbers<[1], [0], [0], [1], [0, 0, 1, 1], [], []>} : vector<32x64xbf16>, vector<64x128xbf16>, vector<32x128xf32> -> vector<32x128xf32>
    %604 = vector.extract_strided_slice %1 {offsets = [9, 0], sizes = [1, 128], strides = [1, 1]} : vector<16x128xf32> to vector<1x128xf32>
    %605 = vector.broadcast %604 : vector<1x128xf32> to vector<32x128xf32>
    %606 = arith.addf %603, %605 : vector<32x128xf32>
    %cst_141 = arith.constant 5.000000e-01 : f32
    %607 = vector.broadcast %cst_141 : f32 to vector<32x128xf32>
    %608 = arith.mulf %607, %606 : vector<32x128xf32>
    %cst_142 = arith.constant 0.707106769 : f32
    %609 = vector.broadcast %cst_142 : f32 to vector<32x128xf32>
    %610 = arith.mulf %606, %609 : vector<32x128xf32>
    %611 = math.erf %610 : vector<32x128xf32>
    %cst_143 = arith.constant 1.000000e+00 : f32
    %612 = vector.broadcast %cst_143 : f32 to vector<32x128xf32>
    %613 = arith.addf %612, %611 : vector<32x128xf32>
    %614 = arith.mulf %608, %613 : vector<32x128xf32>
    %615 = arith.truncf %614 : vector<32x128xf32> to vector<32x128xbf16>
    %c0_144 = arith.constant 0 : index
    %c768 = arith.constant 768 : index
    %616 = vector.load %arg5[%c0_144, %c768] : memref<128x1024xbf16, #tpu.memory_space<vmem>>, vector<128x64xbf16>
    %cst_145 = arith.constant dense<0.000000e+00> : vector<32x64xf32>
    %617 = tpu.matmul %615, %616, %cst_145 {dimension_numbers = #tpu.dot_dimension_numbers<[1], [0], [0], [1], [0, 0, 1, 1], [], []>} : vector<32x128xbf16>, vector<128x64xbf16>, vector<32x64xf32> -> vector<32x64xf32>
    %618 = vector.extract_strided_slice %1 {offsets = [10, 0], sizes = [1, 64], strides = [1, 1]} : vector<16x128xf32> to vector<1x64xf32>
    %619 = vector.broadcast %618 : vector<1x64xf32> to vector<32x64xf32>
    %620 = arith.addf %617, %619 : vector<32x64xf32>
    %621 = arith.addf %600, %620 : vector<32x64xf32>
    %622 = vector.extract_strided_slice %1 {offsets = [11, 0], sizes = [1, 64], strides = [1, 1]} : vector<16x128xf32> to vector<1x64xf32>
    %623 = vector.extract_strided_slice %1 {offsets = [12, 0], sizes = [1, 64], strides = [1, 1]} : vector<16x128xf32> to vector<1x64xf32>
    %cst_146 = arith.constant dense<0.000000e+00> : vector<32xf32>
    %624 = vector.multi_reduction <add>, %621, %cst_146 [1] : vector<32x64xf32> to vector<32xf32>
    %625 = vector.shape_cast %624 : vector<32xf32> to vector<32x1xf32>
    %cst_147 = arith.constant 6.400000e+01 : f32
    %626 = vector.broadcast %cst_147 : f32 to vector<32x1xf32>
    %627 = arith.divf %625, %626 : vector<32x1xf32>
    %628 = vector.broadcast %627 : vector<32x1xf32> to vector<32x64xf32>
    %629 = arith.subf %621, %628 : vector<32x64xf32>
    %630 = arith.mulf %629, %629 : vector<32x64xf32>
    %cst_148 = arith.constant dense<0.000000e+00> : vector<32xf32>
    %631 = vector.multi_reduction <add>, %630, %cst_148 [1] : vector<32x64xf32> to vector<32xf32>
    %632 = vector.shape_cast %631 : vector<32xf32> to vector<32x1xf32>
    %cst_149 = arith.constant 6.400000e+01 : f32
    %633 = vector.broadcast %cst_149 : f32 to vector<32x1xf32>
    %634 = arith.divf %632, %633 : vector<32x1xf32>
    %635 = vector.broadcast %627 : vector<32x1xf32> to vector<32x64xf32>
    %636 = arith.subf %621, %635 : vector<32x64xf32>
    %cst_150 = arith.constant 9.99999974E-6 : f32
    %637 = vector.broadcast %cst_150 : f32 to vector<32x1xf32>
    %638 = arith.addf %634, %637 : vector<32x1xf32>
    %639 = math.rsqrt %638 : vector<32x1xf32>
    %640 = vector.broadcast %639 : vector<32x1xf32> to vector<32x64xf32>
    %641 = arith.mulf %636, %640 : vector<32x64xf32>
    %642 = vector.broadcast %622 : vector<1x64xf32> to vector<32x64xf32>
    %643 = arith.mulf %641, %642 : vector<32x64xf32>
    %644 = vector.broadcast %623 : vector<1x64xf32> to vector<32x64xf32>
    %645 = arith.addf %643, %644 : vector<32x64xf32>
    %646 = vector.shape_cast %645 : vector<32x64xf32> to vector<2x16x64xf32>
    %cst_151 = arith.constant dense<0.000000e+00> : vector<2x64xf32>
    %647 = vector.multi_reduction <add>, %646, %cst_151 [1] : vector<2x16x64xf32> to vector<2x64xf32>
    %cst_152 = arith.constant 1.600000e+01 : f32
    %648 = vector.broadcast %cst_152 : f32 to vector<2x64xf32>
    %649 = arith.divf %647, %648 : vector<2x64xf32>
    %650 = arith.truncf %649 : vector<2x64xf32> to vector<2x64xbf16>
    %c0_153 = arith.constant 0 : index
    %c896 = arith.constant 896 : index
    %651 = vector.load %arg5[%c0_153, %c896] : memref<128x1024xbf16, #tpu.memory_space<vmem>>, vector<64x64xbf16>
    %cst_154 = arith.constant dense<0.000000e+00> : vector<2x64xf32>
    %652 = tpu.matmul %650, %651, %cst_154 {dimension_numbers = #tpu.dot_dimension_numbers<[1], [0], [0], [1], [0, 0, 1, 1], [], []>} : vector<2x64xbf16>, vector<64x64xbf16>, vector<2x64xf32> -> vector<2x64xf32>
    %653 = vector.extract_strided_slice %1 {offsets = [13, 0], sizes = [1, 64], strides = [1, 1]} : vector<16x128xf32> to vector<1x64xf32>
    %654 = vector.broadcast %653 : vector<1x64xf32> to vector<2x64xf32>
    %655 = arith.addf %652, %654 : vector<2x64xf32>
    %c0_155 = arith.constant 0 : index
    %c0_156 = arith.constant 0 : index
    %656 = vector.load %arg6[%c0_155, %c0_156] : memref<2x64xf32, #tpu.memory_space<vmem>>, vector<2x64xf32>
    tpu.vector_store %arg6[%c0_155, %c0_156], %655 {strides = array<i32>} : memref<2x64xf32, #tpu.memory_space<vmem>>, vector<2x64xf32>,
    return
  }
  func.func @transform_0(%arg0: i32) -> (i32, i32, i32) {
    %c0_i32 = arith.constant 0 : i32
    %c0_i32_0 = arith.constant 0 : i32
    %c0_i32_1 = arith.constant 0 : i32
    %c0_i32_2 = arith.constant 0 : i32
    return %c0_i32, %c0_i32_0, %c0_i32_1 : i32, i32, i32
  }
  func.func @transform_1(%arg0: i32) -> (i32, i32, i32) {
    %c0_i32 = arith.constant 0 : i32
    %c0_i32_0 = arith.constant 0 : i32
    %c0_i32_1 = arith.constant 0 : i32
    %c0_i32_2 = arith.constant 0 : i32
    return %c0_i32, %c0_i32_0, %c0_i32_1 : i32, i32, i32
  }
  func.func @transform_2(%arg0: i32) -> (i32, i32, i32) {
    %c0_i32 = arith.constant 0 : i32
    %c0_i32_0 = arith.constant 0 : i32
    %c0_i32_1 = arith.constant 0 : i32
    %c0_i32_2 = arith.constant 0 : i32
    return %c0_i32, %c0_i32_0, %c0_i32_1 : i32, i32, i32
  }
  func.func @transform_3(%arg0: i32) -> (i32, i32) {
    %c0_i32 = arith.constant 0 : i32
    %c0_i32_0 = arith.constant 0 : i32
    %c0_i32_1 = arith.constant 0 : i32
    return %c0_i32, %c0_i32_0 : i32, i32
  }
  func.func @transform_4(%arg0: i32) -> (i32, i32) {
    %c0_i32 = arith.constant 0 : i32
    %c0_i32_0 = arith.constant 0 : i32
    %c0_i32_1 = arith.constant 0 : i32
    return %c0_i32, %c0_i32_0 : i32, i32
  }
  func.func @transform_5(%arg0: i32) -> (i32, i32) {
    %c0_i32 = arith.constant 0 : i32
    %c0_i32_0 = arith.constant 0 : i32
    %c0_i32_1 = arith.constant 0 : i32
    return %c0_i32, %c0_i32_0 : i32, i32
  }
}

</mosaic_0001>

<bundles_post_ra>
// kernel: tpu_custom_call.1
= control target key start
LH: loop header
LB: loop body
LE: loop exit
PB: predicated region body
PF: predicated region fallthrough
CT: control target
= control target key end

     0   :  { %10 = vsyncpa [#allocation3], 0  ;;  %s6895_s0 = inlined_call_operand.vmem [shape: f32[2,16,4], index: 0, kind: input, shape index: {}]   ;;  %s6896_s1 = inlined_call_operand.vmem [shape: f32[3,6,128], index: 1, kind: input, shape index: {}]   ;;  %s6897_s2 = inlined_call_operand.hbm [shape: bf16[6,128,384], index: 2, kind: input, shape index: {}]   ;;  %s6898_s3 = inlined_call_operand.vmem [shape: f32[16,128], index: 3, kind: input, shape index: {}]   ;;  %s6899_s4 = inlined_call_operand.hbm [shape: bf16[128,1024], index: 4, kind: input, shape index: {}]   ;;  %s6900_s5 = inlined_call_operand.hbm [shape: f32[2,64], index: 5, kind: output, shape index: {}]  }
   0x1   :  { %11 = vsyncpa [#allocation6], 0 }
   0x2   :  { %12 = vsyncpa [#allocation4], 0  ;;  %s6103_s18 = smov [#allocation2]   ;;  %s6031_s22 = scalar_lea.hbm %s6897_s2, 18432 }
   0x3   :  { %s22_s19 = sshll.u32 %s6103_s18, 4  ;;  %p6032_p0 = scmp.ne.s32.totalorder %s6897_s2, %s6031_s22  ;;  %s23_s19 = int_to_ptr.vmem [resolvable:$true] %s22_s19 }
   0x4   :  { %p6035_p1 = scmp.lt.u32.totalorder %s6031_s22, %s6897_s2 }
   0x6   :  { %p6037_p2 = pnand %p6035_p1, %p6032_p0 }
   0x8   :  { %6040 = shalt.err (!%p6037_p2)
}
   0x9   :  { %s6041_s27 = scalar_lea.vmem %s23_s19, 18432  ;;  %p6046_p4 = scmp.lt.s32.totalorder %s23_s19, %s23_s19 }
   0xa   :  { %p6042_p3 = scmp.ne.s32.totalorder %s23_s19, %s6041_s27  ;;  %p6047_p5 = scmp.lt.s32.totalorder %s6041_s27, %s6041_s27 }
   0xc   :  { %p6048_p6 = por %p6047_p5, %p6046_p4 }
   0xe   :  { %p6049_p7 = pnand %p6048_p6, %p6042_p3 }
  0x10   :  { %6052 = shalt.err (!%p6049_p7)
}
  0x11   :  { %s6104_s28 = smov 192   ;;  %s6105_s29 = smov 12  }
  0x12   :  { %28 = dma.hbm_to_vmem [thread:$0]  %s6897_s2, 18432, %s23_s19, [#allocation3], %s6104_s28, %s6104_s28, %s6105_s29  }
  0x13   :  { %s6106_s7 = smov [#allocation5]   ;;  %s6053_s11 = scalar_lea.hbm %s6899_s4, 8192 }
  0x14   :  { %s36_s8 = sshll.u32 %s6106_s7, 4  ;;  %p6054_p8 = scmp.ne.s32.totalorder %s6899_s4, %s6053_s11  ;;  %s37_s8 = int_to_ptr.vmem [resolvable:$true] %s36_s8 }
  0x15   :  { %p6057_p9 = scmp.lt.u32.totalorder %s6053_s11, %s6899_s4 }
  0x17   :  { %p6059_p10 = pnand %p6057_p9, %p6054_p8 }
  0x19   :  { %6062 = shalt.err (!%p6059_p10)
}
  0x1a   :  { %s6063_s16 = scalar_lea.vmem %s37_s8, 8192  ;;  %p6068_p12 = scmp.lt.s32.totalorder %s37_s8, %s37_s8 }
  0x1b   :  { %p6064_p11 = scmp.ne.s32.totalorder %s37_s8, %s6063_s16  ;;  %p6069_p13 = scmp.lt.s32.totalorder %s6063_s16, %s6063_s16 }
  0x1d   :  { %p6070_p0 = por %p6069_p13, %p6068_p12 }
  0x1f   :  { %p6071_p1 = pnand %p6070_p0, %p6064_p11 }
  0x21   :  { %6074 = shalt.err (!%p6071_p1)
}
  0x22   :  { %s6107_s2 = smov 512   ;;  %s6108_s17 = smov 32  }
  0x23   :  { %42 = dma.hbm_to_vmem [thread:$0]  %s6899_s4, 8192, %s37_s8, [#allocation6], %s6107_s2, %s6107_s2, %s6108_s17  }
  0x24   :  { %6097 = dma.done.wait [#allocation3], 18432  }
  0x25   :  { %6098 = vsyncadd [#allocation3], 4294948864 }
  0x26   :  { %6099 = dma.done.wait [#allocation6], 8192  }
  0x27   :  { %6100 = vsyncadd [#allocation6], 4294959104  ;;  %v6109_v0 = vmov 1   ;;  %v6110_v1 = vmov 0   ;;  %v55_v2 = vld [vmem:[%s6895_s0] sm:$0xff]  ;;  %v56_v3 = vld [vmem:[%s6895_s0 + $0x8] sm:$0xff]  ;;  %v59_v39 = vlaneseq }
  0x28   :  { %5667 = vset.pattern.permute.xlu1 %v6109_v0  ;;  %5666 = vset.pattern.permute.xlu0 %v6110_v1  ;;  %v57_v4 = vld [vmem:[%s6895_s0 + $0x10] sm:$0xff]  ;;  %v6111_v5 = vmov 2   ;;  %v58_v6 = vld [vmem:[%s6895_s0 + $0x18] sm:$0xff]  ;;  %v6112_v7 = vmov 3   ;;  %v5680_v10 = vld [vmem:[#allocation2 + $0x8] ss:$12 sps:$4 sm:$0xff]  }
  0x29   :  { %507 = vmatprep.mubr.bf16.mxu0 %v6110_v1  ;;  %92 = vperm.xlu1 %5667, %v55_v2   ;;  %v5677_v8 = vld [vmem:[#allocation2 + $0x4] ss:$12 sps:$4 sm:$0xff]   ;;  %v5679_v9 = vld [vmem:[#allocation2] ss:$12 sps:$4 sm:$0xff]   ;;  %v5681_v11 = vld [vmem:[#allocation2 + $0x1c] ss:$12 sps:$4 sm:$0xff]  }
  0x2a   :  { %64 = vperm.xlu0 %5666, %v55_v2   ;;  %475 = vmatprep.subr.bf16.mxu0 %v5677_v8  ;;  %v5683_v12 = vld [vmem:[#allocation2 + $0x18] ss:$12 sps:$4 sm:$0xff]   ;;  %v5684_v13 = vld [vmem:[#allocation2 + $0x20] ss:$12 sps:$4 sm:$0xff]   ;;  %v5687_v15 = vld [vmem:[#allocation2 + $0x30] ss:$12 sps:$4 sm:$0xff]  }
  0x2b   :  { %476 = vmatpush1.bf16.msra.mxu0 %v5679_v9  ;;  %5298 = vmatprep.subr.bf16.mxu1 %v5680_v10  ;;  %v5685_v14 = vld [vmem:[#allocation2 + $0x34] ss:$12 sps:$4 sm:$0xff]   ;;  %v5688_v16 = vld [vmem:[#allocation2 + $0x38] ss:$12 sps:$4 sm:$0xff]   ;;  %v5692_v19 = vld [vmem:[#allocation2 + $0x50] ss:$12 sps:$4 sm:$0xff]  }
  0x2c   :  { %5299 = vmatpush3.bf16.msra.mxu1 %v5680_v10  ;;  %477 = vmatprep.subr.bf16.mxu0 %v5681_v11  ;;  %v5689_v17 = vld [vmem:[#allocation2 + $0x4c] ss:$12 sps:$4 sm:$0xff]   ;;  %v5691_v18 = vld [vmem:[#allocation2 + $0x48] ss:$12 sps:$4 sm:$0xff]   ;;  %v5693_v20 = vld [vmem:[#allocation2 + $0x64] ss:$12 sps:$4 sm:$0xff]  }
  0x2d   :  { %96 = vperm.xlu1 %5667, %v56_v3   ;;  %5300 = vmatprep.subr.bf16.mxu1 %v5684_v13  ;;  %v5696_v21 = vld [vmem:[#allocation2 + $0x68] ss:$12 sps:$4 sm:$0xff]   ;;  %v5695_v22 = vld [vmem:[#allocation2 + $0x60] ss:$12 sps:$4 sm:$0xff]   ;;  %v5699_v25 = vld [vmem:[#allocation2 + $0x78] ss:$12 sps:$4 sm:$0xff]  }
  0x2e   :  { %69 = vperm.xlu0 %5666, %v56_v3   ;;  %v5697_v23 = vld [vmem:[#allocation2 + $0x7c] ss:$12 sps:$4 sm:$0xff]   ;;  %v5700_v24 = vld [vmem:[#allocation2 + $0x80] ss:$12 sps:$4 sm:$0xff]   ;;  %v5704_v27 = vld [vmem:[#allocation2 + $0x98] ss:$12 sps:$4 sm:$0xff]  }
  0x2f   :  { %478 = vmatpush1.bf16.msra.mxu0 %v5683_v12  ;;  %v5701_v26 = vld [vmem:[#allocation2 + $0x94] ss:$12 sps:$4 sm:$0xff]   ;;  %v5703_v28 = vld [vmem:[#allocation2 + $0x90] ss:$12 sps:$4 sm:$0xff]   ;;  %v5705_v29 = vld [vmem:[#allocation2 + $0xac] ss:$12 sps:$4 sm:$0xff]  }
  0x30   :  { %5301 = vmatpush3.bf16.msra.mxu1 %v5684_v13  ;;  %479 = vmatprep.subr.bf16.mxu0 %v5685_v14  ;;  %v5708_v30 = vld [vmem:[#allocation2 + $0xb0] ss:$12 sps:$4 sm:$0xff]   ;;  %v5707_v31 = vld [vmem:[#allocation2 + $0xa8] ss:$12 sps:$4 sm:$0xff]   ;;  %v60_v42 = vand.u32 127, %v59_v39  ;;  %vm583_vm4 = vcmask 1040384  }
  0x31   :  { %100 = vperm.xlu1 %5667, %v57_v4   ;;  %5302 = vmatprep.subr.bf16.mxu1 %v5688_v16  ;;  %vm603_vm6 = vcmask 1046528   ;;  %vm2951_vm14 = vcmask 523264   ;;  %vm6114_vm15 = vmmov 0   ;;  %s6115_s14 = smov 112   ;;  %s6116_s15 = smov 96  }
  0x32   :  { %74 = vperm.xlu0 %5666, %v57_v4   ;;  %vm90_vm0 = vcmp.eq.s32.totalorder %v60_v42, 1  ;;  %vm61_vm1 = vcmp.eq.s32.totalorder %v60_v42, 0  ;;  %vm115_vm2 = vcmp.eq.s32.totalorder %v60_v42, 2  ;;  %vm140_vm3 = vcmp.eq.s32.totalorder %v60_v42, 3  ;;  %s6117_s16 = smov 80  }
  0x33   :  { %480 = vmatpush1.bf16.msra.mxu0 %v5687_v15 }
  0x34   :  { %5303 = vmatpush3.bf16.msra.mxu1 %v5688_v16  ;;  %481 = vmatprep.subr.bf16.mxu0 %v5689_v17 }
  0x35   :  { %5669 = vset.pattern.permute.xlu1 %v6111_v5  ;;  %5304 = vmatprep.subr.bf16.mxu1 %v5692_v19 }
  0x36   :  { %5668 = vset.pattern.permute.xlu0 %v6111_v5  ;;  %121 = vperm.xlu1 %5669, %v56_v3  }
  0x37   :  { %117 = vperm.xlu0 %5668, %v55_v2   ;;  %482 = vmatpush1.bf16.msra.mxu0 %v5691_v18 }
  0x38   :  { %5305 = vmatpush3.bf16.msra.mxu1 %v5692_v19  ;;  %483 = vmatprep.subr.bf16.mxu0 %v5693_v20 }
  0x39   :  { %5306 = vmatprep.subr.bf16.mxu1 %v5696_v21 }
  0x3a   :  { %5670 = vset.pattern.permute.xlu1 %v6110_v1 }
  0x3b   :  { %5671 = vset.pattern.permute.xlu0 %v6109_v0  ;;  %79 = vperm.xlu1 %5670, %v58_v6  }
  0x3c   :  { %104 = vperm.xlu0 %5671, %v58_v6   ;;  %484 = vmatpush1.bf16.msra.mxu0 %v5695_v22 }
  0x3d   :  { %5307 = vmatpush3.bf16.msra.mxu1 %v5696_v21  ;;  %485 = vmatprep.subr.bf16.mxu0 %v5697_v23 }
  0x3e   :  { %5308 = vmatprep.subr.bf16.mxu1 %v5700_v24 }
  0x3f   :  { %5672 = vset.pattern.permute.xlu1 %v6111_v5 }
  0x40   :  { %5674 = vset.pattern.permute.xlu0 %v6112_v7  ;;  %125 = vperm.xlu1 %5672, %v57_v4  }
  0x41   :  { %146 = vperm.xlu0 %5674, %v56_v3   ;;  %486 = vmatpush1.bf16.msra.mxu0 %v5699_v25 }
  0x42   :  { %5309 = vmatpush3.bf16.msra.mxu1 %v5700_v24  ;;  %487 = vmatprep.subr.bf16.mxu0 %v5701_v26 }
  0x43   :  { %5310 = vmatprep.subr.bf16.mxu1 %v5704_v27 }
  0x44   :  { %5673 = vset.pattern.permute.xlu1 %v6112_v7 }
  0x45   :  { %154 = vperm.xlu0 %5674, %v58_v6   ;;  %142 = vperm.xlu1 %5673, %v55_v2  }
  0x46   :  { %488 = vmatpush1.bf16.msra.mxu0 %v5703_v28  ;;  %5311 = vmatpush3.bf16.msra.mxu1 %v5704_v27 }
  0x47   :  { %489 = vmatprep.subr.bf16.mxu0 %v5705_v29  ;;  %5312 = vmatprep.subr.bf16.mxu1 %v5708_v30 }
  0x49   :  { %5675 = vset.pattern.permute.xlu1 %v6111_v5 }
  0x4a   :  { %129 = vperm.xlu1 %5675, %v58_v6   ;;  %490 = vmatpush1.bf16.msra.mxu0 %v5707_v31 }
  0x4b   :  { %5313 = vmatpush3.bf16.msra.mxu1 %v5708_v30 }
  0x4e   :  { %5676 = vset.pattern.permute.xlu1 %v6112_v7 }
  0x4f   :  { %150 = vperm.xlu1 %5676, %v57_v4  }
  0xa8   :  { %v93_v32 = vpop.permute.xlu1 %92 }
  0xa9   :  { %v65_v33 = vpop.permute.xlu0 %64  ;;  %v107_v46 = vsel %vm90_vm0, %v93_v32, 0.0 }
  0xaa   :  { %v82_v47 = vsel %vm61_vm1, %v65_v33, 0.0 }
  0xab   :  { %v111_v51 = vadd.f32 %v107_v46, %v82_v47  ;;  %v6226_v47 = vld [vmem:[%s6896_s1] sm:$0x3f] }
  0xac   :  { %v97_v34 = vpop.permute.xlu1 %96 }
  0xad   :  { %v70_v35 = vpop.permute.xlu0 %69  ;;  %v108_v48 = vsel %vm90_vm0, %v97_v34, 0.0 }
  0xae   :  { %v83_v49 = vsel %vm61_vm1, %v70_v35, 0.0 }
  0xaf   :  { %v112_v60 = vadd.f32 %v108_v48, %v83_v49  ;;  %v6231_v48 = vld [vmem:[%s6896_s1 + $0x8] sm:$0x3f] }
  0xb0   :  { %v101_v36 = vpop.permute.xlu1 %100 }
  0xb1   :  { %v75_v38 = vpop.permute.xlu0 %74  ;;  %v109_v52 = vsel %vm90_vm0, %v101_v36, 0.0 }
  0xb2   :  { %v84_v53 = vsel %vm61_vm1, %v75_v38, 0.0 }
  0xb3   :  { %v113_v2 = vadd.f32 %v109_v52, %v84_v53 }
  0xb5   :  { %v122_v37 = vpop.permute.xlu1 %121 }
  0xb6   :  { %v118_v41 = vpop.permute.xlu0 %117  ;;  %v133_v55 = vsel %vm115_vm2, %v122_v37, 0.0 }
  0xb7   :  { %v132_v50 = vsel %vm115_vm2, %v118_v41, 0.0  ;;  %v137_v3 = vadd.f32 %v133_v55, %v112_v60 }
  0xb8   :  { %v136_v61 = vadd.f32 %v132_v50, %v111_v51 }
  0xba   :  { %v80_v40 = vpop.permute.xlu1 %79 }
  0xbb   :  { %v105_v44 = vpop.permute.xlu0 %104  ;;  %v85_v56 = vsel %vm61_vm1, %v80_v40, 0.0  ;;  %vm4836_vm1 = vcmask 1041409  }
  0xbc   :  { %v110_v57 = vsel %vm90_vm0, %v105_v44, 0.0  ;;  %vm3183_vm0 = vcmask 130048  }
  0xbd   :  { %v114_v4 = vadd.f32 %v110_v57, %v85_v56 }
  0xbf   :  { %v126_v43 = vpop.permute.xlu1 %125 }
  0xc0   :  { %v147_v54 = vpop.permute.xlu0 %146  ;;  %v134_v62 = vsel %vm115_vm2, %v126_v43, 0.0 }
  0xc1   :  { %v158_v63 = vsel %vm140_vm3, %v147_v54, 0.0  ;;  %v138_v7 = vadd.f32 %v134_v62, %v113_v2 }
  0xc2   :  { %v6201_v8 = vadd.f32 %v158_v63, %v137_v3 }
  0xc4   :  { %v143_v45 = vpop.permute.xlu1 %142  ;;  %v155_v6 = vpop.permute.xlu0 %154 }
  0xc5   :  { %v157_v58 = vsel %vm140_vm3, %v143_v45, 0.0  ;;  %v160_v11 = vsel %vm140_vm3, %v155_v6, 0.0  ;;  %v6218_v45 = vshrl.u32 %v59_v39, 7 }
  0xc6   :  { %v6199_v5 = vadd.f32 %v157_v58, %v136_v61 }
  0xc7   :  { %v6221_v46 = vsub.s32 0, %v6218_v45 }
  0xc8   :  { %v242_v13 = vadd.f32 %v6201_v8, %v6199_v5 }
  0xc9   :  { %v130_v59 = vpop.permute.xlu1 %129  ;;  %v280_v49 = vrot.slane %v6226_v47, %v6221_v46  ;;  %v288_v39 = vrot.slane %v6231_v48, %v6221_v46 }
  0xca   :  { %v135_v0 = vsel %vm115_vm2, %v130_v59, 0.0  ;;  %vm4906_vm2 = vcmask 517120  }
  0xcb   :  { %v139_v9 = vadd.f32 %v135_v0, %v114_v4 }
  0xcd   :  { %v6209_v15 = vadd.f32 %v160_v11, %v139_v9 }
  0xce   :  { %v151_v10 = vpop.permute.xlu1 %150 }
  0xcf   :  { %v159_v12 = vsel %vm140_vm3, %v151_v10, 0.0 }
  0xd0   :  { %v6207_v14 = vadd.f32 %v159_v12, %v138_v7 }
  0xd2   :  { %v243_v16 = vadd.f32 %v242_v13, %v6207_v14 }
  0xd4   :  { %v244_v17 = vadd.f32 %v243_v16, %v6209_v15 }
  0xd6   :  { %v245_v18 = vrot.slane %v244_v17, 4 }
  0xd8   :  { %v246_v19 = vadd.f32 %v245_v18, %v244_v17 }
  0xda   :  { %v247_v20 = vrot.slane %v246_v19, 2 }
  0xdc   :  { %v248_v21 = vadd.f32 %v247_v20, %v246_v19 }
  0xde   :  { %v249_v22 = vrot.slane %v248_v21, 1 }
  0xe0   :  { %v250_v23 = vadd.f32 %v249_v22, %v248_v21 }
  0xe2   :  { %v252_v24 = vmul.f32 0.03125, %v250_v23 }
  0xe4   :  { %v253_v25 = vsub.f32 %v6199_v5, %v252_v24  ;;  %v254_v26 = vsub.f32 %v6201_v8, %v252_v24  ;;  %v255_v27 = vsub.f32 %v6207_v14, %v252_v24  ;;  %v256_v28 = vsub.f32 %v6209_v15, %v252_v24 }
  0xe6   :  { %v257_v29 = vmul.f32 %v253_v25, %v253_v25  ;;  %v258_v30 = vmul.f32 %v254_v26, %v254_v26  ;;  %v259_v31 = vmul.f32 %v255_v27, %v255_v27  ;;  %v260_v33 = vmul.f32 %v256_v28, %v256_v28 }
  0xe8   :  { %v261_v32 = vadd.f32 %v258_v30, %v257_v29  ;;  %v5715_v29 = vld [vmem:[#allocation2 + $0xdc] ss:$12 sps:$4 sm:$0xff]   ;;  %v5713_v30 = vld [vmem:[#allocation2 + $0xd8] ss:$12 sps:$4 sm:$0xff]  }
  0xea   :  { %v262_v34 = vadd.f32 %v261_v32, %v259_v31  ;;  %v5716_v31 = vld [vmem:[#allocation2 + $0xe0] ss:$12 sps:$4 sm:$0xff]  }
  0xeb   :  { %v5719_v32 = vld [vmem:[#allocation2 + $0xf4] ss:$12 sps:$4 sm:$0xff]  }
  0xec   :  { %v263_v35 = vadd.f32 %v262_v34, %v260_v33  ;;  %v5717_v33 = vld [vmem:[#allocation2 + $0xf0] ss:$12 sps:$4 sm:$0xff]   ;;  %v5720_v34 = vld [vmem:[#allocation2 + $0xf8] ss:$12 sps:$4 sm:$0xff]  }
  0xee   :  { %v264_v36 = vrot.slane %v263_v35, 4 }
  0xf0   :  { %v265_v37 = vadd.f32 %v264_v36, %v263_v35  ;;  %v5723_v35 = vld [vmem:[#allocation2 + $0x10c] ss:$12 sps:$4 sm:$0xff]   ;;  %v5724_v36 = vld [vmem:[#allocation2 + $0x110] ss:$12 sps:$4 sm:$0xff]  }
  0xf2   :  { %v266_v38 = vrot.slane %v265_v37, 2 }
  0xf4   :  { %v267_v40 = vadd.f32 %v266_v38, %v265_v37  ;;  %v5721_v37 = vld [vmem:[#allocation2 + $0x108] ss:$12 sps:$4 sm:$0xff]   ;;  %v5727_v38 = vld [vmem:[#allocation2 + $0x124] ss:$12 sps:$4 sm:$0xff]  }
  0xf6   :  { %v268_v41 = vrot.slane %v267_v40, 1 }
  0xf8   :  { %v269_v42 = vadd.f32 %v268_v41, %v267_v40  ;;  %v5728_v40 = vld [vmem:[#allocation2 + $0x128] ss:$12 sps:$4 sm:$0xff]   ;;  %v5725_v41 = vld [vmem:[#allocation2 + $0x120] ss:$12 sps:$4 sm:$0xff]  }
  0xfa   :  { %v270_v43 = vmul.f32 0.03125, %v269_v42  ;;  %v5731_v42 = vld [vmem:[#allocation2 + $0x13c] ss:$12 sps:$4 sm:$0xff]  }
  0xfc   :  { %v271_v44 = vadd.f32 1e-05, %v270_v43  ;;  %v5732_v43 = vld [vmem:[#allocation2 + $0x140] ss:$12 sps:$4 sm:$0xff]  }
  0xfe   :  { %5869 = vrsqrt.f32 %v271_v44  ;;  %v5729_v44 = vld [vmem:[#allocation2 + $0x138] ss:$12 sps:$4 sm:$0xff]  }
 0x108   :  { %v5870_v50 = vpop.eup %5869 }
 0x109   :  { %v275_v51 = vmul.f32 %v5870_v50, %v255_v27  ;;  %v273_v52 = vmul.f32 %v5870_v50, %v253_v25  ;;  %v274_v53 = vmul.f32 %v5870_v50, %v254_v26  ;;  %v276_v54 = vmul.f32 %v5870_v50, %v256_v28  ;;  %v5711_v26 = vld [vmem:[#allocation2 + $0xc4] ss:$12 sps:$4 sm:$0xff]   ;;  %v5709_v27 = vld [vmem:[#allocation2 + $0xc0] ss:$12 sps:$4 sm:$0xff]   ;;  %v5712_v28 = vld [vmem:[#allocation2 + $0xc8] ss:$12 sps:$4 sm:$0xff]  }
 0x10a   :  { %874 = vmatprep.subr.bf16.mxu0 %v5711_v26  ;;  %5318 = vmatprep.subr.bf16.mxu1 %v5712_v28  ;;  %v5736_v50 = vld [vmem:[#allocation2 + $0x158] ss:$12 sps:$4 sm:$0xff]  }
 0x10b   :  { %v283_v55 = vmul.f32 %v280_v49, %v275_v51  ;;  %v281_v56 = vmul.f32 %v280_v49, %v273_v52  ;;  %v282_v57 = vmul.f32 %v280_v49, %v274_v53  ;;  %v284_v58 = vmul.f32 %v280_v49, %v276_v54  ;;  %v5735_v49 = vld [vmem:[#allocation2 + $0x154] ss:$12 sps:$4 sm:$0xff]   ;;  %v5739_v51 = vld [vmem:[#allocation2 + $0x16c] ss:$12 sps:$4 sm:$0xff]   ;;  %v5740_v52 = vld [vmem:[#allocation2 + $0x170] ss:$12 sps:$4 sm:$0xff]  }
 0x10c   :  { %v5737_v53 = vld [vmem:[#allocation2 + $0x168] ss:$12 sps:$4 sm:$0xff]   ;;  %v6240_v54 = vadd.s32 8, %v6218_v45 }
 0x10d   :  { %v289_v59 = vadd.f32 %v288_v39, %v281_v56  ;;  %v290_v60 = vadd.f32 %v288_v39, %v282_v57  ;;  %v291_v61 = vadd.f32 %v288_v39, %v283_v55  ;;  %v292_v62 = vadd.f32 %v288_v39, %v284_v58  ;;  %v5733_v39 = vld [vmem:[#allocation2 + $0x150] ss:$12 sps:$4 sm:$0xff]  }
 0x10e   :  { %v6243_v55 = vadd.s32 16, %v6218_v45  ;;  %v6246_v56 = vadd.s32 24, %v6218_v45  ;;  %v181_v57 = vand.u32 15, %v6240_v54 }
 0x10f   :  { %v297_v63 = vmul.f32 0.70710677, %v289_v59  ;;  %v298_v0 = vmul.f32 0.70710677, %v290_v60  ;;  %v299_v2 = vmul.f32 0.70710677, %v291_v61 }
 0x110   :  { %v300_v3 = vmul.f32 0.70710677, %v292_v62  ;;  %v293_v7 = vmul.f32 0.5, %v289_v59  ;;  %v294_v11 = vmul.f32 0.5, %v290_v60  ;;  %v295_v17 = vmul.f32 0.5, %v291_v61 }
 0x111   :  { %5871 = verf.f32 %v297_v63  ;;  %v296_v20 = vmul.f32 0.5, %v292_v62  ;;  %v188_v62 = vand.u32 15, %v6243_v55  ;;  %v195_v63 = vand.u32 15, %v6246_v56 }
 0x112   :  { %5873 = verf.f32 %v298_v0  ;;  %vm231_vm5 = vcmp.ne.s32.totalorder %v181_v57, 15 }
 0x113   :  { %5875 = verf.f32 %v299_v2  ;;  %vm220_vm7 = vcmp.ne.s32.totalorder %v188_v62, 0  ;;  %vm233_vm8 = vcmp.ne.s32.totalorder %v195_v63, 15 }
 0x114   :  { %5877 = verf.f32 %v300_v3 }
 0x11b   :  { %v5872_v4 = vpop.eup %5871 }
 0x11c   :  { %v5874_v6 = vpop.eup %5873  ;;  %v305_v9 = vadd.f32 1.0, %v5872_v4 }
 0x11d   :  { %v5876_v10 = vpop.eup %5875  ;;  %v306_v12 = vadd.f32 1.0, %v5874_v6 }
 0x11e   :  { %v5878_v13 = vpop.eup %5877  ;;  %v309_v16 = vmul.f32 %v305_v9, %v293_v7  ;;  %v307_v18 = vadd.f32 1.0, %v5876_v10  ;;  %v174_v9 = vand.u32 15, %v6218_v45 }
 0x11f   :  { %v310_v19 = vmul.f32 %v306_v12, %v294_v11  ;;  %v308_v21 = vadd.f32 1.0, %v5878_v13 }
 0x120   :  { %v311_v22 = vmul.f32 %v307_v18, %v295_v17  ;;  %v6113_v17 = vmov 0.0   ;;  %vm218_vm9 = vcmp.ne.s32.totalorder %v174_v9, 0 }
 0x121   :  { %v313_v23 = vpack.c.bf16 %v310_v19, %v309_v16  ;;  %v312_v24 = vmul.f32 %v308_v21, %v296_v20  ;;  %v6254_v18 = vsel %vm231_vm5, 1.0, %v6113_v17 }
 0x123   :  { %508 = vmatmul.mubr.bf16.vlgmr.msra.gmra.mrb[0].mxu0 %v313_v23  ;;  %5314 = vmatprep.mubr.bf16.mxu1 %v313_v23  ;;  %v314_v25 = vpack.c.bf16 %v312_v24, %v311_v22 }
 0x124   :  { %517 = vmatprep.mubr.bf16.mxu0 %v6110_v1  ;;  %875 = vmatpush1.bf16.msra.mxu0 %v5709_v27  ;;  %v6262_v27 = vsel %vm220_vm7, 1.0, %v6113_v17 }
 0x125   :  { %5315 = vmatmul.mubr.bf16.vlgmr.msra.gmra.mrb[0].mxu1 %v314_v25  ;;  %876 = vmatprep.subr.bf16.mxu0 %v5715_v29  ;;  %v6267_v29 = vld [vmem:[%s6896_s1 + $0x10] sm:$0x3f] }
 0x126   :  { %5319 = vmatpush3.bf16.msra.mxu1 %v5712_v28 }
 0x127   :  { %5320 = vmatprep.subr.bf16.mxu1 %v5716_v31 }
 0x128   :  { %877 = vmatpush1.bf16.msra.mxu0 %v5713_v30 }
 0x129   :  { %878 = vmatprep.subr.bf16.mxu0 %v5719_v32 }
 0x12a   :  { %5321 = vmatpush3.bf16.msra.mxu1 %v5716_v31  ;;  %v6270_v31 = vsel %vm233_vm8, 1.0, %v6113_v17 }
 0x12b   :  { %518 = vmatmul.mubr.bf16.gmra.mrb[4].mxu0 %v314_v25  ;;  %5322 = vmatprep.subr.bf16.mxu1 %v5720_v34 }
 0x12c   :  { %906 = vmatprep.mubr.bf16.mxu0 %v6110_v1  ;;  %879 = vmatpush1.bf16.msra.mxu0 %v5717_v33 }
 0x12d   :  { %880 = vmatprep.subr.bf16.mxu0 %v5723_v35 }
 0x12e   :  { %5323 = vmatpush3.bf16.msra.mxu1 %v5720_v34  ;;  %v6274_v34 = vsel %vm218_vm9, 1.0, %v6113_v17 }
 0x12f   :  { %5324 = vmatprep.subr.bf16.mxu1 %v5724_v36 }
 0x130   :  { %881 = vmatpush1.bf16.msra.mxu0 %v5721_v37 }
 0x131   :  { %882 = vmatprep.subr.bf16.mxu0 %v5727_v38  ;;  %v632_v38 = vrot.slane %v6267_v29, %v6221_v46 }
 0x132   :  { %5325 = vmatpush3.bf16.msra.mxu1 %v5724_v36 }
 0x133   :  { %5326 = vmatprep.subr.bf16.mxu1 %v5728_v40 }
 0x134   :  { %883 = vmatpush1.bf16.msra.mxu0 %v5725_v41 }
 0x135   :  { %884 = vmatprep.subr.bf16.mxu0 %v5731_v42 }
 0x136   :  { %5327 = vmatpush3.bf16.msra.mxu1 %v5728_v40 }
 0x137   :  { %5328 = vmatprep.subr.bf16.mxu1 %v5732_v43 }
 0x138   :  { %885 = vmatpush1.bf16.msra.mxu0 %v5729_v44 }
 0x139   :  { %886 = vmatprep.subr.bf16.mxu0 %v5735_v49 }
 0x13a   :  { %5329 = vmatpush3.bf16.msra.mxu1 %v5732_v43 }
 0x13b   :  { %5330 = vmatprep.subr.bf16.mxu1 %v5736_v50 }
 0x13c   :  { %887 = vmatpush1.bf16.msra.mxu0 %v5733_v39 }
 0x13d   :  { %888 = vmatprep.subr.bf16.mxu0 %v5739_v51 }
 0x13e   :  { %5331 = vmatpush3.bf16.msra.mxu1 %v5736_v50 }
 0x13f   :  { %5332 = vmatprep.subr.bf16.mxu1 %v5740_v52 }
 0x140   :  { %889 = vmatpush1.bf16.msra.mxu0 %v5737_v53 }
 0x142   :  { %5333 = vmatpush3.bf16.msra.mxu1 %v5740_v52 }
 0x1f6   :  { %v509_v58 = vpop.f32.mrb[0].mxu0 }
 0x1f7   :  { %v511_v59 = vpop.f32.mrb[1].mxu0  ;;  %v584_v0 = vrot.slane %v509_v58, 7 }
 0x1f8   :  { %v5316_v60 = vpop.f32.mrb[0].mxu1  ;;  %v513_v61 = vpop.f32.mrb[2].mxu0 }
 0x1f9   :  { %v585_v2 = vrot.slane %v513_v61, 7  ;;  %v562_v3 = vpop.f32.mrb[1].mxu1  ;;  %v515_v4 = vpop.f32.mrb[3].mxu0  ;;  %v607_v10 = vrot.slane %v5316_v60, 1 }
 0x1fa   :  { %v604_v6 = vrot.slane %v562_v3, 1  ;;  %v5317_v7 = vpop.f32.mrb[2].mxu1 }
 0x1fb   :  { %v586_v11 = vsel %vm583_vm4, %v584_v0, %v585_v2  ;;  %v609_v12 = vrot.slane %v5317_v7, 1  ;;  %v565_v13 = vpop.f32.mrb[3].mxu1 }
 0x1fc   :  { %v622_v16 = vadd.f32 %v586_v11, %v515_v4  ;;  %v605_v19 = vrot.slane %v565_v13, 1 }
 0x1fd   :  { %v616_v20 = vsel %vm603_vm6, %v609_v12, %v604_v6  ;;  %v610_v21 = vsel %vm603_vm6, %v607_v10, %v609_v12 }
 0x1fe   :  { %v606_v22 = vsel %vm603_vm6, %v604_v6, %v605_v19  ;;  %v608_v23 = vsel %vm603_vm6, %v605_v19, %v607_v10  ;;  %v519_v24 = vpop.f32.mrb[4].mxu0  ;;  %v620_v44 = vmul.f32 %v6270_v31, %v616_v20 }
 0x1ff   :  { %v618_v25 = vmul.f32 %v6254_v18, %v608_v23  ;;  %v587_v26 = vrot.slane %v519_v24, 7  ;;  %v521_v28 = vpop.f32.mrb[5].mxu0 }
 0x200   :  { %v523_v30 = vpop.f32.mrb[6].mxu0 }
 0x201   :  { %v626_v32 = vadd.f32 %v622_v16, %v618_v25  ;;  %v588_v33 = vsel %vm583_vm4, %v585_v2, %v587_v26  ;;  %v578_v35 = vrot.slane %v523_v30, 7  ;;  %v525_v36 = vpop.f32.mrb[7].mxu0 }
 0x202   :  { %v597_v37 = vmul.f32 %v6262_v27, %v588_v33 }
 0x203   :  { %v594_v40 = vsel %vm583_vm4, %v578_v35, %v584_v0  ;;  %v589_v41 = vsel %vm583_vm4, %v587_v26, %v578_v35  ;;  %v634_v52 = vadd.f32 %v632_v38, %v626_v32 }
 0x204   :  { %v623_v42 = vadd.f32 %v597_v37, %v521_v28  ;;  %v595_v43 = vmul.f32 %v6274_v34, %v594_v40  ;;  %v624_v49 = vadd.f32 %v589_v41, %v525_v36  ;;  %v6304_v36 = vsub.s32 1, %v6218_v45 }
 0x205   :  { %v6284_v60 = vadd.f32 %v634_v52, %v6201_v8 }
 0x206   :  { %v627_v50 = vadd.f32 %v623_v42, %v610_v21  ;;  %v621_v39 = vadd.f32 %v595_v43, %v511_v59  ;;  %v628_v51 = vadd.f32 %v624_v49, %v620_v44  ;;  %v678_v37 = vrot.slane %v6226_v47, %v6304_v36 }
 0x207   :  { %v686_v40 = vrot.slane %v6231_v48, %v6304_v36 }
 0x208   :  { %v625_v53 = vadd.f32 %v621_v39, %v606_v22  ;;  %v635_v57 = vadd.f32 %v632_v38, %v627_v50  ;;  %v636_v62 = vadd.f32 %v632_v38, %v628_v51 }
 0x20a   :  { %v633_v58 = vadd.f32 %v632_v38, %v625_v53  ;;  %v6290_v63 = vadd.f32 %v635_v57, %v6207_v14  ;;  %v6295_v59 = vadd.f32 %v636_v62, %v6209_v15 }
 0x20c   :  { %v6287_v61 = vadd.f32 %v633_v58, %v6199_v5 }
 0x20e   :  { %v641_v0 = vadd.f32 %v6284_v60, %v6287_v61 }
 0x210   :  { %v642_v2 = vadd.f32 %v641_v0, %v6290_v63 }
 0x212   :  { %v643_v3 = vadd.f32 %v642_v2, %v6295_v59 }
 0x214   :  { %v644_v4 = vrot.slane %v643_v3, 4 }
 0x216   :  { %v645_v8 = vadd.f32 %v644_v4, %v643_v3 }
 0x218   :  { %v646_v6 = vrot.slane %v645_v8, 2 }
 0x21a   :  { %v647_v7 = vadd.f32 %v646_v6, %v645_v8 }
 0x21c   :  { %v648_v5 = vrot.slane %v647_v7, 1 }
 0x21e   :  { %v649_v9 = vadd.f32 %v648_v5, %v647_v7 }
 0x220   :  { %v650_v10 = vmul.f32 0.03125, %v649_v9 }
 0x222   :  { %v651_v14 = vsub.f32 %v6287_v61, %v650_v10  ;;  %v652_v11 = vsub.f32 %v6284_v60, %v650_v10  ;;  %v653_v12 = vsub.f32 %v6290_v63, %v650_v10  ;;  %v654_v15 = vsub.f32 %v6295_v59, %v650_v10 }
 0x224   :  { %v655_v13 = vmul.f32 %v651_v14, %v651_v14  ;;  %v656_v16 = vmul.f32 %v652_v11, %v652_v11  ;;  %v657_v19 = vmul.f32 %v653_v12, %v653_v12  ;;  %v658_v21 = vmul.f32 %v654_v15, %v654_v15 }
 0x226   :  { %v659_v20 = vadd.f32 %v656_v16, %v655_v13 }
 0x228   :  { %v660_v22 = vadd.f32 %v659_v20, %v657_v19 }
 0x22a   :  { %v661_v23 = vadd.f32 %v660_v22, %v658_v21 }
 0x22c   :  { %v662_v24 = vrot.slane %v661_v23, 4 }
 0x22e   :  { %v663_v25 = vadd.f32 %v662_v24, %v661_v23  ;;  %v5743_v24 = vld [vmem:[#allocation2 + $0x184] ss:$12 sps:$4 sm:$0xff]  }
 0x22f   :  { %1271 = vmatprep.subr.bf16.mxu0 %v5743_v24 }
 0x230   :  { %v664_v26 = vrot.slane %v663_v25, 2 }
 0x232   :  { %v665_v28 = vadd.f32 %v664_v26, %v663_v25  ;;  %v5741_v25 = vld [vmem:[#allocation2 + $0x180] ss:$12 sps:$4 sm:$0xff]   ;;  %v5744_v26 = vld [vmem:[#allocation2 + $0x188] ss:$12 sps:$4 sm:$0xff]  }
 0x233   :  { %5338 = vmatprep.subr.bf16.mxu1 %v5744_v26 }
 0x234   :  { %v666_v30 = vrot.slane %v665_v28, 1 }
 0x236   :  { %v667_v32 = vadd.f32 %v666_v30, %v665_v28  ;;  %v5747_v28 = vld [vmem:[#allocation2 + $0x19c] ss:$12 sps:$4 sm:$0xff]   ;;  %v5745_v30 = vld [vmem:[#allocation2 + $0x198] ss:$12 sps:$4 sm:$0xff]  }
 0x238   :  { %v668_v33 = vmul.f32 0.03125, %v667_v32  ;;  %v5748_v32 = vld [vmem:[#allocation2 + $0x1a0] ss:$12 sps:$4 sm:$0xff]  }
 0x23a   :  { %v669_v35 = vadd.f32 1e-05, %v668_v33  ;;  %v5751_v33 = vld [vmem:[#allocation2 + $0x1b4] ss:$12 sps:$4 sm:$0xff]  }
 0x23c   :  { %5879 = vrsqrt.f32 %v669_v35  ;;  %v5749_v35 = vld [vmem:[#allocation2 + $0x1b0] ss:$12 sps:$4 sm:$0xff]  }
 0x246   :  { %v5880_v38 = vpop.eup %5879 }
 0x247   :  { %v674_v41 = vmul.f32 %v5880_v38, %v654_v15  ;;  %v671_v42 = vmul.f32 %v5880_v38, %v651_v14  ;;  %v672_v43 = vmul.f32 %v5880_v38, %v652_v11  ;;  %v673_v44 = vmul.f32 %v5880_v38, %v653_v12  ;;  %v5755_v38 = vld [vmem:[#allocation2 + $0x1cc] ss:$12 sps:$4 sm:$0xff]  }
 0x249   :  { %v682_v49 = vmul.f32 %v678_v37, %v674_v41  ;;  %v679_v50 = vmul.f32 %v678_v37, %v671_v42  ;;  %v680_v39 = vmul.f32 %v678_v37, %v672_v43  ;;  %v681_v51 = vmul.f32 %v678_v37, %v673_v44  ;;  %v5752_v37 = vld [vmem:[#allocation2 + $0x1b8] ss:$12 sps:$4 sm:$0xff]   ;;  %v5753_v41 = vld [vmem:[#allocation2 + $0x1c8] ss:$12 sps:$4 sm:$0xff]   ;;  %v5757_v44 = vld [vmem:[#allocation2 + $0x1e0] ss:$12 sps:$4 sm:$0xff]  }
 0x24a   :  { %v5759_v42 = vld [vmem:[#allocation2 + $0x1e4] ss:$12 sps:$4 sm:$0xff]   ;;  %v5760_v43 = vld [vmem:[#allocation2 + $0x1e8] ss:$12 sps:$4 sm:$0xff]  }
 0x24b   :  { %v687_v52 = vadd.f32 %v686_v40, %v679_v50  ;;  %v688_v53 = vadd.f32 %v686_v40, %v680_v39  ;;  %v689_v57 = vadd.f32 %v686_v40, %v681_v51  ;;  %v690_v58 = vadd.f32 %v686_v40, %v682_v49  ;;  %v5756_v40 = vld [vmem:[#allocation2 + $0x1d0] ss:$12 sps:$4 sm:$0xff]   ;;  %v5764_v50 = vld [vmem:[#allocation2 + $0x200] ss:$12 sps:$4 sm:$0xff]   ;;  %v5761_v39 = vld [vmem:[#allocation2 + $0x1f8] ss:$12 sps:$4 sm:$0xff]  }
 0x24c   :  { %v5763_v49 = vld [vmem:[#allocation2 + $0x1fc] ss:$12 sps:$4 sm:$0xff]   ;;  %v5767_v51 = vld [vmem:[#allocation2 + $0x214] ss:$12 sps:$4 sm:$0xff]  }
 0x24d   :  { %v695_v62 = vmul.f32 0.70710677, %v687_v52  ;;  %v696_v0 = vmul.f32 0.70710677, %v688_v53  ;;  %v697_v2 = vmul.f32 0.70710677, %v689_v57 }
 0x24e   :  { %v698_v3 = vmul.f32 0.70710677, %v690_v58  ;;  %v691_v6 = vmul.f32 0.5, %v687_v52  ;;  %v692_v9 = vmul.f32 0.5, %v688_v53  ;;  %v693_v12 = vmul.f32 0.5, %v689_v57 }
 0x24f   :  { %5881 = verf.f32 %v695_v62  ;;  %v694_v16 = vmul.f32 0.5, %v690_v58  ;;  %v5768_v52 = vld [vmem:[#allocation2 + $0x218] ss:$12 sps:$4 sm:$0xff]   ;;  %v5765_v53 = vld [vmem:[#allocation2 + $0x210] ss:$12 sps:$4 sm:$0xff]  }
 0x250   :  { %5883 = verf.f32 %v696_v0  ;;  %v5771_v57 = vld [vmem:[#allocation2 + $0x22c] ss:$12 sps:$4 sm:$0xff]   ;;  %v5772_v58 = vld [vmem:[#allocation2 + $0x230] ss:$12 sps:$4 sm:$0xff]   ;;  %v5769_v62 = vld [vmem:[#allocation2 + $0x228] ss:$12 sps:$4 sm:$0xff]  }
 0x251   :  { %5885 = verf.f32 %v697_v2 }
 0x252   :  { %5887 = verf.f32 %v698_v3 }
 0x259   :  { %v5882_v4 = vpop.eup %5881 }
 0x25a   :  { %v5884_v8 = vpop.eup %5883  ;;  %v703_v7 = vadd.f32 1.0, %v5882_v4 }
 0x25b   :  { %v5886_v5 = vpop.eup %5885  ;;  %v704_v10 = vadd.f32 1.0, %v5884_v8 }
 0x25c   :  { %v5888_v14 = vpop.eup %5887  ;;  %v707_v11 = vmul.f32 %v703_v7, %v691_v6  ;;  %v705_v15 = vadd.f32 1.0, %v5886_v5 }
 0x25d   :  { %v708_v13 = vmul.f32 %v704_v10, %v692_v9  ;;  %v706_v19 = vadd.f32 1.0, %v5888_v14 }
 0x25e   :  { %v709_v20 = vmul.f32 %v705_v15, %v693_v12 }
 0x25f   :  { %v711_v21 = vpack.c.bf16 %v708_v13, %v707_v11  ;;  %v710_v22 = vmul.f32 %v706_v19, %v694_v16 }
 0x261   :  { %907 = vmatmul.mubr.bf16.vlgmr.msra.gmra.mrb[8].mxu0 %v711_v21  ;;  %5334 = vmatprep.mubr.bf16.mxu1 %v711_v21  ;;  %v712_v23 = vpack.c.bf16 %v710_v22, %v709_v20 }
 0x262   :  { %916 = vmatprep.mubr.bf16.mxu0 %v6110_v1  ;;  %1272 = vmatpush1.bf16.msra.mxu0 %v5741_v25 }
 0x263   :  { %5335 = vmatmul.mubr.bf16.vlgmr.msra.gmra.mrb[4].mxu1 %v712_v23  ;;  %1273 = vmatprep.subr.bf16.mxu0 %v5747_v28 }
 0x264   :  { %5339 = vmatpush3.bf16.msra.mxu1 %v5744_v26 }
 0x265   :  { %5340 = vmatprep.subr.bf16.mxu1 %v5748_v32 }
 0x266   :  { %1274 = vmatpush1.bf16.msra.mxu0 %v5745_v30 }
 0x267   :  { %1275 = vmatprep.subr.bf16.mxu0 %v5751_v33 }
 0x268   :  { %5341 = vmatpush3.bf16.msra.mxu1 %v5748_v32 }
 0x269   :  { %917 = vmatmul.mubr.bf16.gmra.mrb[12].mxu0 %v712_v23  ;;  %5342 = vmatprep.subr.bf16.mxu1 %v5752_v37 }
 0x26a   :  { %1303 = vmatprep.mubr.bf16.mxu0 %v6110_v1  ;;  %1276 = vmatpush1.bf16.msra.mxu0 %v5749_v35 }
 0x26b   :  { %1277 = vmatprep.subr.bf16.mxu0 %v5755_v38  ;;  %v1029_v38 = vrot.slane %v6267_v29, %v6304_v36 }
 0x26c   :  { %5343 = vmatpush3.bf16.msra.mxu1 %v5752_v37 }
 0x26d   :  { %5344 = vmatprep.subr.bf16.mxu1 %v5756_v40 }
 0x26e   :  { %1278 = vmatpush1.bf16.msra.mxu0 %v5753_v41 }
 0x26f   :  { %1279 = vmatprep.subr.bf16.mxu0 %v5759_v42 }
 0x270   :  { %5345 = vmatpush3.bf16.msra.mxu1 %v5756_v40 }
 0x271   :  { %5346 = vmatprep.subr.bf16.mxu1 %v5760_v43 }
 0x272   :  { %1280 = vmatpush1.bf16.msra.mxu0 %v5757_v44 }
 0x273   :  { %1281 = vmatprep.subr.bf16.mxu0 %v5763_v49 }
 0x274   :  { %5347 = vmatpush3.bf16.msra.mxu1 %v5760_v43 }
 0x275   :  { %5348 = vmatprep.subr.bf16.mxu1 %v5764_v50 }
 0x276   :  { %1282 = vmatpush1.bf16.msra.mxu0 %v5761_v39 }
 0x277   :  { %1283 = vmatprep.subr.bf16.mxu0 %v5767_v51 }
 0x278   :  { %5349 = vmatpush3.bf16.msra.mxu1 %v5764_v50 }
 0x279   :  { %5350 = vmatprep.subr.bf16.mxu1 %v5768_v52 }
 0x27a   :  { %1284 = vmatpush1.bf16.msra.mxu0 %v5765_v53 }
 0x27b   :  { %1285 = vmatprep.subr.bf16.mxu0 %v5771_v57 }
 0x27c   :  { %5351 = vmatpush3.bf16.msra.mxu1 %v5768_v52 }
 0x27d   :  { %5352 = vmatprep.subr.bf16.mxu1 %v5772_v58 }
 0x27e   :  { %1286 = vmatpush1.bf16.msra.mxu0 %v5769_v62 }
 0x280   :  { %5353 = vmatpush3.bf16.msra.mxu1 %v5772_v58 }
 0x334   :  { %v908_v0 = vpop.f32.mrb[8].mxu0 }
 0x335   :  { %v910_v2 = vpop.f32.mrb[9].mxu0  ;;  %v982_v8 = vrot.slane %v908_v0, 7 }
 0x336   :  { %v5336_v3 = vpop.f32.mrb[4].mxu1  ;;  %v912_v4 = vpop.f32.mrb[10].mxu0 }
 0x337   :  { %v983_v6 = vrot.slane %v912_v4, 7  ;;  %v961_v7 = vpop.f32.mrb[5].mxu1  ;;  %v914_v5 = vpop.f32.mrb[11].mxu0  ;;  %v1004_v14 = vrot.slane %v5336_v3, 1 }
 0x338   :  { %v1001_v9 = vrot.slane %v961_v7, 1  ;;  %v5337_v10 = vpop.f32.mrb[6].mxu1 }
 0x339   :  { %v984_v11 = vsel %vm583_vm4, %v982_v8, %v983_v6  ;;  %v1006_v12 = vrot.slane %v5337_v10, 1  ;;  %v964_v15 = vpop.f32.mrb[7].mxu1 }
 0x33a   :  { %v1019_v13 = vadd.f32 %v984_v11, %v914_v5  ;;  %v1002_v16 = vrot.slane %v964_v15, 1 }
 0x33b   :  { %v1013_v19 = vsel %vm603_vm6, %v1006_v12, %v1001_v9  ;;  %v1007_v20 = vsel %vm603_vm6, %v1004_v14, %v1006_v12 }
 0x33c   :  { %v1003_v21 = vsel %vm603_vm6, %v1001_v9, %v1002_v16  ;;  %v1005_v22 = vsel %vm603_vm6, %v1002_v16, %v1004_v14  ;;  %v918_v23 = vpop.f32.mrb[12].mxu0  ;;  %v1017_v44 = vmul.f32 %v6270_v31, %v1013_v19 }
 0x33d   :  { %v1015_v24 = vmul.f32 %v6254_v18, %v1005_v22  ;;  %v985_v25 = vrot.slane %v918_v23, 7  ;;  %v920_v26 = vpop.f32.mrb[13].mxu0 }
 0x33e   :  { %v922_v28 = vpop.f32.mrb[14].mxu0 }
 0x33f   :  { %v1023_v30 = vadd.f32 %v1019_v13, %v1015_v24  ;;  %v986_v32 = vsel %vm583_vm4, %v983_v6, %v985_v25  ;;  %v977_v33 = vrot.slane %v922_v28, 7  ;;  %v924_v35 = vpop.f32.mrb[15].mxu0 }
 0x340   :  { %v995_v37 = vmul.f32 %v6262_v27, %v986_v32 }
 0x341   :  { %v992_v40 = vsel %vm583_vm4, %v977_v33, %v982_v8  ;;  %v987_v41 = vsel %vm583_vm4, %v985_v25, %v977_v33  ;;  %v1031_v52 = vadd.f32 %v1029_v38, %v1023_v30 }
 0x342   :  { %v1020_v42 = vadd.f32 %v995_v37, %v920_v26  ;;  %v993_v43 = vmul.f32 %v6274_v34, %v992_v40  ;;  %v1021_v49 = vadd.f32 %v987_v41, %v924_v35  ;;  %v6347_v37 = vsub.s32 2, %v6218_v45 }
 0x343   :  { %v6327_v62 = vadd.f32 %v1031_v52, %v6284_v60 }
 0x344   :  { %v1024_v50 = vadd.f32 %v1020_v42, %v1007_v20  ;;  %v1018_v39 = vadd.f32 %v993_v43, %v910_v2  ;;  %v1025_v51 = vadd.f32 %v1021_v49, %v1017_v44  ;;  %v1083_v41 = vrot.slane %v6231_v48, %v6347_v37 }
 0x346   :  { %v1022_v53 = vadd.f32 %v1018_v39, %v1003_v21  ;;  %v1032_v57 = vadd.f32 %v1029_v38, %v1024_v50  ;;  %v1033_v3 = vadd.f32 %v1029_v38, %v1025_v51 }
 0x348   :  { %v1030_v58 = vadd.f32 %v1029_v38, %v1022_v53  ;;  %v6333_v4 = vadd.f32 %v1032_v57, %v6290_v63  ;;  %v6338_v2 = vadd.f32 %v1033_v3, %v6295_v59  ;;  %v1075_v38 = vrot.slane %v6226_v47, %v6347_v37 }
 0x34a   :  { %v6330_v0 = vadd.f32 %v1030_v58, %v6287_v61 }
 0x34c   :  { %v1038_v8 = vadd.f32 %v6327_v62, %v6330_v0 }
 0x34e   :  { %v1039_v6 = vadd.f32 %v1038_v8, %v6333_v4 }
 0x350   :  { %v1040_v7 = vadd.f32 %v1039_v6, %v6338_v2 }
 0x352   :  { %v1041_v5 = vrot.slane %v1040_v7, 4 }
 0x354   :  { %v1042_v60 = vadd.f32 %v1041_v5, %v1040_v7 }
 0x356   :  { %v1043_v9 = vrot.slane %v1042_v60, 2 }
 0x358   :  { %v1044_v10 = vadd.f32 %v1043_v9, %v1042_v60 }
 0x35a   :  { %v1045_v61 = vrot.slane %v1044_v10, 1 }
 0x35c   :  { %v1046_v14 = vadd.f32 %v1045_v61, %v1044_v10 }
 0x35e   :  { %v1047_v11 = vmul.f32 0.03125, %v1046_v14 }
 0x360   :  { %v1048_v63 = vsub.f32 %v6330_v0, %v1047_v11  ;;  %v1049_v12 = vsub.f32 %v6327_v62, %v1047_v11  ;;  %v1050_v15 = vsub.f32 %v6333_v4, %v1047_v11  ;;  %v1051_v59 = vsub.f32 %v6338_v2, %v1047_v11 }
 0x362   :  { %v1052_v13 = vmul.f32 %v1048_v63, %v1048_v63  ;;  %v1053_v16 = vmul.f32 %v1049_v12, %v1049_v12  ;;  %v1054_v19 = vmul.f32 %v1050_v15, %v1050_v15  ;;  %v1055_v21 = vmul.f32 %v1051_v59, %v1051_v59 }
 0x364   :  { %v1056_v20 = vadd.f32 %v1053_v16, %v1052_v13 }
 0x366   :  { %v1057_v22 = vadd.f32 %v1056_v20, %v1054_v19 }
 0x368   :  { %v1058_v23 = vadd.f32 %v1057_v22, %v1055_v21 }
 0x36a   :  { %v1059_v24 = vrot.slane %v1058_v23, 4 }
 0x36c   :  { %v1060_v25 = vadd.f32 %v1059_v24, %v1058_v23  ;;  %v5775_v23 = vld [vmem:[#allocation2 + $0x244] ss:$12 sps:$4 sm:$0xff]   ;;  %v5773_v24 = vld [vmem:[#allocation2 + $0x240] ss:$12 sps:$4 sm:$0xff]  }
 0x36d   :  { %1668 = vmatprep.subr.bf16.mxu0 %v5775_v23 }
 0x36e   :  { %v1061_v26 = vrot.slane %v1060_v25, 2 }
 0x370   :  { %v1062_v28 = vadd.f32 %v1061_v26, %v1060_v25  ;;  %v5776_v25 = vld [vmem:[#allocation2 + $0x248] ss:$12 sps:$4 sm:$0xff]  }
 0x371   :  { %5358 = vmatprep.subr.bf16.mxu1 %v5776_v25  ;;  %v5779_v26 = vld [vmem:[#allocation2 + $0x25c] ss:$12 sps:$4 sm:$0xff]  }
 0x372   :  { %v1063_v30 = vrot.slane %v1062_v28, 1 }
 0x374   :  { %v1064_v32 = vadd.f32 %v1063_v30, %v1062_v28  ;;  %v5777_v28 = vld [vmem:[#allocation2 + $0x258] ss:$12 sps:$4 sm:$0xff]   ;;  %v5780_v30 = vld [vmem:[#allocation2 + $0x260] ss:$12 sps:$4 sm:$0xff]  }
 0x376   :  { %v1065_v33 = vmul.f32 0.03125, %v1064_v32  ;;  %v5783_v32 = vld [vmem:[#allocation2 + $0x274] ss:$12 sps:$4 sm:$0xff]  }
 0x378   :  { %v1066_v35 = vadd.f32 1e-05, %v1065_v33  ;;  %v5781_v33 = vld [vmem:[#allocation2 + $0x270] ss:$12 sps:$4 sm:$0xff]  }
 0x37a   :  { %5889 = vrsqrt.f32 %v1066_v35  ;;  %v5784_v35 = vld [vmem:[#allocation2 + $0x278] ss:$12 sps:$4 sm:$0xff]  }
 0x384   :  { %v5890_v40 = vpop.eup %5889 }
 0x385   :  { %v1071_v42 = vmul.f32 %v5890_v40, %v1051_v59  ;;  %v1068_v43 = vmul.f32 %v5890_v40, %v1048_v63  ;;  %v1069_v44 = vmul.f32 %v5890_v40, %v1049_v12  ;;  %v1070_v49 = vmul.f32 %v5890_v40, %v1050_v15  ;;  %v5788_v40 = vld [vmem:[#allocation2 + $0x290] ss:$12 sps:$4 sm:$0xff]  }
 0x387   :  { %v1079_v50 = vmul.f32 %v1075_v38, %v1071_v42  ;;  %v1076_v39 = vmul.f32 %v1075_v38, %v1068_v43  ;;  %v1077_v51 = vmul.f32 %v1075_v38, %v1069_v44  ;;  %v1078_v52 = vmul.f32 %v1075_v38, %v1070_v49  ;;  %v5787_v38 = vld [vmem:[#allocation2 + $0x28c] ss:$12 sps:$4 sm:$0xff]   ;;  %v5791_v42 = vld [vmem:[#allocation2 + $0x2a4] ss:$12 sps:$4 sm:$0xff]   ;;  %v5792_v43 = vld [vmem:[#allocation2 + $0x2a8] ss:$12 sps:$4 sm:$0xff]  }
 0x388   :  { %v5789_v44 = vld [vmem:[#allocation2 + $0x2a0] ss:$12 sps:$4 sm:$0xff]   ;;  %v5795_v49 = vld [vmem:[#allocation2 + $0x2bc] ss:$12 sps:$4 sm:$0xff]  }
 0x389   :  { %v1084_v53 = vadd.f32 %v1083_v41, %v1076_v39  ;;  %v1085_v57 = vadd.f32 %v1083_v41, %v1077_v51  ;;  %v1086_v58 = vadd.f32 %v1083_v41, %v1078_v52  ;;  %v1087_v3 = vadd.f32 %v1083_v41, %v1079_v50  ;;  %v5785_v41 = vld [vmem:[#allocation2 + $0x288] ss:$12 sps:$4 sm:$0xff]   ;;  %v5796_v50 = vld [vmem:[#allocation2 + $0x2c0] ss:$12 sps:$4 sm:$0xff]   ;;  %v5793_v39 = vld [vmem:[#allocation2 + $0x2b8] ss:$12 sps:$4 sm:$0xff]  }
 0x38a   :  { %v5799_v51 = vld [vmem:[#allocation2 + $0x2d4] ss:$12 sps:$4 sm:$0xff]   ;;  %v5800_v52 = vld [vmem:[#allocation2 + $0x2d8] ss:$12 sps:$4 sm:$0xff]  }
 0x38b   :  { %v1092_v8 = vmul.f32 0.70710677, %v1084_v53  ;;  %v1093_v6 = vmul.f32 0.70710677, %v1085_v57  ;;  %v1094_v7 = vmul.f32 0.70710677, %v1086_v58 }
 0x38c   :  { %v1095_v47 = vmul.f32 0.70710677, %v1087_v3  ;;  %v1088_v60 = vmul.f32 0.5, %v1084_v53  ;;  %v1089_v61 = vmul.f32 0.5, %v1085_v57  ;;  %v1090_v12 = vmul.f32 0.5, %v1086_v58 }
 0x38d   :  { %5891 = verf.f32 %v1092_v8  ;;  %v1091_v13 = vmul.f32 0.5, %v1087_v3  ;;  %v5797_v53 = vld [vmem:[#allocation2 + $0x2d0] ss:$12 sps:$4 sm:$0xff]   ;;  %v5803_v57 = vld [vmem:[#allocation2 + $0x2ec] ss:$12 sps:$4 sm:$0xff]  }
 0x38e   :  { %5893 = verf.f32 %v1093_v6  ;;  %v5804_v58 = vld [vmem:[#allocation2 + $0x2f0] ss:$12 sps:$4 sm:$0xff]   ;;  %v5801_v3 = vld [vmem:[#allocation2 + $0x2e8] ss:$12 sps:$4 sm:$0xff]  }
 0x38f   :  { %5895 = verf.f32 %v1094_v7 }
 0x390   :  { %5897 = verf.f32 %v1095_v47 }
 0x397   :  { %v5892_v48 = vpop.eup %5891 }
 0x398   :  { %v5894_v5 = vpop.eup %5893  ;;  %v1100_v9 = vadd.f32 1.0, %v5892_v48 }
 0x399   :  { %v5896_v10 = vpop.eup %5895  ;;  %v1101_v14 = vadd.f32 1.0, %v5894_v5 }
 0x39a   :  { %v5898_v11 = vpop.eup %5897  ;;  %v1104_v63 = vmul.f32 %v1100_v9, %v1088_v60  ;;  %v1102_v15 = vadd.f32 1.0, %v5896_v10 }
 0x39b   :  { %v1105_v59 = vmul.f32 %v1101_v14, %v1089_v61  ;;  %v1103_v16 = vadd.f32 1.0, %v5898_v11 }
 0x39c   :  { %v1106_v19 = vmul.f32 %v1102_v15, %v1090_v12 }
 0x39d   :  { %v1108_v20 = vpack.c.bf16 %v1105_v59, %v1104_v63  ;;  %v1107_v21 = vmul.f32 %v1103_v16, %v1091_v13 }
 0x39f   :  { %1304 = vmatmul.mubr.bf16.vlgmr.msra.gmra.mrb[16].mxu0 %v1108_v20  ;;  %5354 = vmatprep.mubr.bf16.mxu1 %v1108_v20  ;;  %v1109_v22 = vpack.c.bf16 %v1107_v21, %v1106_v19 }
 0x3a0   :  { %1313 = vmatprep.mubr.bf16.mxu0 %v6110_v1  ;;  %1669 = vmatpush1.bf16.msra.mxu0 %v5773_v24 }
 0x3a1   :  { %5355 = vmatmul.mubr.bf16.vlgmr.msra.gmra.mrb[8].mxu1 %v1109_v22  ;;  %1670 = vmatprep.subr.bf16.mxu0 %v5779_v26 }
 0x3a2   :  { %5359 = vmatpush3.bf16.msra.mxu1 %v5776_v25 }
 0x3a3   :  { %5360 = vmatprep.subr.bf16.mxu1 %v5780_v30 }
 0x3a4   :  { %1671 = vmatpush1.bf16.msra.mxu0 %v5777_v28 }
 0x3a5   :  { %1672 = vmatprep.subr.bf16.mxu0 %v5783_v32 }
 0x3a6   :  { %5361 = vmatpush3.bf16.msra.mxu1 %v5780_v30 }
 0x3a7   :  { %1314 = vmatmul.mubr.bf16.gmra.mrb[20].mxu0 %v1109_v22  ;;  %5362 = vmatprep.subr.bf16.mxu1 %v5784_v35 }
 0x3a8   :  { %1700 = vmatprep.mubr.bf16.mxu0 %v6110_v1  ;;  %1673 = vmatpush1.bf16.msra.mxu0 %v5781_v33 }
 0x3a9   :  { %1674 = vmatprep.subr.bf16.mxu0 %v5787_v38 }
 0x3aa   :  { %5363 = vmatpush3.bf16.msra.mxu1 %v5784_v35  ;;  %v1426_v35 = vrot.slane %v6267_v29, %v6347_v37 }
 0x3ab   :  { %5364 = vmatprep.subr.bf16.mxu1 %v5788_v40 }
 0x3ac   :  { %1675 = vmatpush1.bf16.msra.mxu0 %v5785_v41 }
 0x3ad   :  { %1676 = vmatprep.subr.bf16.mxu0 %v5791_v42 }
 0x3ae   :  { %5365 = vmatpush3.bf16.msra.mxu1 %v5788_v40 }
 0x3af   :  { %5366 = vmatprep.subr.bf16.mxu1 %v5792_v43 }
 0x3b0   :  { %1677 = vmatpush1.bf16.msra.mxu0 %v5789_v44 }
 0x3b1   :  { %1678 = vmatprep.subr.bf16.mxu0 %v5795_v49 }
 0x3b2   :  { %5367 = vmatpush3.bf16.msra.mxu1 %v5792_v43 }
 0x3b3   :  { %5368 = vmatprep.subr.bf16.mxu1 %v5796_v50 }
 0x3b4   :  { %1679 = vmatpush1.bf16.msra.mxu0 %v5793_v39 }
 0x3b5   :  { %1680 = vmatprep.subr.bf16.mxu0 %v5799_v51 }
 0x3b6   :  { %5369 = vmatpush3.bf16.msra.mxu1 %v5796_v50 }
 0x3b7   :  { %5370 = vmatprep.subr.bf16.mxu1 %v5800_v52 }
 0x3b8   :  { %1681 = vmatpush1.bf16.msra.mxu0 %v5797_v53 }
 0x3b9   :  { %1682 = vmatprep.subr.bf16.mxu0 %v5803_v57 }
 0x3ba   :  { %5371 = vmatpush3.bf16.msra.mxu1 %v5800_v52 }
 0x3bb   :  { %5372 = vmatprep.subr.bf16.mxu1 %v5804_v58 }
 0x3bc   :  { %1683 = vmatpush1.bf16.msra.mxu0 %v5801_v3 }
 0x3be   :  { %5373 = vmatpush3.bf16.msra.mxu1 %v5804_v58 }
 0x472   :  { %v1305_v8 = vpop.f32.mrb[16].mxu0 }
 0x473   :  { %v1307_v6 = vpop.f32.mrb[17].mxu0  ;;  %v1379_v48 = vrot.slane %v1305_v8, 7 }
 0x474   :  { %v5356_v7 = vpop.f32.mrb[8].mxu1  ;;  %v1309_v47 = vpop.f32.mrb[18].mxu0 }
 0x475   :  { %v1380_v5 = vrot.slane %v1309_v47, 7  ;;  %v1358_v60 = vpop.f32.mrb[9].mxu1  ;;  %v1311_v9 = vpop.f32.mrb[19].mxu0  ;;  %v1401_v14 = vrot.slane %v5356_v7, 1 }
 0x476   :  { %v1398_v10 = vrot.slane %v1358_v60, 1  ;;  %v5357_v61 = vpop.f32.mrb[10].mxu1 }
 0x477   :  { %v1381_v11 = vsel %vm583_vm4, %v1379_v48, %v1380_v5  ;;  %v1403_v63 = vrot.slane %v5357_v61, 1  ;;  %v1361_v12 = vpop.f32.mrb[11].mxu1 }
 0x478   :  { %v1416_v15 = vadd.f32 %v1381_v11, %v1311_v9  ;;  %v1399_v59 = vrot.slane %v1361_v12, 1 }
 0x479   :  { %v1410_v13 = vsel %vm603_vm6, %v1403_v63, %v1398_v10  ;;  %v1404_v16 = vsel %vm603_vm6, %v1401_v14, %v1403_v63 }
 0x47a   :  { %v1400_v19 = vsel %vm603_vm6, %v1398_v10, %v1399_v59  ;;  %v1402_v20 = vsel %vm603_vm6, %v1399_v59, %v1401_v14  ;;  %v1315_v21 = vpop.f32.mrb[20].mxu0  ;;  %v1414_v43 = vmul.f32 %v6270_v31, %v1410_v13 }
 0x47b   :  { %v1412_v22 = vmul.f32 %v6254_v18, %v1402_v20  ;;  %v1382_v23 = vrot.slane %v1315_v21, 7  ;;  %v1317_v24 = vpop.f32.mrb[21].mxu0 }
 0x47c   :  { %v1319_v25 = vpop.f32.mrb[22].mxu0 }
 0x47d   :  { %v1420_v26 = vadd.f32 %v1416_v15, %v1412_v22  ;;  %v1383_v28 = vsel %vm583_vm4, %v1380_v5, %v1382_v23  ;;  %v1374_v30 = vrot.slane %v1319_v25, 7  ;;  %v1321_v32 = vpop.f32.mrb[23].mxu0 }
 0x47e   :  { %v1392_v33 = vmul.f32 %v6262_v27, %v1383_v28 }
 0x47f   :  { %v1389_v38 = vsel %vm583_vm4, %v1374_v30, %v1379_v48  ;;  %v1384_v40 = vsel %vm583_vm4, %v1382_v23, %v1374_v30  ;;  %v1428_v51 = vadd.f32 %v1426_v35, %v1420_v26  ;;  %v6390_v30 = vsub.s32 3, %v6218_v45 }
 0x480   :  { %v1417_v41 = vadd.f32 %v1392_v33, %v1317_v24  ;;  %v1390_v42 = vmul.f32 %v6274_v34, %v1389_v38  ;;  %v1418_v44 = vadd.f32 %v1384_v40, %v1321_v32  ;;  %v6395_v32 = vld [vmem:[%s6896_s1] sm:$0x3f]  ;;  %v6402_v38 = vld [vmem:[%s6896_s1 + $0x8] sm:$0x3f] }
 0x481   :  { %v6370_v58 = vadd.f32 %v1428_v51, %v6327_v62  ;;  %v1472_v33 = vrot.slane %v6395_v32, %v6390_v30  ;;  %v1480_v40 = vrot.slane %v6402_v38, %v6390_v30 }
 0x482   :  { %v1421_v49 = vadd.f32 %v1417_v41, %v1404_v16  ;;  %v1415_v50 = vadd.f32 %v1390_v42, %v1307_v6  ;;  %v1422_v39 = vadd.f32 %v1418_v44, %v1414_v43 }
 0x484   :  { %v1419_v52 = vadd.f32 %v1415_v50, %v1400_v19  ;;  %v1429_v53 = vadd.f32 %v1426_v35, %v1421_v49  ;;  %v1430_v3 = vadd.f32 %v1426_v35, %v1422_v39 }
 0x486   :  { %v1427_v57 = vadd.f32 %v1426_v35, %v1419_v52  ;;  %v6376_v8 = vadd.f32 %v1429_v53, %v6333_v4  ;;  %v6381_v6 = vadd.f32 %v1430_v3, %v6338_v2 }
 0x488   :  { %v6373_v29 = vadd.f32 %v1427_v57, %v6330_v0 }
 0x48a   :  { %v1435_v7 = vadd.f32 %v6370_v58, %v6373_v29 }
 0x48c   :  { %v1436_v47 = vadd.f32 %v1435_v7, %v6376_v8 }
 0x48e   :  { %v1437_v48 = vadd.f32 %v1436_v47, %v6381_v6 }
 0x490   :  { %v1438_v5 = vrot.slane %v1437_v48, 4 }
 0x492   :  { %v1439_v62 = vadd.f32 %v1438_v5, %v1437_v48 }
 0x494   :  { %v1440_v60 = vrot.slane %v1439_v62, 2 }
 0x496   :  { %v1441_v9 = vadd.f32 %v1440_v60, %v1439_v62 }
 0x498   :  { %v1442_v0 = vrot.slane %v1441_v9, 1 }
 0x49a   :  { %v1443_v10 = vadd.f32 %v1442_v0, %v1441_v9 }
 0x49c   :  { %v1444_v61 = vmul.f32 0.03125, %v1443_v10 }
 0x49e   :  { %v1445_v4 = vsub.f32 %v6373_v29, %v1444_v61  ;;  %v1446_v14 = vsub.f32 %v6370_v58, %v1444_v61  ;;  %v1447_v11 = vsub.f32 %v6376_v8, %v1444_v61  ;;  %v1448_v2 = vsub.f32 %v6381_v6, %v1444_v61 }
 0x4a0   :  { %v1449_v63 = vmul.f32 %v1445_v4, %v1445_v4  ;;  %v1450_v12 = vmul.f32 %v1446_v14, %v1446_v14  ;;  %v1451_v15 = vmul.f32 %v1447_v11, %v1447_v11  ;;  %v1452_v13 = vmul.f32 %v1448_v2, %v1448_v2 }
 0x4a2   :  { %v1453_v59 = vadd.f32 %v1450_v12, %v1449_v63 }
 0x4a4   :  { %v1454_v16 = vadd.f32 %v1453_v59, %v1451_v15 }
 0x4a6   :  { %v1455_v19 = vadd.f32 %v1454_v16, %v1452_v13 }
 0x4a8   :  { %v1456_v20 = vrot.slane %v1455_v19, 4 }
 0x4aa   :  { %v1457_v21 = vadd.f32 %v1456_v20, %v1455_v19 }
 0x4ac   :  { %v1458_v22 = vrot.slane %v1457_v21, 2 }
 0x4ae   :  { %v1459_v23 = vadd.f32 %v1458_v22, %v1457_v21  ;;  %v5807_v21 = vld [vmem:[#allocation2 + $0x304] ss:$12 sps:$4 sm:$0xff]   ;;  %v5805_v22 = vld [vmem:[#allocation2 + $0x300] ss:$12 sps:$4 sm:$0xff]  }
 0x4af   :  { %2065 = vmatprep.subr.bf16.mxu0 %v5807_v21 }
 0x4b0   :  { %v1460_v24 = vrot.slane %v1459_v23, 1 }
 0x4b2   :  { %v1461_v25 = vadd.f32 %v1460_v24, %v1459_v23  ;;  %v5808_v23 = vld [vmem:[#allocation2 + $0x308] ss:$12 sps:$4 sm:$0xff]  }
 0x4b3   :  { %5378 = vmatprep.subr.bf16.mxu1 %v5808_v23  ;;  %v5811_v24 = vld [vmem:[#allocation2 + $0x31c] ss:$12 sps:$4 sm:$0xff]  }
 0x4b4   :  { %v1462_v26 = vmul.f32 0.03125, %v1461_v25  ;;  %v5809_v25 = vld [vmem:[#allocation2 + $0x318] ss:$12 sps:$4 sm:$0xff]  }
 0x4b6   :  { %v1463_v28 = vadd.f32 1e-05, %v1462_v26  ;;  %v5812_v26 = vld [vmem:[#allocation2 + $0x320] ss:$12 sps:$4 sm:$0xff]  }
 0x4b8   :  { %5899 = vrsqrt.f32 %v1463_v28  ;;  %v5815_v28 = vld [vmem:[#allocation2 + $0x334] ss:$12 sps:$4 sm:$0xff]  }
 0x4c2   :  { %v5900_v35 = vpop.eup %5899 }
 0x4c3   :  { %v1468_v41 = vmul.f32 %v5900_v35, %v1448_v2  ;;  %v1465_v42 = vmul.f32 %v5900_v35, %v1445_v4  ;;  %v1466_v43 = vmul.f32 %v5900_v35, %v1446_v14  ;;  %v1467_v44 = vmul.f32 %v5900_v35, %v1447_v11  ;;  %v5816_v35 = vld [vmem:[#allocation2 + $0x338] ss:$12 sps:$4 sm:$0xff]  }
 0x4c5   :  { %v1476_v49 = vmul.f32 %v1472_v33, %v1468_v41  ;;  %v1473_v50 = vmul.f32 %v1472_v33, %v1465_v42  ;;  %v1474_v39 = vmul.f32 %v1472_v33, %v1466_v43  ;;  %v1475_v51 = vmul.f32 %v1472_v33, %v1467_v44  ;;  %v5813_v33 = vld [vmem:[#allocation2 + $0x330] ss:$12 sps:$4 sm:$0xff]   ;;  %v5817_v42 = vld [vmem:[#allocation2 + $0x348] ss:$12 sps:$4 sm:$0xff]  }
 0x4c6   :  { %v5820_v41 = vld [vmem:[#allocation2 + $0x350] ss:$12 sps:$4 sm:$0xff]   ;;  %v5824_v44 = vld [vmem:[#allocation2 + $0x368] ss:$12 sps:$4 sm:$0xff]  }
 0x4c7   :  { %v1481_v52 = vadd.f32 %v1480_v40, %v1473_v50  ;;  %v1482_v53 = vadd.f32 %v1480_v40, %v1474_v39  ;;  %v1483_v57 = vadd.f32 %v1480_v40, %v1475_v51  ;;  %v1484_v3 = vadd.f32 %v1480_v40, %v1476_v49  ;;  %v5819_v40 = vld [vmem:[#allocation2 + $0x34c] ss:$12 sps:$4 sm:$0xff]   ;;  %v5823_v43 = vld [vmem:[#allocation2 + $0x364] ss:$12 sps:$4 sm:$0xff]   ;;  %v5827_v50 = vld [vmem:[#allocation2 + $0x37c] ss:$12 sps:$4 sm:$0xff]  }
 0x4c8   :  { %v5821_v49 = vld [vmem:[#allocation2 + $0x360] ss:$12 sps:$4 sm:$0xff]   ;;  %v5825_v51 = vld [vmem:[#allocation2 + $0x378] ss:$12 sps:$4 sm:$0xff]  }
 0x4c9   :  { %v1489_v7 = vmul.f32 0.70710677, %v1481_v52  ;;  %v1490_v47 = vmul.f32 0.70710677, %v1482_v53  ;;  %v1491_v48 = vmul.f32 0.70710677, %v1483_v57 }
 0x4ca   :  { %v1492_v5 = vmul.f32 0.70710677, %v1484_v3  ;;  %v1485_v9 = vmul.f32 0.5, %v1481_v52  ;;  %v1486_v61 = vmul.f32 0.5, %v1482_v53  ;;  %v1487_v2 = vmul.f32 0.5, %v1483_v57 }
 0x4cb   :  { %5901 = verf.f32 %v1489_v7  ;;  %v1488_v15 = vmul.f32 0.5, %v1484_v3  ;;  %v5828_v39 = vld [vmem:[#allocation2 + $0x380] ss:$12 sps:$4 sm:$0xff]   ;;  %v5832_v53 = vld [vmem:[#allocation2 + $0x398] ss:$12 sps:$4 sm:$0xff]  }
 0x4cc   :  { %5903 = verf.f32 %v1490_v47  ;;  %v5831_v52 = vld [vmem:[#allocation2 + $0x394] ss:$12 sps:$4 sm:$0xff]   ;;  %v5829_v57 = vld [vmem:[#allocation2 + $0x390] ss:$12 sps:$4 sm:$0xff]   ;;  %v5835_v3 = vld [vmem:[#allocation2 + $0x3ac] ss:$12 sps:$4 sm:$0xff]  }
 0x4cd   :  { %5905 = verf.f32 %v1491_v48  ;;  %v5836_v7 = vld [vmem:[#allocation2 + $0x3b0] ss:$12 sps:$4 sm:$0xff]   ;;  %v5833_v47 = vld [vmem:[#allocation2 + $0x3a8] ss:$12 sps:$4 sm:$0xff]  }
 0x4ce   :  { %5907 = verf.f32 %v1492_v5 }
 0x4d5   :  { %v5902_v62 = vpop.eup %5901 }
 0x4d6   :  { %v5904_v60 = vpop.eup %5903  ;;  %v1497_v0 = vadd.f32 1.0, %v5902_v62 }
 0x4d7   :  { %v5906_v10 = vpop.eup %5905  ;;  %v1498_v4 = vadd.f32 1.0, %v5904_v60 }
 0x4d8   :  { %v5908_v14 = vpop.eup %5907  ;;  %v1501_v11 = vmul.f32 %v1497_v0, %v1485_v9  ;;  %v1499_v63 = vadd.f32 1.0, %v5906_v10 }
 0x4d9   :  { %v1502_v12 = vmul.f32 %v1498_v4, %v1486_v61  ;;  %v1500_v59 = vadd.f32 1.0, %v5908_v14 }
 0x4da   :  { %v1503_v13 = vmul.f32 %v1499_v63, %v1487_v2 }
 0x4db   :  { %v1505_v16 = vpack.c.bf16 %v1502_v12, %v1501_v11  ;;  %v1504_v19 = vmul.f32 %v1500_v59, %v1488_v15 }
 0x4dd   :  { %1701 = vmatmul.mubr.bf16.vlgmr.msra.gmra.mrb[24].mxu0 %v1505_v16  ;;  %5374 = vmatprep.mubr.bf16.mxu1 %v1505_v16  ;;  %v1506_v20 = vpack.c.bf16 %v1504_v19, %v1503_v13 }
 0x4de   :  { %1710 = vmatprep.mubr.bf16.mxu0 %v6110_v1  ;;  %2066 = vmatpush1.bf16.msra.mxu0 %v5805_v22 }
 0x4df   :  { %5375 = vmatmul.mubr.bf16.vlgmr.msra.gmra.mrb[12].mxu1 %v1506_v20  ;;  %2067 = vmatprep.subr.bf16.mxu0 %v5811_v24 }
 0x4e0   :  { %5379 = vmatpush3.bf16.msra.mxu1 %v5808_v23 }
 0x4e1   :  { %5380 = vmatprep.subr.bf16.mxu1 %v5812_v26 }
 0x4e2   :  { %2068 = vmatpush1.bf16.msra.mxu0 %v5809_v25 }
 0x4e3   :  { %2069 = vmatprep.subr.bf16.mxu0 %v5815_v28 }
 0x4e4   :  { %5381 = vmatpush3.bf16.msra.mxu1 %v5812_v26 }
 0x4e5   :  { %1711 = vmatmul.mubr.bf16.gmra.mrb[28].mxu0 %v1506_v20  ;;  %5382 = vmatprep.subr.bf16.mxu1 %v5816_v35 }
 0x4e6   :  { %2097 = vmatprep.mubr.bf16.mxu0 %v6110_v1  ;;  %2070 = vmatpush1.bf16.msra.mxu0 %v5813_v33 }
 0x4e7   :  { %2071 = vmatprep.subr.bf16.mxu0 %v5819_v40 }
 0x4e8   :  { %5383 = vmatpush3.bf16.msra.mxu1 %v5816_v35 }
 0x4e9   :  { %5384 = vmatprep.subr.bf16.mxu1 %v5820_v41 }
 0x4ea   :  { %2072 = vmatpush1.bf16.msra.mxu0 %v5817_v42 }
 0x4eb   :  { %2073 = vmatprep.subr.bf16.mxu0 %v5823_v43 }
 0x4ec   :  { %5385 = vmatpush3.bf16.msra.mxu1 %v5820_v41  ;;  %v6419_v41 = vld [vmem:[%s6896_s1 + $0x10] sm:$0x3f] }
 0x4ed   :  { %5386 = vmatprep.subr.bf16.mxu1 %v5824_v44  ;;  %v1823_v42 = vrot.slane %v6419_v41, %v6390_v30 }
 0x4ee   :  { %2074 = vmatpush1.bf16.msra.mxu0 %v5821_v49 }
 0x4ef   :  { %2075 = vmatprep.subr.bf16.mxu0 %v5827_v50 }
 0x4f0   :  { %5387 = vmatpush3.bf16.msra.mxu1 %v5824_v44 }
 0x4f1   :  { %5388 = vmatprep.subr.bf16.mxu1 %v5828_v39 }
 0x4f2   :  { %2076 = vmatpush1.bf16.msra.mxu0 %v5825_v51 }
 0x4f3   :  { %2077 = vmatprep.subr.bf16.mxu0 %v5831_v52 }
 0x4f4   :  { %5389 = vmatpush3.bf16.msra.mxu1 %v5828_v39 }
 0x4f5   :  { %5390 = vmatprep.subr.bf16.mxu1 %v5832_v53 }
 0x4f6   :  { %2078 = vmatpush1.bf16.msra.mxu0 %v5829_v57 }
 0x4f7   :  { %2079 = vmatprep.subr.bf16.mxu0 %v5835_v3 }
 0x4f8   :  { %5391 = vmatpush3.bf16.msra.mxu1 %v5832_v53 }
 0x4f9   :  { %5392 = vmatprep.subr.bf16.mxu1 %v5836_v7 }
 0x4fa   :  { %2080 = vmatpush1.bf16.msra.mxu0 %v5833_v47 }
 0x4fc   :  { %5393 = vmatpush3.bf16.msra.mxu1 %v5836_v7 }
 0x5b0   :  { %v1702_v48 = vpop.f32.mrb[24].mxu0 }
 0x5b1   :  { %v1704_v5 = vpop.f32.mrb[25].mxu0  ;;  %v1776_v9 = vrot.slane %v1702_v48, 7 }
 0x5b2   :  { %v5376_v62 = vpop.f32.mrb[12].mxu1  ;;  %v1706_v60 = vpop.f32.mrb[26].mxu0 }
 0x5b3   :  { %v1777_v0 = vrot.slane %v1706_v60, 7  ;;  %v1755_v10 = vpop.f32.mrb[13].mxu1  ;;  %v1708_v61 = vpop.f32.mrb[27].mxu0  ;;  %v1798_v11 = vrot.slane %v5376_v62, 1 }
 0x5b4   :  { %v1795_v4 = vrot.slane %v1755_v10, 1  ;;  %v5377_v14 = vpop.f32.mrb[14].mxu1 }
 0x5b5   :  { %v1778_v2 = vsel %vm583_vm4, %v1776_v9, %v1777_v0  ;;  %v1800_v63 = vrot.slane %v5377_v14, 1  ;;  %v1758_v12 = vpop.f32.mrb[15].mxu1 }
 0x5b6   :  { %v1813_v15 = vadd.f32 %v1778_v2, %v1708_v61  ;;  %v1796_v59 = vrot.slane %v1758_v12, 1 }
 0x5b7   :  { %v1807_v13 = vsel %vm603_vm6, %v1800_v63, %v1795_v4  ;;  %v1801_v16 = vsel %vm603_vm6, %v1798_v11, %v1800_v63 }
 0x5b8   :  { %v1797_v19 = vsel %vm603_vm6, %v1795_v4, %v1796_v59  ;;  %v1799_v20 = vsel %vm603_vm6, %v1796_v59, %v1798_v11  ;;  %v1712_v21 = vpop.f32.mrb[28].mxu0  ;;  %v1811_v39 = vmul.f32 %v6270_v31, %v1807_v13 }
 0x5b9   :  { %v1809_v22 = vmul.f32 %v6254_v18, %v1799_v20  ;;  %v1779_v23 = vrot.slane %v1712_v21, 7  ;;  %v1714_v24 = vpop.f32.mrb[29].mxu0 }
 0x5ba   :  { %v1716_v25 = vpop.f32.mrb[30].mxu0 }
 0x5bb   :  { %v1817_v26 = vadd.f32 %v1813_v15, %v1809_v22  ;;  %v1780_v28 = vsel %vm583_vm4, %v1777_v0, %v1779_v23  ;;  %v1771_v33 = vrot.slane %v1716_v25, 7  ;;  %v1718_v35 = vpop.f32.mrb[31].mxu0 }
 0x5bc   :  { %v1789_v40 = vmul.f32 %v6262_v27, %v1780_v28 }
 0x5bd   :  { %v1786_v43 = vsel %vm583_vm4, %v1771_v33, %v1776_v9  ;;  %v1781_v44 = vsel %vm583_vm4, %v1779_v23, %v1771_v33  ;;  %v1825_v3 = vadd.f32 %v1823_v42, %v1817_v26 }
 0x5be   :  { %v1814_v49 = vadd.f32 %v1789_v40, %v1714_v24  ;;  %v1787_v50 = vmul.f32 %v6274_v34, %v1786_v43  ;;  %v1815_v51 = vadd.f32 %v1781_v44, %v1718_v35  ;;  %v6448_v43 = vsub.s32 4, %v6218_v45 }
 0x5bf   :  { %v6428_v62 = vadd.f32 %v1825_v3, %v6370_v58 }
 0x5c0   :  { %v1818_v52 = vadd.f32 %v1814_v49, %v1801_v16  ;;  %v1812_v53 = vadd.f32 %v1787_v50, %v1704_v5  ;;  %v1819_v57 = vadd.f32 %v1815_v51, %v1811_v39  ;;  %v1869_v44 = vrot.slane %v6395_v32, %v6448_v43 }
 0x5c1   :  { %v1877_v50 = vrot.slane %v6402_v38, %v6448_v43 }
 0x5c2   :  { %v1816_v7 = vadd.f32 %v1812_v53, %v1797_v19  ;;  %v1826_v47 = vadd.f32 %v1823_v42, %v1818_v52  ;;  %v1827_v9 = vadd.f32 %v1823_v42, %v1819_v57 }
 0x5c4   :  { %v1824_v48 = vadd.f32 %v1823_v42, %v1816_v7  ;;  %v6434_v0 = vadd.f32 %v1826_v47, %v6376_v8  ;;  %v6439_v5 = vadd.f32 %v1827_v9, %v6381_v6 }
 0x5c6   :  { %v6431_v60 = vadd.f32 %v1824_v48, %v6373_v29 }
 0x5c8   :  { %v1832_v10 = vadd.f32 %v6428_v62, %v6431_v60 }
 0x5ca   :  { %v1833_v61 = vadd.f32 %v1832_v10, %v6434_v0 }
 0x5cc   :  { %v1834_v4 = vadd.f32 %v1833_v61, %v6439_v5 }
 0x5ce   :  { %v1835_v14 = vrot.slane %v1834_v4, 4 }
 0x5d0   :  { %v1836_v58 = vadd.f32 %v1835_v14, %v1834_v4 }
 0x5d2   :  { %v1837_v11 = vrot.slane %v1836_v58, 2 }
 0x5d4   :  { %v1838_v2 = vadd.f32 %v1837_v11, %v1836_v58 }
 0x5d6   :  { %v1839_v29 = vrot.slane %v1838_v2, 1 }
 0x5d8   :  { %v1840_v63 = vadd.f32 %v1839_v29, %v1838_v2 }
 0x5da   :  { %v1841_v12 = vmul.f32 0.03125, %v1840_v63 }
 0x5dc   :  { %v1842_v8 = vsub.f32 %v6431_v60, %v1841_v12  ;;  %v1843_v15 = vsub.f32 %v6428_v62, %v1841_v12  ;;  %v1844_v59 = vsub.f32 %v6434_v0, %v1841_v12  ;;  %v1845_v6 = vsub.f32 %v6439_v5, %v1841_v12 }
 0x5de   :  { %v1846_v13 = vmul.f32 %v1842_v8, %v1842_v8  ;;  %v1847_v16 = vmul.f32 %v1843_v15, %v1843_v15  ;;  %v1848_v19 = vmul.f32 %v1844_v59, %v1844_v59  ;;  %v1849_v21 = vmul.f32 %v1845_v6, %v1845_v6 }
 0x5e0   :  { %v1850_v20 = vadd.f32 %v1847_v16, %v1846_v13 }
 0x5e2   :  { %v1851_v22 = vadd.f32 %v1850_v20, %v1848_v19 }
 0x5e4   :  { %v1852_v23 = vadd.f32 %v1851_v22, %v1849_v21 }
 0x5e6   :  { %v1853_v24 = vrot.slane %v1852_v23, 4 }
 0x5e8   :  { %v1854_v25 = vadd.f32 %v1853_v24, %v1852_v23 }
 0x5ea   :  { %v1855_v26 = vrot.slane %v1854_v25, 2 }
 0x5ec   :  { %v1856_v28 = vadd.f32 %v1855_v26, %v1854_v25 }
 0x5ee   :  { %v1857_v33 = vrot.slane %v1856_v28, 1 }
 0x5f0   :  { %v1858_v35 = vadd.f32 %v1857_v33, %v1856_v28  ;;  %v5839_v28 = vld [vmem:[#allocation2 + $0x3c4] ss:$12 sps:$4 sm:$0xff]   ;;  %v5837_v33 = vld [vmem:[#allocation2 + $0x3c0] ss:$12 sps:$4 sm:$0xff]  }
 0x5f1   :  { %2462 = vmatprep.subr.bf16.mxu0 %v5839_v28 }
 0x5f2   :  { %v1859_v40 = vmul.f32 0.03125, %v1858_v35  ;;  %v5840_v35 = vld [vmem:[#allocation2 + $0x3c8] ss:$12 sps:$4 sm:$0xff]  }
 0x5f3   :  { %5398 = vmatprep.subr.bf16.mxu1 %v5840_v35 }
 0x5f4   :  { %v1860_v42 = vadd.f32 1e-05, %v1859_v40  ;;  %v5843_v40 = vld [vmem:[#allocation2 + $0x3dc] ss:$12 sps:$4 sm:$0xff]  }
 0x5f6   :  { %5909 = vrsqrt.f32 %v1860_v42  ;;  %v5841_v42 = vld [vmem:[#allocation2 + $0x3d8] ss:$12 sps:$4 sm:$0xff]  }
 0x600   :  { %v5910_v49 = vpop.eup %5909 }
 0x601   :  { %v1865_v39 = vmul.f32 %v5910_v49, %v1845_v6  ;;  %v1862_v51 = vmul.f32 %v5910_v49, %v1842_v8  ;;  %v1863_v52 = vmul.f32 %v5910_v49, %v1843_v15  ;;  %v1864_v53 = vmul.f32 %v5910_v49, %v1844_v59  ;;  %v5847_v49 = vld [vmem:[#allocation2 + $0x3f4] ss:$12 sps:$4 sm:$0xff]  }
 0x603   :  { %v1873_v57 = vmul.f32 %v1869_v44, %v1865_v39  ;;  %v1870_v3 = vmul.f32 %v1869_v44, %v1862_v51  ;;  %v1871_v7 = vmul.f32 %v1869_v44, %v1863_v52  ;;  %v1872_v47 = vmul.f32 %v1869_v44, %v1864_v53  ;;  %v5844_v44 = vld [vmem:[#allocation2 + $0x3e0] ss:$12 sps:$4 sm:$0xff]   ;;  %v5848_v39 = vld [vmem:[#allocation2 + $0x3f8] ss:$12 sps:$4 sm:$0xff]   ;;  %v5852_v52 = vld [vmem:[#allocation2 + $0x410] ss:$12 sps:$4 sm:$0xff]  }
 0x604   :  { %v5851_v51 = vld [vmem:[#allocation2 + $0x40c] ss:$12 sps:$4 sm:$0xff]   ;;  %v5849_v53 = vld [vmem:[#allocation2 + $0x408] ss:$12 sps:$4 sm:$0xff]  }
 0x605   :  { %v1878_v48 = vadd.f32 %v1877_v50, %v1870_v3  ;;  %v1879_v9 = vadd.f32 %v1877_v50, %v1871_v7  ;;  %v1880_v10 = vadd.f32 %v1877_v50, %v1872_v47  ;;  %v1881_v61 = vadd.f32 %v1877_v50, %v1873_v57  ;;  %v5845_v50 = vld [vmem:[#allocation2 + $0x3f0] ss:$12 sps:$4 sm:$0xff]   ;;  %v5856_v3 = vld [vmem:[#allocation2 + $0x428] ss:$12 sps:$4 sm:$0xff]   ;;  %v5853_v7 = vld [vmem:[#allocation2 + $0x420] ss:$12 sps:$4 sm:$0xff]  }
 0x606   :  { %v5855_v57 = vld [vmem:[#allocation2 + $0x424] ss:$12 sps:$4 sm:$0xff]   ;;  %v5859_v47 = vld [vmem:[#allocation2 + $0x43c] ss:$12 sps:$4 sm:$0xff]  }
 0x607   :  { %v1886_v4 = vmul.f32 0.70710677, %v1878_v48  ;;  %v1887_v14 = vmul.f32 0.70710677, %v1879_v9  ;;  %v1888_v58 = vmul.f32 0.70710677, %v1880_v10 }
 0x608   :  { %v1889_v11 = vmul.f32 0.70710677, %v1881_v61  ;;  %v1882_v63 = vmul.f32 0.5, %v1878_v48  ;;  %v1883_v15 = vmul.f32 0.5, %v1879_v9  ;;  %v1884_v16 = vmul.f32 0.5, %v1880_v10 }
 0x609   :  { %5911 = verf.f32 %v1886_v4  ;;  %v1885_v21 = vmul.f32 0.5, %v1881_v61  ;;  %v5860_v48 = vld [vmem:[#allocation2 + $0x440] ss:$12 sps:$4 sm:$0xff]   ;;  %v5857_v9 = vld [vmem:[#allocation2 + $0x438] ss:$12 sps:$4 sm:$0xff]  }
 0x60a   :  { %5913 = verf.f32 %v1887_v14  ;;  %v5863_v10 = vld [vmem:[#allocation2 + $0x454] ss:$12 sps:$4 sm:$0xff]   ;;  %v5864_v61 = vld [vmem:[#allocation2 + $0x458] ss:$12 sps:$4 sm:$0xff]   ;;  %v5861_v4 = vld [vmem:[#allocation2 + $0x450] ss:$12 sps:$4 sm:$0xff]  }
 0x60b   :  { %5915 = verf.f32 %v1888_v58  ;;  %v5867_v14 = vld [vmem:[#allocation2 + $0x46c] ss:$12 sps:$4 sm:$0xff]   ;;  %v5868_v58 = vld [vmem:[#allocation2 + $0x470] ss:$12 sps:$4 sm:$0xff]  }
 0x60c   :  { %5917 = verf.f32 %v1889_v11  ;;  %v5865_v11 = vld [vmem:[#allocation2 + $0x468] ss:$12 sps:$4 sm:$0xff]  }
 0x613   :  { %v5912_v2 = vpop.eup %5911 }
 0x614   :  { %v5914_v29 = vpop.eup %5913  ;;  %v1894_v12 = vadd.f32 1.0, %v5912_v2 }
 0x615   :  { %v5916_v8 = vpop.eup %5915  ;;  %v1895_v59 = vadd.f32 1.0, %v5914_v29 }
 0x616   :  { %v5918_v6 = vpop.eup %5917  ;;  %v1898_v13 = vmul.f32 %v1894_v12, %v1882_v63  ;;  %v1896_v19 = vadd.f32 1.0, %v5916_v8 }
 0x617   :  { %v1899_v20 = vmul.f32 %v1895_v59, %v1883_v15  ;;  %v1897_v22 = vadd.f32 1.0, %v5918_v6 }
 0x618   :  { %v1900_v23 = vmul.f32 %v1896_v19, %v1884_v16 }
 0x619   :  { %v1902_v24 = vpack.c.bf16 %v1899_v20, %v1898_v13  ;;  %v1901_v25 = vmul.f32 %v1897_v22, %v1885_v21 }
 0x61b   :  { %2098 = vmatmul.mubr.bf16.vlgmr.msra.gmra.mrb[32].mxu0 %v1902_v24  ;;  %5394 = vmatprep.mubr.bf16.mxu1 %v1902_v24  ;;  %v1903_v26 = vpack.c.bf16 %v1901_v25, %v1900_v23 }
 0x61c   :  { %2107 = vmatprep.mubr.bf16.mxu0 %v6110_v1  ;;  %2463 = vmatpush1.bf16.msra.mxu0 %v5837_v33 }
 0x61d   :  { %5395 = vmatmul.mubr.bf16.vlgmr.msra.gmra.mrb[16].mxu1 %v1903_v26  ;;  %2464 = vmatprep.subr.bf16.mxu0 %v5843_v40 }
 0x61e   :  { %5399 = vmatpush3.bf16.msra.mxu1 %v5840_v35 }
 0x61f   :  { %5400 = vmatprep.subr.bf16.mxu1 %v5844_v44 }
 0x620   :  { %2465 = vmatpush1.bf16.msra.mxu0 %v5841_v42 }
 0x621   :  { %2466 = vmatprep.subr.bf16.mxu0 %v5847_v49 }
 0x622   :  { %5401 = vmatpush3.bf16.msra.mxu1 %v5844_v44 }
 0x623   :  { %2108 = vmatmul.mubr.bf16.gmra.mrb[36].mxu0 %v1903_v26  ;;  %5402 = vmatprep.subr.bf16.mxu1 %v5848_v39 }
 0x624   :  { %2494 = vmatprep.mubr.bf16.mxu0 %v6110_v1  ;;  %2467 = vmatpush1.bf16.msra.mxu0 %v5845_v50 }
 0x625   :  { %2468 = vmatprep.subr.bf16.mxu0 %v5851_v51 }
 0x626   :  { %5403 = vmatpush3.bf16.msra.mxu1 %v5848_v39 }
 0x627   :  { %5404 = vmatprep.subr.bf16.mxu1 %v5852_v52 }
 0x628   :  { %2469 = vmatpush1.bf16.msra.mxu0 %v5849_v53 }
 0x629   :  { %2470 = vmatprep.subr.bf16.mxu0 %v5855_v57  ;;  %v2220_v57 = vrot.slane %v6419_v41, %v6448_v43 }
 0x62a   :  { %5405 = vmatpush3.bf16.msra.mxu1 %v5852_v52 }
 0x62b   :  { %5406 = vmatprep.subr.bf16.mxu1 %v5856_v3 }
 0x62c   :  { %2471 = vmatpush1.bf16.msra.mxu0 %v5853_v7 }
 0x62d   :  { %2472 = vmatprep.subr.bf16.mxu0 %v5859_v47 }
 0x62e   :  { %5407 = vmatpush3.bf16.msra.mxu1 %v5856_v3 }
 0x62f   :  { %5408 = vmatprep.subr.bf16.mxu1 %v5860_v48 }
 0x630   :  { %2473 = vmatpush1.bf16.msra.mxu0 %v5857_v9 }
 0x631   :  { %2474 = vmatprep.subr.bf16.mxu0 %v5863_v10 }
 0x632   :  { %5409 = vmatpush3.bf16.msra.mxu1 %v5860_v48 }
 0x633   :  { %5410 = vmatprep.subr.bf16.mxu1 %v5864_v61 }
 0x634   :  { %2475 = vmatpush1.bf16.msra.mxu0 %v5861_v4 }
 0x635   :  { %2476 = vmatprep.subr.bf16.mxu0 %v5867_v14 }
 0x636   :  { %5411 = vmatpush3.bf16.msra.mxu1 %v5864_v61 }
 0x637   :  { %5412 = vmatprep.subr.bf16.mxu1 %v5868_v58 }
 0x638   :  { %2477 = vmatpush1.bf16.msra.mxu0 %v5865_v11 }
 0x63a   :  { %5413 = vmatpush3.bf16.msra.mxu1 %v5868_v58 }
 0x6ee   :  { %v2099_v2 = vpop.f32.mrb[32].mxu0 }
 0x6ef   :  { %v2101_v29 = vpop.f32.mrb[33].mxu0  ;;  %v2173_v8 = vrot.slane %v2099_v2, 7 }
 0x6f0   :  { %v5396_v63 = vpop.f32.mrb[16].mxu1  ;;  %v2103_v12 = vpop.f32.mrb[34].mxu0 }
 0x6f1   :  { %v2174_v15 = vrot.slane %v2103_v12, 7  ;;  %v2152_v59 = vpop.f32.mrb[17].mxu1  ;;  %v2105_v6 = vpop.f32.mrb[35].mxu0  ;;  %v2195_v19 = vrot.slane %v5396_v63, 1 }
 0x6f2   :  { %v2192_v13 = vrot.slane %v2152_v59, 1  ;;  %v5397_v16 = vpop.f32.mrb[18].mxu1 }
 0x6f3   :  { %v2175_v20 = vsel %vm583_vm4, %v2173_v8, %v2174_v15  ;;  %v2197_v21 = vrot.slane %v5397_v16, 1  ;;  %v2155_v22 = vpop.f32.mrb[19].mxu1 }
 0x6f4   :  { %v2210_v23 = vadd.f32 %v2175_v20, %v2105_v6  ;;  %v2193_v24 = vrot.slane %v2155_v22, 1 }
 0x6f5   :  { %v2204_v25 = vsel %vm603_vm6, %v2197_v21, %v2192_v13  ;;  %v2198_v26 = vsel %vm603_vm6, %v2195_v19, %v2197_v21 }
 0x6f6   :  { %v2194_v28 = vsel %vm603_vm6, %v2192_v13, %v2193_v24  ;;  %v2196_v33 = vsel %vm603_vm6, %v2193_v24, %v2195_v19  ;;  %v2109_v35 = vpop.f32.mrb[36].mxu0  ;;  %v2208_v9 = vmul.f32 %v6270_v31, %v2204_v25 }
 0x6f7   :  { %v2206_v40 = vmul.f32 %v6254_v18, %v2196_v33  ;;  %v2176_v42 = vrot.slane %v2109_v35, 7  ;;  %v2111_v44 = vpop.f32.mrb[37].mxu0 }
 0x6f8   :  { %v2113_v49 = vpop.f32.mrb[38].mxu0 }
 0x6f9   :  { %v2214_v50 = vadd.f32 %v2210_v23, %v2206_v40  ;;  %v2177_v39 = vsel %vm583_vm4, %v2174_v15, %v2176_v42  ;;  %v2168_v51 = vrot.slane %v2113_v49, 7  ;;  %v2115_v52 = vpop.f32.mrb[39].mxu0 }
 0x6fa   :  { %v2186_v53 = vmul.f32 %v6262_v27, %v2177_v39 }
 0x6fb   :  { %v2183_v3 = vsel %vm583_vm4, %v2168_v51, %v2173_v8  ;;  %v2178_v7 = vsel %vm583_vm4, %v2176_v42, %v2168_v51  ;;  %v2222_v58 = vadd.f32 %v2220_v57, %v2214_v50 }
 0x6fc   :  { %v2211_v47 = vadd.f32 %v2186_v53, %v2111_v44  ;;  %v2184_v48 = vmul.f32 %v6274_v34, %v2183_v3  ;;  %v2212_v10 = vadd.f32 %v2178_v7, %v2115_v52  ;;  %v6491_v7 = vsub.s32 5, %v6218_v45 }
 0x6fd   :  { %v6471_v12 = vadd.f32 %v2222_v58, %v6428_v62 }
 0x6fe   :  { %v2215_v61 = vadd.f32 %v2211_v47, %v2198_v26  ;;  %v2209_v4 = vadd.f32 %v2184_v48, %v2101_v29  ;;  %v2216_v14 = vadd.f32 %v2212_v10, %v2208_v9  ;;  %v2266_v47 = vrot.slane %v6395_v32, %v6491_v7 }
 0x6ff   :  { %v2274_v9 = vrot.slane %v6402_v38, %v6491_v7 }
 0x700   :  { %v2213_v11 = vadd.f32 %v2209_v4, %v2194_v28  ;;  %v2223_v2 = vadd.f32 %v2220_v57, %v2215_v61  ;;  %v2224_v15 = vadd.f32 %v2220_v57, %v2216_v14 }
 0x702   :  { %v2221_v63 = vadd.f32 %v2220_v57, %v2213_v11  ;;  %v6477_v59 = vadd.f32 %v2223_v2, %v6434_v0  ;;  %v6482_v29 = vadd.f32 %v2224_v15, %v6439_v5 }
 0x704   :  { %v6474_v8 = vadd.f32 %v2221_v63, %v6431_v60 }
 0x706   :  { %v2229_v6 = vadd.f32 %v6471_v12, %v6474_v8 }
 0x708   :  { %v2230_v13 = vadd.f32 %v2229_v6, %v6477_v59 }
 0x70a   :  { %v2231_v16 = vadd.f32 %v2230_v13, %v6482_v29 }
 0x70c   :  { %v2232_v19 = vrot.slane %v2231_v16, 4 }
 0x70e   :  { %v2233_v62 = vadd.f32 %v2232_v19, %v2231_v16 }
 0x710   :  { %v2234_v20 = vrot.slane %v2233_v62, 2 }
 0x712   :  { %v2235_v21 = vadd.f32 %v2234_v20, %v2233_v62 }
 0x714   :  { %v2236_v60 = vrot.slane %v2235_v21, 1 }
 0x716   :  { %v2237_v22 = vadd.f32 %v2236_v60, %v2235_v21 }
 0x718   :  { %v2238_v23 = vmul.f32 0.03125, %v2237_v22 }
 0x71a   :  { %v2239_v0 = vsub.f32 %v6474_v8, %v2238_v23  ;;  %v2240_v24 = vsub.f32 %v6471_v12, %v2238_v23  ;;  %v2241_v25 = vsub.f32 %v6477_v59, %v2238_v23  ;;  %v2242_v5 = vsub.f32 %v6482_v29, %v2238_v23 }
 0x71c   :  { %v2243_v26 = vmul.f32 %v2239_v0, %v2239_v0  ;;  %v2244_v28 = vmul.f32 %v2240_v24, %v2240_v24  ;;  %v2245_v33 = vmul.f32 %v2241_v25, %v2241_v25  ;;  %v2246_v40 = vmul.f32 %v2242_v5, %v2242_v5 }
 0x71e   :  { %v2247_v35 = vadd.f32 %v2244_v28, %v2243_v26 }
 0x720   :  { %v2248_v42 = vadd.f32 %v2247_v35, %v2245_v33 }
 0x722   :  { %v2249_v44 = vadd.f32 %v2248_v42, %v2246_v40 }
 0x724   :  { %v2250_v49 = vrot.slane %v2249_v44, 4 }
 0x726   :  { %v2251_v50 = vadd.f32 %v2250_v49, %v2249_v44 }
 0x728   :  { %v2252_v39 = vrot.slane %v2251_v50, 2 }
 0x72a   :  { %v2253_v51 = vadd.f32 %v2252_v39, %v2251_v50  ;;  %v2698_v39 = vld [vmem:[#allocation5] sm:$0xf] }
 0x72c   :  { %v2254_v52 = vrot.slane %v2253_v51, 1 }
 0x72e   :  { %v2255_v53 = vadd.f32 %v2254_v52, %v2253_v51  ;;  %v2699_v51 = vld [vmem:[#allocation5 + $0x20] sm:$0xf] }
 0x72f   :  { %v5072_v52 = vcombine.low %v2698_v39, %v2699_v51 }
 0x730   :  { %v2256_v57 = vmul.f32 0.03125, %v2255_v53  ;;  %v2700_v53 = vld [vmem:[#allocation5 + $0x40] sm:$0xf] }
 0x731   :  { %5418 = vmatprep.subr.bf16.mxu0 %v5072_v52 }
 0x732   :  { %v2257_v3 = vadd.f32 1e-05, %v2256_v57  ;;  %v2701_v57 = vld [vmem:[#allocation5 + $0x60] sm:$0xf] }
 0x734   :  { %5919 = vrsqrt.f32 %v2257_v3  ;;  %v5073_v3 = vcombine.low %v2700_v53, %v2701_v57 }
 0x73e   :  { %v5920_v48 = vpop.eup %5919 }
 0x73f   :  { %v2262_v10 = vmul.f32 %v5920_v48, %v2242_v5  ;;  %v2259_v61 = vmul.f32 %v5920_v48, %v2239_v0  ;;  %v2260_v4 = vmul.f32 %v5920_v48, %v2240_v24  ;;  %v2261_v14 = vmul.f32 %v5920_v48, %v2241_v25  ;;  %v2703_v48 = vld [vmem:[#allocation5 + $0xa0] sm:$0xf] }
 0x741   :  { %v2270_v58 = vmul.f32 %v2266_v47, %v2262_v10  ;;  %v2267_v11 = vmul.f32 %v2266_v47, %v2259_v61  ;;  %v2268_v2 = vmul.f32 %v2266_v47, %v2260_v4  ;;  %v2269_v63 = vmul.f32 %v2266_v47, %v2261_v14  ;;  %v2702_v47 = vld [vmem:[#allocation5 + $0x80] sm:$0xf] }
 0x742   :  { %v2704_v10 = vld [vmem:[#allocation5 + $0xc0] sm:$0xf] }
 0x743   :  { %v2275_v15 = vadd.f32 %v2274_v9, %v2267_v11  ;;  %v2276_v6 = vadd.f32 %v2274_v9, %v2268_v2  ;;  %v2277_v13 = vadd.f32 %v2274_v9, %v2269_v63  ;;  %v2278_v16 = vadd.f32 %v2274_v9, %v2270_v58  ;;  %v2705_v61 = vld [vmem:[#allocation5 + $0xe0] sm:$0xf] }
 0x744   :  { %v5074_v9 = vcombine.low %v2702_v47, %v2703_v48  ;;  %v2706_v4 = vld [vmem:[#allocation5 + $0x100] sm:$0xf] }
 0x745   :  { %v2283_v19 = vmul.f32 0.70710677, %v2275_v15  ;;  %v2284_v62 = vmul.f32 0.70710677, %v2276_v6  ;;  %v2285_v20 = vmul.f32 0.70710677, %v2277_v13 }
 0x746   :  { %v2286_v32 = vmul.f32 0.70710677, %v2278_v16  ;;  %v2279_v60 = vmul.f32 0.5, %v2275_v15  ;;  %v2280_v0 = vmul.f32 0.5, %v2276_v6  ;;  %v2281_v26 = vmul.f32 0.5, %v2277_v13 }
 0x747   :  { %5921 = verf.f32 %v2283_v19  ;;  %v2282_v35 = vmul.f32 0.5, %v2278_v16  ;;  %v2707_v14 = vld [vmem:[#allocation5 + $0x120] sm:$0xf] }
 0x748   :  { %5923 = verf.f32 %v2284_v62  ;;  %v2708_v58 = vld [vmem:[#allocation5 + $0x140] sm:$0xf]  ;;  %v5076_v11 = vcombine.low %v2706_v4, %v2707_v14 }
 0x749   :  { %5925 = verf.f32 %v2285_v20  ;;  %v2709_v2 = vld [vmem:[#allocation5 + $0x160] sm:$0xf] }
 0x74a   :  { %5927 = verf.f32 %v2286_v32  ;;  %v5077_v63 = vcombine.low %v2708_v58, %v2709_v2  ;;  %v2710_v15 = vld [vmem:[#allocation5 + $0x180] sm:$0xf] }
 0x74b   :  { %v2711_v6 = vld [vmem:[#allocation5 + $0x1a0] sm:$0xf] }
 0x74c   :  { %v5078_v13 = vcombine.low %v2710_v15, %v2711_v6  ;;  %v2712_v16 = vld [vmem:[#allocation5 + $0x1c0] sm:$0xf] }
 0x74d   :  { %v2713_v19 = vld [vmem:[#allocation5 + $0x1e0] sm:$0xf] }
 0x74e   :  { %v5079_v62 = vcombine.low %v2712_v16, %v2713_v19 }
 0x751   :  { %v5922_v38 = vpop.eup %5921 }
 0x752   :  { %v5924_v21 = vpop.eup %5923  ;;  %v2291_v22 = vadd.f32 1.0, %v5922_v38 }
 0x753   :  { %v5926_v23 = vpop.eup %5925  ;;  %v2292_v24 = vadd.f32 1.0, %v5924_v21 }
 0x754   :  { %v5928_v25 = vpop.eup %5927  ;;  %v2295_v5 = vmul.f32 %v2291_v22, %v2279_v60  ;;  %v2293_v28 = vadd.f32 1.0, %v5926_v23 }
 0x755   :  { %v2296_v33 = vmul.f32 %v2292_v24, %v2280_v0  ;;  %v2294_v40 = vadd.f32 1.0, %v5928_v25 }
 0x756   :  { %v2297_v42 = vmul.f32 %v2293_v28, %v2281_v26 }
 0x757   :  { %v2299_v44 = vpack.c.bf16 %v2296_v33, %v2295_v5  ;;  %v2298_v49 = vmul.f32 %v2294_v40, %v2282_v35 }
 0x759   :  { %2495 = vmatmul.mubr.bf16.vlgmr.msra.gmra.mrb[40].mxu0 %v2299_v44  ;;  %5414 = vmatprep.mubr.bf16.mxu1 %v2299_v44  ;;  %v2300_v50 = vpack.c.bf16 %v2298_v49, %v2297_v42 }
 0x75a   :  { %2504 = vmatprep.mubr.bf16.mxu0 %v6110_v1  ;;  %5419 = vmatpush3.bf16.msra.mxu0 %v5072_v52  ;;  %v5075_v1 = vcombine.low %v2704_v10, %v2705_v61  ;;  %v2617_v61 = vrot.slane %v6419_v41, %v6491_v7 }
 0x75b   :  { %5415 = vmatmul.mubr.bf16.vlgmr.msra.gmra.mrb[20].mxu1 %v2300_v50  ;;  %5420 = vmatprep.subr.bf16.mxu0 %v5073_v3 }
 0x75e   :  { %5421 = vmatpush3.bf16.msra.mxu0 %v5073_v3 }
 0x75f   :  { %5422 = vmatprep.subr.bf16.mxu0 %v5074_v9 }
 0x761   :  { %2505 = vmatmul.mubr.bf16.gmra.mrb[44].mxu0 %v2300_v50 }
 0x762   :  { %5423 = vmatpush3.bf16.msra.mxu0 %v5074_v9 }
 0x763   :  { %5424 = vmatprep.subr.bf16.mxu0 %v5075_v1 }
 0x766   :  { %5425 = vmatpush3.bf16.msra.mxu0 %v5075_v1 }
 0x767   :  { %5426 = vmatprep.subr.bf16.mxu0 %v5076_v11 }
 0x76a   :  { %5427 = vmatpush3.bf16.msra.mxu0 %v5076_v11 }
 0x76b   :  { %5428 = vmatprep.subr.bf16.mxu0 %v5077_v63 }
 0x76e   :  { %5429 = vmatpush3.bf16.msra.mxu0 %v5077_v63 }
 0x76f   :  { %5430 = vmatprep.subr.bf16.mxu0 %v5078_v13 }
 0x772   :  { %5431 = vmatpush3.bf16.msra.mxu0 %v5078_v13 }
 0x773   :  { %5432 = vmatprep.subr.bf16.mxu0 %v5079_v62 }
 0x776   :  { %5433 = vmatpush3.bf16.msra.mxu0 %v5079_v62 }
 0x82c   :  { %v2496_v20 = vpop.f32.mrb[40].mxu0 }
 0x82d   :  { %v2498_v32 = vpop.f32.mrb[41].mxu0  ;;  %v2570_v60 = vrot.slane %v2496_v20, 7 }
 0x82e   :  { %v5416_v38 = vpop.f32.mrb[20].mxu1  ;;  %v2500_v21 = vpop.f32.mrb[42].mxu0 }
 0x82f   :  { %v2571_v22 = vrot.slane %v2500_v21, 7  ;;  %v2549_v23 = vpop.f32.mrb[21].mxu1  ;;  %v2502_v0 = vpop.f32.mrb[43].mxu0  ;;  %v2592_v5 = vrot.slane %v5416_v38, 1 }
 0x830   :  { %v2589_v24 = vrot.slane %v2549_v23, 1  ;;  %v5417_v25 = vpop.f32.mrb[22].mxu1 }
 0x831   :  { %v2572_v26 = vsel %vm583_vm4, %v2570_v60, %v2571_v22  ;;  %v2594_v28 = vrot.slane %v5417_v25, 1  ;;  %v2552_v33 = vpop.f32.mrb[23].mxu1 }
 0x832   :  { %v2607_v35 = vadd.f32 %v2572_v26, %v2502_v0  ;;  %v2590_v40 = vrot.slane %v2552_v33, 1 }
 0x833   :  { %v2601_v42 = vsel %vm603_vm6, %v2594_v28, %v2589_v24  ;;  %v2595_v44 = vsel %vm603_vm6, %v2592_v5, %v2594_v28 }
 0x834   :  { %v2591_v49 = vsel %vm603_vm6, %v2589_v24, %v2590_v40  ;;  %v2593_v50 = vsel %vm603_vm6, %v2590_v40, %v2592_v5  ;;  %v2506_v39 = vpop.f32.mrb[44].mxu0  ;;  %v2605_v58 = vmul.f32 %v6270_v31, %v2601_v42 }
 0x835   :  { %v2603_v51 = vmul.f32 %v6254_v18, %v2593_v50  ;;  %v2573_v52 = vrot.slane %v2506_v39, 7  ;;  %v2508_v53 = vpop.f32.mrb[45].mxu0 }
 0x836   :  { %v2510_v57 = vpop.f32.mrb[46].mxu0 }
 0x837   :  { %v2611_v3 = vadd.f32 %v2607_v35, %v2603_v51  ;;  %v2574_v47 = vsel %vm583_vm4, %v2571_v22, %v2573_v52  ;;  %v2565_v48 = vrot.slane %v2510_v57, 7  ;;  %v2512_v9 = vpop.f32.mrb[47].mxu0 }
 0x838   :  { %v2583_v10 = vmul.f32 %v6262_v27, %v2574_v47 }
 0x839   :  { %v2580_v1 = vsel %vm583_vm4, %v2565_v48, %v2570_v60  ;;  %v2575_v4 = vsel %vm583_vm4, %v2573_v52, %v2565_v48  ;;  %v2619_v6 = vadd.f32 %v2617_v61, %v2611_v3  ;;  %v6519_v3 = vld [vmem:[%s6898_s3] sm:$0xff] }
 0x83a   :  { %v2608_v14 = vadd.f32 %v2583_v10, %v2508_v53  ;;  %v2581_v18 = vmul.f32 %v6274_v34, %v2580_v1  ;;  %v2609_v11 = vadd.f32 %v2575_v4, %v2512_v9  ;;  %v2663_v47 = vrot.slane %v6519_v3, %v6221_v46 }
 0x83b   :  { %v2623_v19 = vadd.f32 %v2619_v6, %v6471_v12  ;;  %v2671_v9 = vrot.slane %v6519_v3, %v6304_v36 }
 0x83c   :  { %v2612_v2 = vadd.f32 %v2608_v14, %v2595_v44  ;;  %v2606_v63 = vadd.f32 %v2581_v18, %v2498_v32  ;;  %v2613_v15 = vadd.f32 %v2609_v11, %v2605_v58 }
 0x83e   :  { %v2610_v13 = vadd.f32 %v2606_v63, %v2591_v49  ;;  %v2620_v16 = vadd.f32 %v2617_v61, %v2612_v2  ;;  %v2621_v62 = vadd.f32 %v2617_v61, %v2613_v15 }
 0x840   :  { %v2618_v27 = vadd.f32 %v2617_v61, %v2610_v13  ;;  %v2624_v20 = vadd.f32 %v2620_v16, %v6477_v59  ;;  %v2625_v34 = vadd.f32 %v2621_v62, %v6482_v29 }
 0x842   :  { %v2622_v41 = vadd.f32 %v2618_v27, %v6474_v8 }
 0x844   :  { %v2626_v38 = vadd.f32 %v2623_v19, %v2622_v41 }
 0x846   :  { %v2627_v21 = vadd.f32 %v2626_v38, %v2624_v20 }
 0x848   :  { %v2628_v31 = vadd.f32 %v2627_v21, %v2625_v34 }
 0x84a   :  { %v2629_v60 = vrot.slane %v2628_v31, 4 }
 0x84c   :  { %v2630_v22 = vadd.f32 %v2629_v60, %v2628_v31 }
 0x84e   :  { %v2631_v32 = vrot.slane %v2630_v22, 2 }
 0x850   :  { %v2632_v23 = vadd.f32 %v2631_v32, %v2630_v22 }
 0x852   :  { %v2633_v0 = vrot.slane %v2632_v23, 1 }
 0x854   :  { %v2634_v24 = vadd.f32 %v2633_v0, %v2632_v23 }
 0x856   :  { %v2635_v25 = vmul.f32 0.03125, %v2634_v24 }
 0x858   :  { %v2636_v5 = vsub.f32 %v2622_v41, %v2635_v25  ;;  %v2637_v26 = vsub.f32 %v2623_v19, %v2635_v25  ;;  %v2638_v12 = vsub.f32 %v2624_v20, %v2635_v25  ;;  %v2639_v28 = vsub.f32 %v2625_v34, %v2635_v25 }
 0x85a   :  { %v2640_v8 = vmul.f32 %v2636_v5, %v2636_v5  ;;  %v2641_v33 = vmul.f32 %v2637_v26, %v2637_v26  ;;  %v2642_v35 = vmul.f32 %v2638_v12, %v2638_v12  ;;  %v2643_v40 = vmul.f32 %v2639_v28, %v2639_v28 }
 0x85c   :  { %v2644_v59 = vadd.f32 %v2641_v33, %v2640_v8  ;;  %v2915_v8 = vld [vmem:[#allocation5 + $0x4] sm:$0xf] }
 0x85d   :  { %v2916_v33 = vld [vmem:[#allocation5 + $0x24] sm:$0xf] }
 0x85e   :  { %v2645_v42 = vadd.f32 %v2644_v59, %v2642_v35  ;;  %v5080_v35 = vcombine.low %v2915_v8, %v2916_v33  ;;  %v3092_v59 = vld [vmem:[#allocation5 + $0xc] sm:$0xf] }
 0x860   :  { %v2646_v29 = vadd.f32 %v2645_v42, %v2643_v40  ;;  %v3093_v40 = vld [vmem:[#allocation5 + $0x2c] sm:$0xf]  ;;  %5438 = vmatprep.subr.bf16.mxu1 %v5080_v35 }
 0x861   :  { %v5092_v42 = vcombine.low %v3092_v59, %v3093_v40  ;;  %5439 = vmatpush3.bf16.msra.mxu1 %v5080_v35 }
 0x862   :  { %v2647_v44 = vrot.slane %v2646_v29, 4 }
 0x863   :  { %5462 = vmatprep.subr.bf16.mxu0 %v5092_v42 }
 0x864   :  { %v2648_v49 = vadd.f32 %v2647_v44, %v2646_v29  ;;  %v2917_v29 = vld [vmem:[#allocation5 + $0x44] sm:$0xf] }
 0x865   :  { %v2918_v44 = vld [vmem:[#allocation5 + $0x64] sm:$0xf] }
 0x866   :  { %v2649_v50 = vrot.slane %v2648_v49, 2 }
 0x868   :  { %v2650_v39 = vadd.f32 %v2649_v50, %v2648_v49  ;;  %v5081_v49 = vcombine.low %v2917_v29, %v2918_v44  ;;  %v3094_v50 = vld [vmem:[#allocation5 + $0x4c] sm:$0xf] }
 0x86a   :  { %v2651_v51 = vrot.slane %v2650_v39, 1  ;;  %5440 = vmatprep.subr.bf16.mxu1 %v5081_v49 }
 0x86b   :  { %5441 = vmatpush3.bf16.msra.mxu1 %v5081_v49 }
 0x86c   :  { %v2652_v52 = vadd.f32 %v2651_v51, %v2650_v39  ;;  %v3095_v39 = vld [vmem:[#allocation5 + $0x6c] sm:$0xf] }
 0x86d   :  { %v5093_v51 = vcombine.low %v3094_v50, %v3095_v39 }
 0x86e   :  { %v2653_v53 = vmul.f32 0.03125, %v2652_v52  ;;  %v2919_v52 = vld [vmem:[#allocation5 + $0x84] sm:$0xf] }
 0x870   :  { %v2654_v57 = vadd.f32 1e-05, %v2653_v53  ;;  %v2920_v53 = vld [vmem:[#allocation5 + $0xa4] sm:$0xf] }
 0x872   :  { %5929 = vrsqrt.f32 %v2654_v57  ;;  %v5082_v57 = vcombine.low %v2919_v52, %v2920_v53 }
 0x874   :  { %5442 = vmatprep.subr.bf16.mxu1 %v5082_v57 }
 0x875   :  { %5443 = vmatpush3.bf16.msra.mxu1 %v5082_v57 }
 0x87c   :  { %v5930_v48 = vpop.eup %5929 }
 0x87d   :  { %v2658_v10 = vmul.f32 %v5930_v48, %v2638_v12  ;;  %v2659_v61 = vmul.f32 %v5930_v48, %v2639_v28  ;;  %v2656_v1 = vmul.f32 %v5930_v48, %v2636_v5  ;;  %v2657_v4 = vmul.f32 %v5930_v48, %v2637_v26  ;;  %v3097_v48 = vld [vmem:[#allocation5 + $0xac] sm:$0xf] }
 0x87f   :  { %v2667_v14 = vmul.f32 %v2663_v47, %v2659_v61  ;;  %v2664_v18 = vmul.f32 %v2663_v47, %v2656_v1  ;;  %v2665_v58 = vmul.f32 %v2663_v47, %v2657_v4  ;;  %v2666_v11 = vmul.f32 %v2663_v47, %v2658_v10  ;;  %v3096_v47 = vld [vmem:[#allocation5 + $0x8c] sm:$0xf]  ;;  %v2921_v10 = vld [vmem:[#allocation5 + $0xc4] sm:$0xf] }
 0x880   :  { %v2922_v61 = vld [vmem:[#allocation5 + $0xe4] sm:$0xf]  ;;  %v3098_v4 = vld [vmem:[#allocation5 + $0xcc] sm:$0xf] }
 0x881   :  { %v2675_v2 = vadd.f32 %v2671_v9, %v2667_v14  ;;  %v2672_v63 = vadd.f32 %v2671_v9, %v2664_v18  ;;  %v2673_v15 = vadd.f32 %v2671_v9, %v2665_v58  ;;  %v2674_v6 = vadd.f32 %v2671_v9, %v2666_v11  ;;  %v3099_v14 = vld [vmem:[#allocation5 + $0xec] sm:$0xf]  ;;  %v3007_v58 = vld [vmem:[#allocation5 + $0x8] sm:$0xf] }
 0x882   :  { %v5094_v9 = vcombine.low %v3096_v47, %v3097_v48  ;;  %v5083_v1 = vcombine.low %v2921_v10, %v2922_v61  ;;  %v5095_v18 = vcombine.low %v3098_v4, %v3099_v14  ;;  %v3008_v11 = vld [vmem:[#allocation5 + $0x28] sm:$0xf] }
 0x883   :  { %v2683_v13 = vmul.f32 0.70710677, %v2675_v2  ;;  %v2680_v16 = vmul.f32 0.70710677, %v2672_v63  ;;  %v2681_v27 = vmul.f32 0.70710677, %v2673_v15 }
 0x884   :  { %v2682_v19 = vmul.f32 0.70710677, %v2674_v6  ;;  %v2676_v34 = vmul.f32 0.5, %v2672_v63  ;;  %v2679_v31 = vmul.f32 0.5, %v2675_v2  ;;  %v2677_v22 = vmul.f32 0.5, %v2673_v15  ;;  %5444 = vmatprep.subr.bf16.mxu1 %v5083_v1 }
 0x885   :  { %5931 = verf.f32 %v2683_v13  ;;  %v2678_v0 = vmul.f32 0.5, %v2674_v6  ;;  %5445 = vmatpush3.bf16.msra.mxu1 %v5083_v1  ;;  %v5086_v2 = vcombine.low %v3007_v58, %v3008_v11  ;;  %v2836_v63 = vand.u32 1, %v6246_v56  ;;  %v3009_v48 = vld [vmem:[#allocation5 + $0x48] sm:$0xf] }
 0x886   :  { %5933 = verf.f32 %v2680_v16  ;;  %v2815_v15 = vand.u32 1, %v6218_v45  ;;  %v2822_v6 = vand.u32 1, %v6240_v54  ;;  %v2829_v16 = vand.u32 1, %v6243_v55  ;;  %v3011_v14 = vld [vmem:[#allocation5 + $0x88] sm:$0xf] }
 0x887   :  { %5935 = verf.f32 %v2681_v27  ;;  %5450 = vmatprep.subr.bf16.mxu1 %v5086_v2  ;;  %vm6530_vm10 = vcmp.eq.s32.totalorder %v2836_v63, 0  ;;  %v3013_v11 = vld [vmem:[#allocation5 + $0xc8] sm:$0xf] }
 0x888   :  { %5937 = verf.f32 %v2682_v19  ;;  %vm6534_vm11 = vcmp.eq.s32.totalorder %v2815_v15, 0  ;;  %vm6538_vm12 = vcmp.eq.s32.totalorder %v2822_v6, 0  ;;  %vm6544_vm13 = vcmp.eq.s32.totalorder %v2829_v16, 0  ;;  %v3014_v63 = vld [vmem:[#allocation5 + $0xe8] sm:$0xf] }
 0x889   :  { %v5089_v15 = vcombine.low %v3013_v11, %v3014_v63  ;;  %v2926_v6 = vrot.slane %v6519_v3, %v6390_v30 }
 0x88f   :  { %v5932_v41 = vpop.eup %5931 }
 0x890   :  { %v5934_v62 = vpop.eup %5933  ;;  %v2691_v20 = vadd.f32 1.0, %v5932_v41 }
 0x891   :  { %v5936_v38 = vpop.eup %5935  ;;  %v2688_v21 = vadd.f32 1.0, %v5934_v62 }
 0x892   :  { %v5938_v60 = vpop.eup %5937  ;;  %v2689_v32 = vadd.f32 1.0, %v5936_v38  ;;  %v2695_v25 = vmul.f32 %v2691_v20, %v2679_v31 }
 0x893   :  { %v2692_v23 = vmul.f32 %v2688_v21, %v2676_v34  ;;  %v2690_v24 = vadd.f32 1.0, %v5938_v60  ;;  %v2908_v60 = vrot.slane %v6519_v3, %v6347_v37 }
 0x894   :  { %v2693_v5 = vmul.f32 %v2689_v32, %v2677_v22 }
 0x895   :  { %v2694_v26 = vmul.f32 %v2690_v24, %v2678_v0 }
 0x896   :  { %v2696_v12 = vpack.c.bf16 %v2693_v5, %v2692_v23 }
 0x897   :  { %v2697_v28 = vpack.c.bf16 %v2695_v25, %v2694_v26 }
 0x898   :  { %5434 = vmatprep.mubr.bf16.mxu0 %v2696_v12 }
 0x899   :  { %5435 = vmatmul.mubr.bf16.vlgmr.msra.gmra.mrb[48].mxu0 %v2697_v28 }
 0x89a   :  { %5463 = vmatpush3.bf16.msra.mxu0 %v5092_v42 }
 0x89b   :  { %5464 = vmatprep.subr.bf16.mxu0 %v5093_v51 }
 0x89e   :  { %5465 = vmatpush3.bf16.msra.mxu0 %v5093_v51 }
 0x89f   :  { %5466 = vmatprep.subr.bf16.mxu0 %v5094_v9 }
 0x8a2   :  { %5467 = vmatpush3.bf16.msra.mxu0 %v5094_v9  ;;  %v3010_v9 = vld [vmem:[#allocation5 + $0x68] sm:$0xf] }
 0x8a3   :  { %5468 = vmatprep.subr.bf16.mxu0 %v5095_v18  ;;  %v5087_v4 = vcombine.low %v3009_v48, %v3010_v9 }
 0x8a6   :  { %5469 = vmatpush3.bf16.msra.mxu0 %v5095_v18  ;;  %v3012_v18 = vld [vmem:[#allocation5 + $0xa8] sm:$0xf] }
 0x8a7   :  { %5498 = vmatprep.subr.bf16.mxu0 %v6113_v17  ;;  %v5088_v58 = vcombine.low %v3011_v14, %v3012_v18 }
 0x96c   :  { %v5436_v13 = vpop.f32.mrb[48].mxu0 }
 0x96d   :  { %v2796_v27 = vpop.f32.mrb[49].mxu0  ;;  %v2870_v54 = vrot.slane %v5436_v13, 1  ;;  %v2885_v34 = vrot.slane %v5436_v13, 7 }
 0x96e   :  { %v2867_v41 = vrot.slane %v2796_v27, 1  ;;  %v2882_v62 = vrot.slane %v2796_v27, 7  ;;  %v5437_v20 = vpop.f32.mrb[50].mxu0 }
 0x96f   :  { %v2872_v21 = vrot.slane %v5437_v20, 1  ;;  %v2880_v55 = vrot.slane %v5437_v20, 7  ;;  %v2799_v31 = vpop.f32.mrb[51].mxu0 }
 0x970   :  { %v2868_v32 = vrot.slane %v2799_v31, 1  ;;  %v2883_v23 = vrot.slane %v2799_v31, 7 }
 0x971   :  { %v2873_v0 = vsel %vm603_vm6, %v2870_v54, %v2872_v21  ;;  %v2879_v24 = vsel %vm603_vm6, %v2872_v21, %v2867_v41  ;;  %v2887_v25 = vsel %vm583_vm4, %v2885_v34, %v2880_v55  ;;  %v2892_v5 = vsel %vm583_vm4, %v2880_v55, %v2882_v62 }
 0x972   :  { %v2896_v26 = vsel %vm6530_vm10, %v2879_v24, %v2887_v25  ;;  %v2869_v12 = vsel %vm603_vm6, %v2867_v41, %v2868_v32  ;;  %v2871_v28 = vsel %vm603_vm6, %v2868_v32, %v2870_v54  ;;  %v2884_v8 = vsel %vm583_vm4, %v2882_v62, %v2883_v23 }
 0x973   :  { %v2900_v33 = vadd.f32 %v5437_v20, %v2896_v26  ;;  %v2886_v35 = vsel %vm583_vm4, %v2883_v23, %v2885_v34  ;;  %v2893_v59 = vsel %vm6534_vm11, %v2869_v12, %v2892_v5  ;;  %v2894_v40 = vsel %vm6538_vm12, %v2871_v28, %v2884_v8 }
 0x974   :  { %v2895_v42 = vsel %vm6544_vm13, %v2873_v0, %v2886_v35  ;;  %v2897_v29 = vadd.f32 %v2893_v59, %v2796_v27  ;;  %v2898_v44 = vadd.f32 %v2894_v40, %v2799_v31  ;;  %v3018_v25 = vrot.slane %v6519_v3, %v6448_v43 }
 0x975   :  { %v2904_v49 = vmul.f32 0.5, %v2900_v33  ;;  %v2899_v50 = vadd.f32 %v5436_v13, %v2895_v42 }
 0x976   :  { %v2902_v39 = vmul.f32 0.5, %v2898_v44  ;;  %v2901_v51 = vmul.f32 0.5, %v2897_v29 }
 0x977   :  { %v6564_v52 = vadd.f32 %v2908_v60, %v2904_v49  ;;  %v2903_v53 = vmul.f32 0.5, %v2899_v50 }
 0x978   :  { %v6566_v57 = vadd.f32 %v2908_v60, %v2902_v39  ;;  %v6568_v47 = vadd.f32 %v2908_v60, %v2901_v51 }
 0x979   :  { %v6570_v10 = vadd.f32 %v2908_v60, %v2903_v53 }
 0x97a   :  { %v2913_v61 = vpack.c.bf16 %v6566_v57, %v6568_v47 }
 0x97b   :  { %v2914_v1 = vpack.c.bf16 %v6564_v52, %v6570_v10 }
 0x97c   :  { %5446 = vmatprep.mubr.msk.bf16.mxu1 %vm2951_vm14, %v2913_v61  ;;  %5470 = vmatprep.mubr.msk.bf16.mxu0 %vm2951_vm14, %v2913_v61 }
 0x97d   :  { %5447 = vmatmul.mubr.msk.bf16.vlgmr.msra.gmra.mrb[24].mxu1 %vm2951_vm14, %v2914_v1  ;;  %5471 = vmatmul.mubr.msk.bf16.vlgmr.msra.gmra.mrb[52].mxu0 %vm2951_vm14, %v2914_v1 }
 0x97e   :  { %5451 = vmatpush3.bf16.msra.mxu1 %v5086_v2  ;;  %5458 = vmatprep.mubr.msk.bf16.mxu1 %vm2951_vm14, %v2913_v61  ;;  %v3103_v2 = vrot.slane %v6519_v3, %v6491_v7 }
 0x97f   :  { %5452 = vmatprep.subr.bf16.mxu1 %v5087_v4  ;;  %5500 = vmatprep.mubr.msk.bf16.mxu0 %vm6114_vm15, %v6113_v17 }
 0x982   :  { %5453 = vmatpush3.bf16.msra.mxu1 %v5087_v4 }
 0x983   :  { %5454 = vmatprep.subr.bf16.mxu1 %v5088_v58 }
 0x986   :  { %5455 = vmatpush3.bf16.msra.mxu1 %v5088_v58 }
 0x987   :  { %5456 = vmatprep.subr.bf16.mxu1 %v5089_v15 }
 0x98a   :  { %5457 = vmatpush3.bf16.msra.mxu1 %v5089_v15 }
 0x98b   :  { %5474 = vmatprep.subr.bf16.mxu1 %v6113_v17 }
 0x98d   :  { %5459 = vmatmul.mubr.msk.bf16.vlgmr.msra.gmra.mrb[28].mxu1 %vm2951_vm14, %v2914_v1 }
 0x98e   :  { %5476 = vmatprep.mubr.msk.bf16.mxu1 %vm6114_vm15, %v6113_v17 }
 0xa50   :  { %v5448_v13 = vpop.f32.mrb[24].mxu1  ;;  %v5472_v16 = vpop.f32.mrb[52].mxu0 }
 0xa51   :  { %v3171_v27 = vadd.f32 %v5472_v16, %v3103_v2  ;;  %v2992_v19 = vpop.f32.mrb[25].mxu1  ;;  %v3162_v41 = vpop.f32.mrb[53].mxu0  ;;  %v3001_v38 = vadd.f32 %v5448_v13, %v2926_v6 }
 0xa52   :  { %v5449_v62 = vpop.f32.mrb[26].mxu1  ;;  %v5473_v20 = vpop.f32.mrb[54].mxu0  ;;  %v2993_v55 = vadd.f32 %v2992_v19, %v2926_v6  ;;  %v3163_v31 = vadd.f32 %v3162_v41, %v3103_v2 }
 0xa53   :  { %v3004_v56 = vadd.f32 %v5449_v62, %v2926_v6  ;;  %v3174_v54 = vadd.f32 %v5473_v20, %v3103_v2  ;;  %v2995_v34 = vpop.f32.mrb[27].mxu1  ;;  %v3165_v21 = vpop.f32.mrb[55].mxu0 }
 0xa54   :  { %v2996_v60 = vadd.f32 %v2995_v34, %v2926_v6  ;;  %v3166_v22 = vadd.f32 %v3165_v21, %v3103_v2 }
 0xa55   :  { %v6591_v32 = vpack.c.bf16 %v3004_v56, %v3001_v38  ;;  %v6593_v23 = vpack.c.bf16 %v3174_v54, %v3171_v27 }
 0xa56   :  { %v6595_v0 = vpack.c.bf16 %v2996_v60, %v2993_v55  ;;  %v6597_v24 = vpack.c.bf16 %v3166_v22, %v3163_v31 }
 0xa60   :  { %v5460_v5 = vpop.f32.mrb[28].mxu1 }
 0xa61   :  { %v3077_v26 = vpop.f32.mrb[29].mxu1  ;;  %v3086_v28 = vadd.f32 %v5460_v5, %v3018_v25 }
 0xa62   :  { %v5461_v12 = vpop.f32.mrb[30].mxu1  ;;  %v3078_v35 = vadd.f32 %v3077_v26, %v3018_v25 }
 0xa63   :  { %v3089_v8 = vadd.f32 %v5461_v12, %v3018_v25  ;;  %v3080_v33 = vpop.f32.mrb[31].mxu1 }
 0xa64   :  { %v3081_v59 = vadd.f32 %v3080_v33, %v3018_v25 }
 0xa65   :  { %v6601_v40 = vpack.c.bf16 %v3089_v8, %v3086_v28 }
 0xa66   :  { %v6603_v42 = vpack.c.bf16 %v3081_v59, %v3078_v35 }
 0xa67   :  { %v3235_v3 = vsel %vm3183_vm0, %v6601_v40, 0 }
 0xa68   :  { %v3188_v29 = vsel %vm3183_vm0, %v6603_v42, 0 }
 0xa69   :  { %5475 = vmatpush3.bf16.xpose.msra.mxu1 %v3188_v29 }
 0xa6a   :  { %5480 = vmatprep.subr.bf16.mxu1 %v6113_v17 }
 0xa70   :  { %5477 = vmatmul.mubr.msk.bf16.vlgmr.msra.gmra.mrb[32].mxu1 %vm3183_vm0, %v6595_v0 }
 0xa71   :  { %5481 = vmatpush3.bf16.xpose.msra.mxu1 %v3235_v3  ;;  %5482 = vmatprep.mubr.msk.bf16.mxu1 %vm6114_vm15, %v6113_v17 }
 0xa72   :  { %5486 = vmatprep.subr.bf16.mxu1 %v6113_v17 }
 0xa78   :  { %5483 = vmatmul.mubr.msk.bf16.vlgmr.msra.gmra.mrb[36].mxu1 %vm3183_vm0, %v6591_v32 }
 0xa79   :  { %5487 = vmatpush3.bf16.msra.mxu1 %v6597_v24  ;;  %5488 = vmatprep.mubr.msk.bf16.mxu1 %vm6114_vm15, %v6113_v17 }
 0xa7a   :  { %5492 = vmatprep.subr.bf16.mxu1 %v6113_v17 }
 0xb43   :  { %v3224_v44 = vpop.f32.mrb[32].mxu1 }
 0xb44   :  { %v5478_v49 = vpop.f32.mrb[33].mxu1  ;;  %v3278_v50 = vsel %vm3183_vm0, %v3224_v44, -inf }
 0xb45   :  { %3279 = vmax.xlane.f32.xlu1 %v3278_v50  ;;  %v3227_v39 = vpop.f32.mrb[34].mxu1 }
 0xb46   :  { %v5479_v51 = vpop.f32.mrb[35].mxu1  ;;  %v3281_v53 = vsel %vm3183_vm0, %v3227_v39, -inf }
 0xb47   :  { %3282 = vmax.xlane.f32.xlu0 %v3281_v53 }
 0xb4b   :  { %v3271_v48 = vpop.f32.mrb[36].mxu1 }
 0xb4c   :  { %v5484_v9 = vpop.f32.mrb[37].mxu1  ;;  %v3284_v61 = vsel %vm3183_vm0, %v3271_v48, -inf }
 0xb4d   :  { %3285 = vmax.xlane.f32.xlu0 %v3284_v61  ;;  %v3274_v1 = vpop.f32.mrb[38].mxu1 }
 0xb4e   :  { %v5485_v4 = vpop.f32.mrb[39].mxu1  ;;  %v3287_v14 = vsel %vm3183_vm0, %v3274_v1, -inf }
 0xb4f   :  { %3288 = vmax.xlane.f32.xlu1 %v3287_v14 }
 0xbd2   :  { %v3280_v18 = vpop.xlane.xlu1 %3279 }
 0xbd3   :  { %v3290_v58 = vsub.f32 %v3224_v44, %v3280_v18 }
 0xbd4   :  { %v3283_v11 = vpop.xlane.xlu0 %3282 }
 0xbd5   :  { %v3294_v63 = vmul.f32 1.442695, %v3290_v58  ;;  %v3291_v15 = vsub.f32 %v3227_v39, %v3283_v11 }
 0xbd7   :  { %5939 = vpow2.f32 %v3294_v63  ;;  %v3296_v2 = vmul.f32 1.442695, %v3291_v15 }
 0xbd9   :  { %5941 = vpow2.f32 %v3296_v2 }
 0xbda   :  { %v3286_v6 = vpop.xlane.xlu0 %3285 }
 0xbdb   :  { %v3292_v13 = vsub.f32 %v3271_v48, %v3286_v6 }
 0xbdc   :  { %v3289_v16 = vpop.xlane.xlu1 %3288 }
 0xbdd   :  { %v3298_v27 = vmul.f32 1.442695, %v3292_v13  ;;  %v3293_v19 = vsub.f32 %v3274_v1, %v3289_v16 }
 0xbdf   :  { %5943 = vpow2.f32 %v3298_v27  ;;  %v3300_v41 = vmul.f32 1.442695, %v3293_v19 }
 0xbe1   :  { %v5940_v62 = vpop.eup %5939  ;;  %5945 = vpow2.f32 %v3300_v41 }
 0xbe2   :  { %v3302_v20 = vsel %vm3183_vm0, %v5940_v62, 0.0 }
 0xbe3   :  { %v5942_v38 = vpop.eup %5941  ;;  %3303 = vadd.xlane.f32.xlu0 %v3302_v20 }
 0xbe4   :  { %v3305_v56 = vsel %vm3183_vm0, %v5942_v38, 0.0 }
 0xbe5   :  { %3306 = vadd.xlane.f32.xlu1 %v3305_v56 }
 0xbe9   :  { %v5944_v54 = vpop.eup %5943 }
 0xbea   :  { %v3308_v34 = vsel %vm3183_vm0, %v5944_v54, 0.0 }
 0xbeb   :  { %v5946_v21 = vpop.eup %5945  ;;  %3309 = vadd.xlane.f32.xlu0 %v3308_v34 }
 0xbec   :  { %v3311_v55 = vsel %vm3183_vm0, %v5946_v21, 0.0 }
 0xbed   :  { %3312 = vadd.xlane.f32.xlu1 %v3311_v55 }
 0xbfe   :  { %3470 = vrot.lane.b32.xlu1 %v6591_v32, %s6115_s14 }
 0xc01   :  { %3473 = vrot.lane.b32.xlu0 %v6601_v40, %s6115_s14 }
 0xc02   :  { %3420 = vrot.lane.b32.xlu1 %v6603_v42, %s6115_s14 }
 0xc05   :  { %3417 = vrot.lane.b32.xlu0 %v6595_v0, %s6115_s14 }
 0xc70   :  { %v3304_v31 = vpop.xlane.xlu0 %3303 }
 0xc71   :  { %5947 = vrcp.f32 %v3304_v31 }
 0xc72   :  { %v3307_v60 = vpop.xlane.xlu1 %3306 }
 0xc73   :  { %5949 = vrcp.f32 %v3307_v60 }
 0xc78   :  { %v3310_v22 = vpop.xlane.xlu0 %3309 }
 0xc79   :  { %5951 = vrcp.f32 %v3310_v22 }
 0xc7a   :  { %v3313_v25 = vpop.xlane.xlu1 %3312 }
 0xc7b   :  { %v5948_v5 = vpop.eup %5947  ;;  %5953 = vrcp.f32 %v3313_v25 }
 0xc7c   :  { %v3318_v12 = vmul.f32 %v5948_v5, %v5940_v62  ;;  %v3474_v3 = vpop.permute.xlu0 %3473 }
 0xc7d   :  { %v5950_v26 = vpop.eup %5949  ;;  %v3479_v53 = vsel %vm3183_vm0, %v3474_v3, 0 }
 0xc7e   :  { %v3319_v28 = vmul.f32 %v5950_v26, %v5942_v38  ;;  %v3471_v8 = vpop.permute.xlu1 %3470 }
 0xc80   :  { %v3322_v33 = vpack.c.bf16 %v3319_v28, %v3318_v12  ;;  %v3418_v51 = vpop.permute.xlu0 %3417 }
 0xc82   :  { %5489 = vmatmul.mubr.msk.bf16.vlgmr.msra.gmra.mrb[40].mxu1 %vm3183_vm0, %v3322_v33  ;;  %v3421_v35 = vpop.permute.xlu1 %3420 }
 0xc83   :  { %v5952_v59 = vpop.eup %5951  ;;  %5493 = vmatpush3.bf16.msra.mxu1 %v6593_v23  ;;  %v3426_v29 = vsel %vm3183_vm0, %v3421_v35, 0  ;;  %5494 = vmatprep.mubr.msk.bf16.mxu1 %vm6114_vm15, %v6113_v17 }
 0xc84   :  { %5499 = vmatpush3.bf16.xpose.msra.mxu0 %v3426_v29  ;;  %5504 = vmatprep.subr.bf16.mxu1 %v6113_v17  ;;  %v3320_v49 = vmul.f32 %v5952_v59, %v5944_v54 }
 0xc85   :  { %v5954_v44 = vpop.eup %5953  ;;  %5510 = vmatprep.subr.bf16.mxu0 %v6113_v17 }
 0xc86   :  { %v3321_v50 = vmul.f32 %v5954_v44, %v5946_v21 }
 0xc88   :  { %v3323_v39 = vpack.c.bf16 %v3321_v50, %v3320_v49 }
 0xc8a   :  { %5495 = vmatmul.mubr.msk.bf16.vlgmr.msra.gmra.mrb[44].mxu1 %vm3183_vm0, %v3323_v39 }
 0xc8b   :  { %5501 = vmatmul.mubr.msk.bf16.vlgmr.msra.gmra.mrb[56].mxu0 %vm3183_vm0, %v3418_v51  ;;  %5506 = vmatprep.mubr.msk.bf16.mxu1 %vm6114_vm15, %v6113_v17 }
 0xc8c   :  { %5505 = vmatpush3.bf16.xpose.msra.mxu1 %v3479_v53  ;;  %5512 = vmatprep.mubr.msk.bf16.mxu0 %vm6114_vm15, %v6113_v17 }
 0xc8d   :  { %5516 = vmatprep.subr.bf16.mxu1 %v6113_v17 }
 0xc93   :  { %5507 = vmatmul.mubr.msk.bf16.vlgmr.msra.gmra.mrb[48].mxu1 %vm3183_vm0, %v3471_v8 }
 0xc94   :  { %5518 = vmatprep.mubr.msk.bf16.mxu1 %vm6114_vm15, %v6113_v17 }
 0xd55   :  { %v6655_v48 = vpop.f32.mrb[40].mxu1 }
 0xd56   :  { %v5490_v9 = vpop.f32.mrb[41].mxu1 }
 0xd57   :  { %v6657_v61 = vpop.f32.mrb[42].mxu1 }
 0xd58   :  { %v3412_v1 = vpack.c.bf16 %v6657_v61, %v6655_v48  ;;  %v5491_v4 = vpop.f32.mrb[43].mxu1 }
 0xd5d   :  { %v6661_v14 = vpop.f32.mrb[44].mxu1 }
 0xd5e   :  { %v5496_v18 = vpop.f32.mrb[45].mxu1  ;;  %v6663_v58 = vpop.f32.mrb[56].mxu0 }
 0xd5f   :  { %v6665_v11 = vpop.f32.mrb[46].mxu1  ;;  %v5502_v63 = vpop.f32.mrb[57].mxu0  ;;  %v3522_v5 = vsel %vm3183_vm0, %v6663_v58, -inf }
 0xd60   :  { %v3413_v15 = vpack.c.bf16 %v6665_v11, %v6661_v14  ;;  %v5497_v2 = vpop.f32.mrb[47].mxu1  ;;  %v6669_v6 = vpop.f32.mrb[58].mxu0 }
 0xd61   :  { %v5503_v13 = vpop.f32.mrb[59].mxu0  ;;  %v3525_v26 = vsel %vm3183_vm0, %v6669_v6, -inf }
 0xd66   :  { %v3515_v16 = vpop.f32.mrb[48].mxu1 }
 0xd67   :  { %v5508_v27 = vpop.f32.mrb[49].mxu1  ;;  %v3528_v19 = vsel %vm3183_vm0, %v3515_v16, -inf }
 0xd68   :  { %3529 = vmax.xlane.f32.xlu1 %v3528_v19  ;;  %v3518_v41 = vpop.f32.mrb[50].mxu1 }
 0xd69   :  { %v5509_v62 = vpop.f32.mrb[51].mxu1  ;;  %v3531_v20 = vsel %vm3183_vm0, %v3518_v41, -inf }
 0xd6a   :  { %3532 = vmax.xlane.f32.xlu0 %v3531_v20 }
 0xdf5   :  { %v3530_v38 = vpop.xlane.xlu1 %3529 }
 0xdf6   :  { %v3536_v56 = vsub.f32 %v3515_v16, %v3530_v38 }
 0xdf7   :  { %v3533_v54 = vpop.xlane.xlu0 %3532 }
 0xdf8   :  { %v3542_v34 = vmul.f32 1.442695, %v3536_v56  ;;  %v3537_v21 = vsub.f32 %v3518_v41, %v3533_v54 }
 0xdfa   :  { %5955 = vpow2.f32 %v3542_v34  ;;  %v3544_v55 = vmul.f32 1.442695, %v3537_v21 }
 0xdfc   :  { %5957 = vpow2.f32 %v3544_v55 }
 0xe04   :  { %v5956_v31 = vpop.eup %5955 }
 0xe05   :  { %v3552_v60 = vsel %vm3183_vm0, %v5956_v31, 0.0 }
 0xe06   :  { %v5958_v22 = vpop.eup %5957  ;;  %3553 = vadd.xlane.f32.xlu0 %v3552_v60 }
 0xe07   :  { %v3555_v25 = vsel %vm3183_vm0, %v5958_v22, 0.0 }
 0xe08   :  { %3556 = vadd.xlane.f32.xlu1 %v3555_v25 }
 0xe19   :  { %3792 = vrot.lane.b32.xlu1 %v6603_v42, %s6116_s15 }
 0xe1c   :  { %3617 = vrot.lane.b32.xlu0 %v6593_v23, %s6115_s14 }
 0xe1d   :  { %3790 = vrot.lane.b32.xlu1 %v6595_v0, %s6116_s15 }
 0xe20   :  { %3843 = vrot.lane.b32.xlu0 %v6601_v40, %s6116_s15 }
 0xe21   :  { %3841 = vrot.lane.b32.xlu1 %v6591_v32, %s6116_s15 }
 0xe3f   :  { %3523 = vmax.xlane.f32.xlu0 %v3522_v5 }
 0xe45   :  { %3526 = vmax.xlane.f32.xlu1 %v3525_v26 }
 0xe56   :  { %3569 = vrot.lane.b32.xlu1 %v6597_v24, %s6115_s14 }
 0xe93   :  { %v3554_v12 = vpop.xlane.xlu0 %3553 }
 0xe94   :  { %5959 = vrcp.f32 %v3554_v12 }
 0xe95   :  { %v3557_v28 = vpop.xlane.xlu1 %3556 }
 0xe96   :  { %5961 = vrcp.f32 %v3557_v28 }
 0xe97   :  { %v3618_v8 = vpop.permute.xlu0 %3617 }
 0xe98   :  { %5517 = vmatpush3.bf16.msra.mxu1 %v3618_v8 }
 0xe99   :  { %5534 = vmatprep.subr.bf16.mxu1 %v6113_v17  ;;  %v3793_v3 = vpop.permute.xlu1 %3792 }
 0xe9a   :  { %v3798_v49 = vsel %vm3183_vm0, %v3793_v3, 0 }
 0xe9b   :  { %v3844_v50 = vpop.permute.xlu0 %3843 }
 0xe9c   :  { %v3849_v51 = vsel %vm3183_vm0, %v3844_v50, 0  ;;  %v3667_v50 = vld [vmem:[#allocation5 + $0x70] sm:$0xf] }
 0xe9d   :  { %v3791_v39 = vpop.permute.xlu1 %3790 }
 0xe9e   :  { %v5960_v33 = vpop.eup %5959 }
 0xe9f   :  { %v3564_v59 = vmul.f32 %v5960_v33, %v5956_v31 }
 0xea0   :  { %v5962_v35 = vpop.eup %5961 }
 0xea1   :  { %v3565_v29 = vmul.f32 %v5962_v35, %v5958_v22  ;;  %v3842_v53 = vpop.permute.xlu1 %3841 }
 0xea3   :  { %v3567_v44 = vpack.c.bf16 %v3565_v29, %v3564_v59 }
 0xea5   :  { %5519 = vmatmul.mubr.msk.bf16.vlgmr.msra.gmra.mrb[52].mxu1 %vm3183_vm0, %v3567_v44 }
 0xea6   :  { %5535 = vmatpush3.bf16.xpose.msra.mxu1 %v3798_v49  ;;  %5536 = vmatprep.mubr.msk.bf16.mxu1 %vm6114_vm15, %v6113_v17  ;;  %v3666_v49 = vld [vmem:[#allocation5 + $0x50] sm:$0xf] }
 0xea7   :  { %5540 = vmatprep.subr.bf16.mxu1 %v6113_v17 }
 0xead   :  { %5537 = vmatmul.mubr.msk.bf16.vlgmr.msra.gmra.mrb[56].mxu1 %vm3183_vm0, %v3791_v39  ;;  %v5106_v39 = vcombine.low %v3666_v49, %v3667_v50  ;;  %v4034_v50 = vld [vmem:[#allocation5 + $0x90] sm:$0xf] }
 0xeae   :  { %5541 = vmatpush3.bf16.xpose.msra.mxu1 %v3849_v51  ;;  %5542 = vmatprep.mubr.msk.bf16.mxu1 %vm6114_vm15, %v6113_v17  ;;  %v3414_v51 = vld [vmem:[#allocation5 + $0x10] sm:$0xf] }
 0xeaf   :  { %5552 = vmatprep.subr.bf16.mxu1 %v6113_v17 }
 0xeb5   :  { %5543 = vmatmul.mubr.msk.bf16.vlgmr.msra.gmra.mrb[60].mxu1 %vm3183_vm0, %v3842_v53  ;;  %v3415_v53 = vld [vmem:[#allocation5 + $0x30] sm:$0xf] }
 0xeb6   :  { %5554 = vmatprep.mubr.msk.bf16.mxu1 %vm6114_vm15, %v6113_v17 }
 0xecc   :  { %v3524_v9 = vpop.xlane.xlu0 %3523 }
 0xecd   :  { %v3534_v4 = vsub.f32 %v6663_v58, %v3524_v9  ;;  %v5109_v9 = vcombine.low %v3414_v51, %v3415_v53 }
 0xecf   :  { %v3538_v18 = vmul.f32 1.442695, %v3534_v4 }
 0xed1   :  { %5963 = vpow2.f32 %v3538_v18 }
 0xed2   :  { %v3527_v63 = vpop.xlane.xlu1 %3526 }
 0xed3   :  { %v3535_v2 = vsub.f32 %v6669_v6, %v3527_v63 }
 0xed5   :  { %v3540_v13 = vmul.f32 1.442695, %v3535_v2 }
 0xed6   :  { %v3570_v16 = vpop.permute.xlu1 %3569 }
 0xed7   :  { %5965 = vpow2.f32 %v3540_v13  ;;  %5511 = vmatpush3.bf16.msra.mxu0 %v3570_v16 }
 0xed8   :  { %5522 = vmatprep.subr.bf16.mxu0 %v5106_v39 }
 0xedb   :  { %v5964_v27 = vpop.eup %5963 }
 0xedc   :  { %v3546_v19 = vsel %vm3183_vm0, %v5964_v27, 0.0 }
 0xedd   :  { %3547 = vadd.xlane.f32.xlu0 %v3546_v19 }
 0xee1   :  { %v5966_v41 = vpop.eup %5965 }
 0xee2   :  { %v3549_v62 = vsel %vm3183_vm0, %v5966_v41, 0.0 }
 0xee3   :  { %3550 = vadd.xlane.f32.xlu0 %v3549_v62 }
 0xf6a   :  { %v3548_v20 = vpop.xlane.xlu0 %3547 }
 0xf6b   :  { %5967 = vrcp.f32 %v3548_v20 }
 0xf70   :  { %v3551_v58 = vpop.xlane.xlu0 %3550 }
 0xf71   :  { %5969 = vrcp.f32 %v3551_v58 }
 0xf75   :  { %v5968_v56 = vpop.eup %5967 }
 0xf76   :  { %v3562_v31 = vmul.f32 %v5968_v56, %v5964_v27 }
 0xf78   :  { %v6709_v38 = vpop.f32.mrb[52].mxu1 }
 0xf79   :  { %v5520_v6 = vpop.f32.mrb[53].mxu1 }
 0xf7a   :  { %v6711_v54 = vpop.f32.mrb[54].mxu1 }
 0xf7b   :  { %v5970_v34 = vpop.eup %5969  ;;  %v3665_v21 = vpack.c.bf16 %v6711_v54, %v6709_v38  ;;  %v5521_v55 = vpop.f32.mrb[55].mxu1 }
 0xf7c   :  { %v3563_v60 = vmul.f32 %v5970_v34, %v5966_v41 }
 0xf7e   :  { %v3566_v22 = vpack.c.bf16 %v3563_v60, %v3562_v31 }
 0xf80   :  { %5513 = vmatmul.mubr.msk.bf16.vlgmr.msra.gmra.mrb[60].mxu0 %vm3183_vm0, %v3566_v22  ;;  %v3834_v25 = vpop.f32.mrb[56].mxu1 }
 0xf81   :  { %v5538_v5 = vpop.f32.mrb[57].mxu1  ;;  %v3892_v26 = vsel %vm3183_vm0, %v3834_v25, -inf  ;;  %5523 = vmatpush3.bf16.msra.mxu0 %v5106_v39  ;;  %v4035_v39 = vld [vmem:[#allocation5 + $0xb0] sm:$0xf] }
 0xf82   :  { %3893 = vmax.xlane.f32.xlu0 %v3892_v26  ;;  %v3837_v12 = vpop.f32.mrb[58].mxu1  ;;  %5528 = vmatprep.subr.bf16.mxu0 %v5109_v9  ;;  %v5116_v51 = vcombine.low %v4034_v50, %v4035_v39 }
 0xf83   :  { %v5539_v28 = vpop.f32.mrb[59].mxu1  ;;  %v3895_v8 = vsel %vm3183_vm0, %v3837_v12, -inf }
 0xf86   :  { %3896 = vmax.xlane.f32.xlu0 %v3895_v8 }
 0xf88   :  { %v3885_v33 = vpop.f32.mrb[60].mxu1 }
 0xf89   :  { %v5544_v35 = vpop.f32.mrb[61].mxu1  ;;  %v3898_v59 = vsel %vm3183_vm0, %v3885_v33, -inf }
 0xf8a   :  { %3899 = vmax.xlane.f32.xlu0 %v3898_v59  ;;  %v3888_v29 = vpop.f32.mrb[62].mxu1 }
 0xf8b   :  { %v5545_v3 = vpop.f32.mrb[63].mxu1  ;;  %v3901_v44 = vsel %vm3183_vm0, %v3888_v29, -inf }
 0xf8e   :  { %3902 = vmax.xlane.f32.xlu0 %v3901_v44 }
 0xfa4   :  { %3938 = vrot.lane.b32.xlu0 %v6597_v24, %s6116_s15 }
0x100f   :  { %v3894_v4 = vpop.xlane.xlu0 %3893 }
0x1010   :  { %v3904_v18 = vsub.f32 %v3834_v25, %v3894_v4 }
0x1012   :  { %v3908_v63 = vmul.f32 1.442695, %v3904_v18 }
0x1013   :  { %v3897_v2 = vpop.xlane.xlu0 %3896 }
0x1014   :  { %5971 = vpow2.f32 %v3908_v63  ;;  %v3905_v13 = vsub.f32 %v3837_v12, %v3897_v2 }
0x1016   :  { %v3910_v16 = vmul.f32 1.442695, %v3905_v13 }
0x1017   :  { %v3900_v27 = vpop.xlane.xlu0 %3899 }
0x1018   :  { %5973 = vpow2.f32 %v3910_v16  ;;  %v3906_v19 = vsub.f32 %v3885_v33, %v3900_v27 }
0x101a   :  { %v3912_v41 = vmul.f32 1.442695, %v3906_v19 }
0x101b   :  { %v3903_v62 = vpop.xlane.xlu0 %3902 }
0x101c   :  { %5975 = vpow2.f32 %v3912_v41  ;;  %v3907_v20 = vsub.f32 %v3888_v29, %v3903_v62 }
0x101e   :  { %v5972_v58 = vpop.eup %5971  ;;  %v3914_v56 = vmul.f32 1.442695, %v3907_v20 }
0x101f   :  { %v3916_v6 = vsel %vm3183_vm0, %v5972_v58, 0.0 }
0x1020   :  { %5977 = vpow2.f32 %v3914_v56  ;;  %3917 = vadd.xlane.f32.xlu1 %v3916_v6 }
0x1022   :  { %v5974_v34 = vpop.eup %5973 }
0x1023   :  { %v3919_v55 = vsel %vm3183_vm0, %v5974_v34, 0.0 }
0x1024   :  { %3920 = vadd.xlane.f32.xlu0 %v3919_v55 }
0x1026   :  { %v5976_v31 = vpop.eup %5975 }
0x1027   :  { %v3922_v60 = vsel %vm3183_vm0, %v5976_v31, 0.0 }
0x1028   :  { %3923 = vadd.xlane.f32.xlu0 %v3922_v60 }
0x102a   :  { %v5978_v22 = vpop.eup %5977 }
0x102b   :  { %v3925_v25 = vsel %vm3183_vm0, %v5978_v22, 0.0 }
0x102c   :  { %3926 = vadd.xlane.f32.xlu0 %v3925_v25 }
0x1031   :  { %4103 = vrot.lane.b32.xlu1 %v6603_v42, %s6117_s16 }
0x1042   :  { %3985 = vrot.lane.b32.xlu0 %v6593_v23, %s6116_s15 }
0x1046   :  { %4154 = vrot.lane.b32.xlu0 %v6601_v40, %s6117_s16 }
0x104a   :  { %4101 = vrot.lane.b32.xlu0 %v6595_v0, %s6117_s16 }
0x104e   :  { %4152 = vrot.lane.b32.xlu0 %v6591_v32, %s6117_s16  ;;  %v3939_v32 = vpop.permute.xlu0 %3938 }
0x1053   :  { %v3609_v5 = vpop.f32.mrb[60].mxu0 }
0x1054   :  { %v5514_v26 = vpop.f32.mrb[61].mxu0 }
0x1055   :  { %v3612_v12 = vpop.f32.mrb[62].mxu0 }
0x1056   :  { %v3664_v28 = vpack.c.bf16 %v3612_v12, %v3609_v5  ;;  %v5515_v8 = vpop.f32.mrb[63].mxu0 }
0x1058   :  { %5524 = vmatprep.mubr.msk.bf16.mxu0 %vm3183_vm0, %v3664_v28 }
0x1059   :  { %5525 = vmatmul.mubr.msk.bf16.vlgmr.msra.gmra.mrb[64].mxu0 %vm3183_vm0, %v3665_v21 }
0x105a   :  { %5530 = vmatprep.mubr.msk.bf16.mxu0 %vm3183_vm0, %v3412_v1  ;;  %5529 = vmatpush3.bf16.msra.mxu0 %v5109_v9 }
0x105b   :  { %5546 = vmatprep.subr.bf16.mxu0 %v6113_v17 }
0x1065   :  { %5531 = vmatmul.mubr.msk.bf16.vlgmr.msra.gmra.mrb[64].mxu0 %vm3183_vm0, %v3413_v15 }
0x1066   :  { %5547 = vmatpush3.bf16.msra.mxu0 %v3939_v32  ;;  %5548 = vmatprep.mubr.msk.bf16.mxu0 %vm6114_vm15, %v6113_v17 }
0x1067   :  { %5558 = vmatprep.subr.bf16.mxu0 %v5116_v51 }
0x10ad   :  { %v3918_v0 = vpop.xlane.xlu1 %3917 }
0x10ae   :  { %5979 = vrcp.f32 %v3918_v0 }
0x10b1   :  { %v3921_v40 = vpop.xlane.xlu0 %3920  ;;  %v4104_v59 = vpop.permute.xlu1 %4103 }
0x10b2   :  { %5981 = vrcp.f32 %v3921_v40  ;;  %v4109_v3 = vsel %vm3183_vm0, %v4104_v59, 0 }
0x10b5   :  { %v3924_v42 = vpop.xlane.xlu0 %3923 }
0x10b6   :  { %5983 = vrcp.f32 %v3924_v42 }
0x10b8   :  { %v5980_v61 = vpop.eup %5979 }
0x10b9   :  { %v3927_v48 = vpop.xlane.xlu0 %3926  ;;  %v3932_v38 = vmul.f32 %v5980_v61, %v5972_v58 }
0x10ba   :  { %5985 = vrcp.f32 %v3927_v48 }
0x10bc   :  { %v5982_v1 = vpop.eup %5981 }
0x10bd   :  { %v3933_v54 = vmul.f32 %v5982_v1, %v5974_v34  ;;  %v3986_v21 = vpop.permute.xlu0 %3985 }
0x10be   :  { %5553 = vmatpush3.bf16.msra.mxu1 %v3986_v21 }
0x10bf   :  { %v3936_v14 = vpack.c.bf16 %v3933_v54, %v3932_v38  ;;  %5564 = vmatprep.subr.bf16.mxu1 %v6113_v17 }
0x10c0   :  { %v5984_v11 = vpop.eup %5983 }
0x10c1   :  { %5549 = vmatmul.mubr.msk.bf16.vlgmr.msra.gmra.mrb[68].mxu0 %vm3183_vm0, %v3936_v14  ;;  %v3934_v33 = vmul.f32 %v5984_v11, %v5976_v31  ;;  %v4155_v44 = vpop.permute.xlu0 %4154 }
0x10c2   :  { %5559 = vmatpush3.bf16.msra.mxu0 %v5116_v51  ;;  %v4160_v41 = vsel %vm3183_vm0, %v4155_v44, 0 }
0x10c3   :  { %5570 = vmatprep.subr.bf16.mxu0 %v6113_v17 }
0x10c4   :  { %v5986_v15 = vpop.eup %5985 }
0x10c5   :  { %v3935_v35 = vmul.f32 %v5986_v15, %v5978_v22  ;;  %v4102_v49 = vpop.permute.xlu0 %4101 }
0x10c7   :  { %v3937_v29 = vpack.c.bf16 %v3935_v35, %v3934_v33 }
0x10c9   :  { %5555 = vmatmul.mubr.msk.bf16.vlgmr.msra.gmra.mrb[64].mxu1 %vm3183_vm0, %v3937_v29  ;;  %v4153_v55 = vpop.permute.xlu0 %4152 }
0x10ca   :  { %5565 = vmatpush3.bf16.xpose.msra.mxu1 %v4109_v3  ;;  %5566 = vmatprep.mubr.msk.bf16.mxu1 %vm6114_vm15, %v6113_v17 }
0x10cb   :  { %5576 = vmatprep.subr.bf16.mxu1 %v6113_v17 }
0x10d1   :  { %5567 = vmatmul.mubr.msk.bf16.vlgmr.msra.gmra.mrb[68].mxu1 %vm3183_vm0, %v4102_v49 }
0x10d2   :  { %5578 = vmatprep.mubr.msk.bf16.mxu1 %vm6114_vm15, %v6113_v17 }
0x1194   :  { %v3978_v53 = vpop.f32.mrb[68].mxu0 }
0x1195   :  { %v5550_v9 = vpop.f32.mrb[69].mxu0 }
0x1196   :  { %v3981_v4 = vpop.f32.mrb[70].mxu0 }
0x1197   :  { %v4032_v18 = vpack.c.bf16 %v3981_v4, %v3978_v53  ;;  %v5551_v63 = vpop.f32.mrb[71].mxu0 }
0x1199   :  { %5560 = vmatprep.mubr.msk.bf16.mxu0 %vm3183_vm0, %v4032_v18 }
0x119c   :  { %v4025_v2 = vpop.f32.mrb[64].mxu1 }
0x119d   :  { %v5556_v13 = vpop.f32.mrb[65].mxu1 }
0x119e   :  { %v4028_v16 = vpop.f32.mrb[66].mxu1 }
0x119f   :  { %v4033_v27 = vpack.c.bf16 %v4028_v16, %v4025_v2  ;;  %v5557_v19 = vpop.f32.mrb[67].mxu1 }
0x11a0   :  { %v4346_v19 = vld [vmem:[#allocation5 + $0xf0] sm:$0xf] }
0x11a1   :  { %5561 = vmatmul.mubr.msk.bf16.vlgmr.msra.gmra.mrb[64].mxu0 %vm3183_vm0, %v4033_v27  ;;  %v4345_v27 = vld [vmem:[#allocation5 + $0xd0] sm:$0xf] }
0x11a2   :  { %5571 = vmatpush3.bf16.xpose.msra.mxu0 %v4160_v41  ;;  %5572 = vmatprep.mubr.msk.bf16.mxu0 %vm6114_vm15, %v6113_v17  ;;  %v5123_v41 = vcombine.low %v4345_v27, %v4346_v19  ;;  %v4498_v27 = vld [vmem:[#allocation5 + $0x74] sm:$0xf] }
0x11a3   :  { %5582 = vmatprep.subr.bf16.mxu0 %v6113_v17 }
0x11a4   :  { %v4145_v62 = vpop.f32.mrb[68].mxu1 }
0x11a5   :  { %v5568_v20 = vpop.f32.mrb[69].mxu1  ;;  %v4203_v58 = vsel %vm3183_vm0, %v4145_v62, -inf }
0x11a6   :  { %4204 = vmax.xlane.f32.xlu0 %v4203_v58  ;;  %v4148_v56 = vpop.f32.mrb[70].mxu1 }
0x11a7   :  { %v5569_v6 = vpop.f32.mrb[71].mxu1  ;;  %v4206_v34 = vsel %vm3183_vm0, %v4148_v56, -inf }
0x11a8   :  { %4207 = vmax.xlane.f32.xlu1 %v4206_v34 }
0x11a9   :  { %5573 = vmatmul.mubr.msk.bf16.vlgmr.msra.gmra.mrb[72].mxu0 %vm3183_vm0, %v4153_v55 }
0x11aa   :  { %5584 = vmatprep.mubr.msk.bf16.mxu0 %vm6114_vm15, %v6113_v17 }
0x1233   :  { %v4205_v31 = vpop.xlane.xlu0 %4204 }
0x1234   :  { %v4215_v60 = vsub.f32 %v4145_v62, %v4205_v31 }
0x1235   :  { %v4208_v26 = vpop.xlane.xlu1 %4207 }
0x1236   :  { %v4219_v22 = vmul.f32 1.442695, %v4215_v60  ;;  %v4216_v12 = vsub.f32 %v4148_v56, %v4208_v26  ;;  %v6792_v26 = vld [vmem:[%s6898_s3] sm:$0xff] }
0x1238   :  { %5987 = vpow2.f32 %v4219_v22  ;;  %v4221_v28 = vmul.f32 1.442695, %v4216_v12 }
0x123a   :  { %5989 = vpow2.f32 %v4221_v28 }
0x1242   :  { %v5988_v25 = vpop.eup %5987 }
0x1243   :  { %v4227_v5 = vsel %vm3183_vm0, %v5988_v25, 0.0 }
0x1244   :  { %4228 = vadd.xlane.f32.xlu1 %v4227_v5  ;;  %v5990_v61 = vpop.eup %5989 }
0x1245   :  { %v4230_v1 = vsel %vm3183_vm0, %v5990_v61, 0.0 }
0x127c   :  { %v4196_v8 = vpop.f32.mrb[72].mxu0 }
0x127d   :  { %v5574_v32 = vpop.f32.mrb[73].mxu0  ;;  %v4209_v0 = vsel %vm3183_vm0, %v4196_v8, -inf }
0x127e   :  { %v4199_v40 = vpop.f32.mrb[74].mxu0  ;;  %4210 = vmax.xlane.f32.xlu0 %v4209_v0 }
0x127f   :  { %v5575_v42 = vpop.f32.mrb[75].mxu0  ;;  %v4212_v48 = vsel %vm3183_vm0, %v4199_v40, -inf }
0x1282   :  { %4213 = vmax.xlane.f32.xlu0 %v4212_v48 }
0x1286   :  { %4231 = vadd.xlane.f32.xlu0 %v4230_v1 }
0x12d1   :  { %v4229_v44 = vpop.xlane.xlu1 %4228 }
0x130b   :  { %v4211_v38 = vpop.xlane.xlu0 %4210 }
0x130c   :  { %v4217_v54 = vsub.f32 %v4196_v8, %v4211_v38 }
0x130e   :  { %v4223_v21 = vmul.f32 1.442695, %v4217_v54 }
0x130f   :  { %v4214_v14 = vpop.xlane.xlu0 %4213 }
0x1310   :  { %5991 = vpow2.f32 %v4223_v21  ;;  %v4218_v11 = vsub.f32 %v4199_v40, %v4214_v14 }
0x1312   :  { %v4225_v15 = vmul.f32 1.442695, %v4218_v11 }
0x1313   :  { %v4232_v3 = vpop.xlane.xlu0 %4231 }
0x1314   :  { %5993 = vpow2.f32 %v4225_v15 }
0x1315   :  { %5995 = vrcp.f32 %v4232_v3 }
0x1316   :  { %5997 = vrcp.f32 %v4229_v44 }
0x131a   :  { %v5992_v33 = vpop.eup %5991 }
0x131b   :  { %v4233_v35 = vsel %vm3183_vm0, %v5992_v33, 0.0 }
0x131c   :  { %4234 = vadd.xlane.f32.xlu1 %v4233_v35 }
0x131e   :  { %v5994_v59 = vpop.eup %5993 }
0x131f   :  { %v4236_v29 = vsel %vm3183_vm0, %v5994_v59, 0.0  ;;  %v5996_v49 = vpop.eup %5995 }
0x1320   :  { %4237 = vadd.xlane.f32.xlu0 %v4236_v29  ;;  %v5998_v39 = vpop.eup %5997  ;;  %v4244_v51 = vmul.f32 %v5996_v49, %v5990_v61 }
0x1321   :  { %v4243_v53 = vmul.f32 %v5998_v39, %v5988_v25  ;;  %v4418_v25 = vsub.s32 6, %v6218_v45 }
0x1323   :  { %v4247_v18 = vpack.c.bf16 %v4244_v51, %v4243_v53  ;;  %v4419_v12 = vrot.slane %v6792_v26, %v4418_v25 }
0x132d   :  { %4249 = vrot.lane.b32.xlu1 %v6597_v24, %s6117_s16 }
0x1336   :  { %4296 = vrot.lane.b32.xlu0 %v6593_v23, %s6117_s16 }
0x13a9   :  { %v4235_v50 = vpop.xlane.xlu1 %4234 }
0x13aa   :  { %5999 = vrcp.f32 %v4235_v50 }
0x13ad   :  { %v4238_v9 = vpop.xlane.xlu0 %4237  ;;  %v4250_v4 = vpop.permute.xlu1 %4249 }
0x13ae   :  { %6001 = vrcp.f32 %v4238_v9  ;;  %5577 = vmatpush3.bf16.msra.mxu1 %v4250_v4 }
0x13b1   :  { %v4297_v63 = vpop.permute.xlu0 %4296  ;;  %5579 = vmatmul.mubr.msk.bf16.vlgmr.msra.gmra.mrb[72].mxu1 %vm3183_vm0, %v4247_v18 }
0x13b2   :  { %5583 = vmatpush3.bf16.msra.mxu0 %v4297_v63 }
0x13b3   :  { %5588 = vmatprep.subr.bf16.mxu0 %v5123_v41 }
0x13b4   :  { %v6000_v23 = vpop.eup %5999 }
0x13b5   :  { %v4245_v2 = vmul.f32 %v6000_v23, %v5992_v33 }
0x13b8   :  { %v6002_v24 = vpop.eup %6001 }
0x13b9   :  { %v4246_v13 = vmul.f32 %v6002_v24, %v5994_v59  ;;  %v4495_v24 = vld [vmem:[#allocation5 + $0x14] sm:$0xf] }
0x13bb   :  { %v4248_v16 = vpack.c.bf16 %v4246_v13, %v4245_v2  ;;  %v4496_v2 = vld [vmem:[#allocation5 + $0x34] sm:$0xf] }
0x13bc   :  { %v5126_v13 = vcombine.low %v4495_v24, %v4496_v2  ;;  %v4616_v24 = vld [vmem:[#allocation5 + $0x118] sm:$0xf] }
0x13bd   :  { %5585 = vmatmul.mubr.msk.bf16.vlgmr.msra.gmra.mrb[76].mxu0 %vm3183_vm0, %v4248_v16  ;;  %v4497_v16 = vld [vmem:[#allocation5 + $0x54] sm:$0xf]  ;;  %v4617_v2 = vld [vmem:[#allocation5 + $0x138] sm:$0xf] }
0x13be   :  { %5589 = vmatpush3.bf16.msra.mxu0 %v5123_v41  ;;  %5594 = vmatprep.subr.bf16.mxu1 %v5126_v13  ;;  %v5127_v19 = vcombine.low %v4497_v16, %v4498_v27  ;;  %v4499_v41 = vld [vmem:[#allocation5 + $0x94] sm:$0xf]  ;;  %v4618_v16 = vld [vmem:[#allocation5 + $0x158] sm:$0xf] }
0x13bf   :  { %5595 = vmatpush3.bf16.msra.mxu1 %v5126_v13  ;;  %v5136_v13 = vcombine.low %v4616_v24, %v4617_v2  ;;  %v4619_v27 = vld [vmem:[#allocation5 + $0x178] sm:$0xf] }
0x13c0   :  { %5596 = vmatprep.subr.bf16.mxu1 %v5127_v19 }
0x13c3   :  { %5597 = vmatpush3.bf16.msra.mxu1 %v5127_v19  ;;  %v5137_v19 = vcombine.low %v4618_v16, %v4619_v27 }
0x1484   :  { %v4289_v62 = vpop.f32.mrb[72].mxu1 }
0x1485   :  { %v5580_v20 = vpop.f32.mrb[73].mxu1 }
0x1486   :  { %v4292_v58 = vpop.f32.mrb[74].mxu1 }
0x1487   :  { %v4343_v56 = vpack.c.bf16 %v4292_v58, %v4289_v62  ;;  %v5581_v6 = vpop.f32.mrb[75].mxu1  ;;  %v4500_v62 = vld [vmem:[#allocation5 + $0xb4] sm:$0xf] }
0x1488   :  { %v5128_v20 = vcombine.low %v4499_v41, %v4500_v62  ;;  %v4501_v58 = vld [vmem:[#allocation5 + $0xd4] sm:$0xf]  ;;  %v4620_v41 = vld [vmem:[#allocation5 + $0x198] sm:$0xf] }
0x1489   :  { %5590 = vmatprep.mubr.msk.bf16.mxu0 %vm3183_vm0, %v4343_v56  ;;  %v4502_v56 = vld [vmem:[#allocation5 + $0xf4] sm:$0xf]  ;;  %v4621_v62 = vld [vmem:[#allocation5 + $0x1b8] sm:$0xf] }
0x148a   :  { %5598 = vmatprep.subr.bf16.mxu1 %v5128_v20  ;;  %v5129_v6 = vcombine.low %v4501_v58, %v4502_v56  ;;  %v4622_v58 = vld [vmem:[#allocation5 + $0x1d8] sm:$0xf] }
0x148b   :  { %5599 = vmatpush3.bf16.msra.mxu1 %v5128_v20  ;;  %v5138_v20 = vcombine.low %v4620_v41, %v4621_v62  ;;  %v4623_v56 = vld [vmem:[#allocation5 + $0x1f8] sm:$0xf] }
0x148c   :  { %5600 = vmatprep.subr.bf16.mxu1 %v5129_v6 }
0x148f   :  { %5601 = vmatpush3.bf16.msra.mxu1 %v5129_v6  ;;  %v5139_v6 = vcombine.low %v4622_v58, %v4623_v56 }
0x1490   :  { %v4336_v34 = vpop.f32.mrb[76].mxu0  ;;  %5626 = vmatprep.subr.bf16.mxu1 %v6113_v17 }
0x1491   :  { %v5586_v55 = vpop.f32.mrb[77].mxu0 }
0x1492   :  { %v4339_v31 = vpop.f32.mrb[78].mxu0  ;;  %v4609_v55 = vld [vmem:[#allocation5 + $0x38] sm:$0xf] }
0x1493   :  { %v4344_v60 = vpack.c.bf16 %v4339_v31, %v4336_v34  ;;  %v5587_v22 = vpop.f32.mrb[79].mxu0  ;;  %v4608_v34 = vld [vmem:[#allocation5 + $0x18] sm:$0xf] }
0x1494   :  { %v4610_v31 = vld [vmem:[#allocation5 + $0x58] sm:$0xf] }
0x1495   :  { %5591 = vmatmul.mubr.msk.bf16.vlgmr.msra.gmra.mrb[64].mxu0 %vm3183_vm0, %v4344_v60  ;;  %v5132_v60 = vcombine.low %v4608_v34, %v4609_v55  ;;  %v4611_v22 = vld [vmem:[#allocation5 + $0x78] sm:$0xf] }
0x1496   :  { %v5133_v25 = vcombine.low %v4610_v31, %v4611_v22 }
0x1497   :  { %5606 = vmatprep.subr.bf16.mxu0 %v5132_v60 }
0x1498   :  { %5607 = vmatpush3.bf16.msra.mxu0 %v5132_v60 }
0x1499   :  { %5608 = vmatprep.subr.bf16.mxu0 %v5133_v25 }
0x149c   :  { %5609 = vmatpush3.bf16.msra.mxu0 %v5133_v25 }
0x1568   :  { %v5592_v5 = vpop.f32.mrb[64].mxu0 }
0x1569   :  { %v4393_v28 = vpop.f32.mrb[65].mxu0  ;;  %v4414_v8 = vadd.f32 %v5592_v5, %v6570_v10 }
0x156a   :  { %v4412_v32 = vadd.f32 %v4393_v28, %v6568_v47  ;;  %v5593_v0 = vpop.f32.mrb[66].mxu0 }
0x156b   :  { %v4396_v40 = vpop.f32.mrb[67].mxu0  ;;  %v4415_v42 = vadd.f32 %v5593_v0, %v6564_v52  ;;  %v4422_v54 = vadd.f32 %v4419_v12, %v4414_v8 }
0x156c   :  { %v4413_v48 = vadd.f32 %v4396_v40, %v6566_v57  ;;  %v4420_v61 = vadd.f32 %v4419_v12, %v4412_v32 }
0x156d   :  { %v4423_v14 = vadd.f32 %v4419_v12, %v4415_v42  ;;  %v4430_v10 = vsel %vm2951_vm14, %v4422_v54, 0.0 }
0x156e   :  { %v4424_v1 = vsel %vm2951_vm14, %v4420_v61, 0.0  ;;  %v4421_v38 = vadd.f32 %v4419_v12, %v4413_v48 }
0x156f   :  { %4425 = vadd.xlane.f32.xlu1 %v4424_v1  ;;  %v4433_v47 = vsel %vm2951_vm14, %v4423_v14, 0.0 }
0x1570   :  { %v4427_v21 = vsel %vm2951_vm14, %v4421_v38, 0.0 }
0x1571   :  { %4428 = vadd.xlane.f32.xlu0 %v4427_v21 }
0x1573   :  { %4431 = vadd.xlane.f32.xlu1 %v4430_v10  ;;  %v6829_v10 = vld [vmem:[%s6898_s3 + $0x8] sm:$0xff]  ;;  %s6118_s3 = smov [#allocation7]  }
0x1574   :  { %v4506_v34 = vrot.slane %v6829_v10, %v6304_v36  ;;  %s4914_s20 = sshll.u32 %s6118_s3, 4  ;;  %s4915_s20 = int_to_ptr.vmem [resolvable:$true] %s4914_s20 }
0x1575   :  { %4434 = vadd.xlane.f32.xlu0 %v4433_v47  ;;  %s6075_s21 = scalar_lea.vmem %s4915_s20, 32  ;;  %p6080_p3 = scmp.lt.s32.totalorder %s4915_s20, %s4915_s20 }
0x1576   :  { %p6076_p2 = scmp.ne.s32.totalorder %s4915_s20, %s6075_s21  ;;  %p6081_p4 = scmp.lt.s32.totalorder %s6075_s21, %s6075_s21 }
0x1578   :  { %p6082_p5 = por %p6081_p4, %p6080_p3 }
0x157a   :  { %p6083_p6 = pnand %p6082_p5, %p6076_p2 }
0x15fc   :  { %v4426_v11 = vpop.xlane.xlu1 %4425 }
0x15fd   :  { %v4437_v52 = vmul.f32 0.015625, %v4426_v11 }
0x15fe   :  { %v4429_v15 = vpop.xlane.xlu0 %4428 }
0x15ff   :  { %v6803_v57 = vsub.f32 %v4420_v61, %v4437_v52  ;;  %v4438_v33 = vmul.f32 0.015625, %v4429_v15 }
0x1600   :  { %v4432_v35 = vpop.xlane.xlu1 %4431 }
0x1601   :  { %v6805_v59 = vsub.f32 %v4421_v38, %v4438_v33  ;;  %v4439_v29 = vmul.f32 0.015625, %v4432_v35  ;;  %v4445_v3 = vmul.f32 %v6803_v57, %v6803_v57  ;;  %v4488_v33 = vrot.slane %v6829_v10, %v6221_v46 }
0x1602   :  { %v4435_v44 = vpop.xlane.xlu0 %4434 }
0x1603   :  { %v6809_v49 = vsub.f32 %v4422_v54, %v4439_v29  ;;  %v4440_v50 = vmul.f32 0.015625, %v4435_v44  ;;  %v4449_v39 = vsel %vm2951_vm14, %v4445_v3, 0.0  ;;  %v4446_v51 = vmul.f32 %v6805_v59, %v6805_v59 }
0x1604   :  { %4450 = vadd.xlane.f32.xlu1 %v4449_v39  ;;  %v4479_v54 = vsub.s32 7, %v6218_v45 }
0x1605   :  { %v6814_v53 = vsub.f32 %v4423_v14, %v4440_v50  ;;  %v4452_v9 = vsel %vm2951_vm14, %v4446_v51, 0.0  ;;  %v4447_v4 = vmul.f32 %v6809_v49, %v6809_v49 }
0x1606   :  { %4453 = vadd.xlane.f32.xlu0 %v4452_v9  ;;  %v4480_v21 = vrot.slane %v6792_v26, %v4479_v54  ;;  %v4613_v9 = vld [vmem:[#allocation5 + $0xb8] sm:$0xf] }
0x1607   :  { %v4455_v18 = vsel %vm2951_vm14, %v4447_v4, 0.0  ;;  %v4448_v63 = vmul.f32 %v6814_v53, %v6814_v53 }
0x1608   :  { %4456 = vadd.xlane.f32.xlu1 %v4455_v18  ;;  %v4614_v18 = vld [vmem:[#allocation5 + $0xd8] sm:$0xf] }
0x1609   :  { %v4458_v23 = vsel %vm2951_vm14, %v4448_v63, 0.0  ;;  %v4615_v63 = vld [vmem:[#allocation5 + $0xf8] sm:$0xf] }
0x160a   :  { %4459 = vadd.xlane.f32.xlu0 %v4458_v23  ;;  %v5135_v23 = vcombine.low %v4614_v18, %v4615_v63 }
0x1691   :  { %v4451_v5 = vpop.xlane.xlu1 %4450 }
0x1692   :  { %v4461_v12 = vmul.f32 0.015625, %v4451_v5 }
0x1693   :  { %v4454_v28 = vpop.xlane.xlu0 %4453 }
0x1694   :  { %v4465_v8 = vadd.f32 1e-05, %v4461_v12  ;;  %v4462_v32 = vmul.f32 0.015625, %v4454_v28 }
0x1695   :  { %v4457_v0 = vpop.xlane.xlu1 %4456 }
0x1696   :  { %6003 = vrsqrt.f32 %v4465_v8  ;;  %v4466_v40 = vadd.f32 1e-05, %v4462_v32  ;;  %v4463_v42 = vmul.f32 0.015625, %v4457_v0 }
0x1697   :  { %v4460_v48 = vpop.xlane.xlu0 %4459 }
0x1698   :  { %6005 = vrsqrt.f32 %v4466_v40  ;;  %v4467_v61 = vadd.f32 1e-05, %v4463_v42  ;;  %v4464_v1 = vmul.f32 0.015625, %v4460_v48 }
0x169a   :  { %6007 = vrsqrt.f32 %v4467_v61  ;;  %v4468_v38 = vadd.f32 1e-05, %v4464_v1 }
0x169c   :  { %6009 = vrsqrt.f32 %v4468_v38 }
0x16a0   :  { %v6004_v14 = vpop.eup %6003 }
0x16a1   :  { %v4473_v47 = vmul.f32 %v6004_v14, %v6803_v57 }
0x16a2   :  { %v6006_v11 = vpop.eup %6005 }
0x16a3   :  { %v4474_v52 = vmul.f32 %v6006_v11, %v6805_v59  ;;  %v4481_v15 = vmul.f32 %v4480_v21, %v4473_v47 }
0x16a4   :  { %v6008_v35 = vpop.eup %6007 }
0x16a5   :  { %v4475_v45 = vmul.f32 %v6008_v35, %v6809_v49  ;;  %v4482_v29 = vmul.f32 %v4480_v21, %v4474_v52  ;;  %v6837_v50 = vadd.f32 %v4488_v33, %v4481_v15 }
0x16a6   :  { %v6010_v26 = vpop.eup %6009 }
0x16a7   :  { %v4483_v3 = vmul.f32 %v4480_v21, %v4475_v45  ;;  %v4476_v44 = vmul.f32 %v6010_v26, %v6814_v53  ;;  %v6839_v39 = vadd.f32 %v4488_v33, %v4482_v29  ;;  %v4612_v53 = vld [vmem:[#allocation5 + $0x98] sm:$0xf] }
0x16a8   :  { %v5134_v4 = vcombine.low %v4612_v53, %v4613_v9 }
0x16a9   :  { %v4484_v57 = vmul.f32 %v4480_v21, %v4476_v44  ;;  %v4493_v59 = vpack.c.bf16 %v6839_v39, %v6837_v50  ;;  %v6844_v51 = vadd.f32 %v4488_v33, %v4483_v3  ;;  %v4627_v3 = vrot.slane %v6829_v10, %v6347_v37 }
0x16aa   :  { %5610 = vmatprep.subr.bf16.mxu0 %v5134_v4 }
0x16ab   :  { %5602 = vmatprep.mubr.msk.bf16.mxu1 %vm2951_vm14, %v4493_v59  ;;  %v6846_v46 = vadd.f32 %v4488_v33, %v4484_v57  ;;  %5611 = vmatpush3.bf16.msra.mxu0 %v5134_v4 }
0x16ac   :  { %5612 = vmatprep.subr.bf16.mxu0 %v5135_v23 }
0x16ad   :  { %v4494_v49 = vpack.c.bf16 %v6846_v46, %v6844_v51 }
0x16af   :  { %5603 = vmatmul.mubr.msk.bf16.vlgmr.msra.gmra.mrb[76].mxu1 %vm2951_vm14, %v4494_v49  ;;  %5613 = vmatpush3.bf16.msra.mxu0 %v5135_v23 }
0x16b0   :  { %5634 = vmatprep.mubr.msk.bf16.mxu1 %vm6114_vm15, %v6113_v17  ;;  %5614 = vmatprep.subr.bf16.mxu0 %v5136_v13 }
0x16b3   :  { %5615 = vmatpush3.bf16.msra.mxu0 %v5136_v13 }
0x16b4   :  { %5616 = vmatprep.subr.bf16.mxu0 %v5137_v19 }
0x16b7   :  { %5617 = vmatpush3.bf16.msra.mxu0 %v5137_v19 }
0x16b8   :  { %5618 = vmatprep.subr.bf16.mxu0 %v5138_v20 }
0x16bb   :  { %5619 = vmatpush3.bf16.msra.mxu0 %v5138_v20 }
0x16bc   :  { %5620 = vmatprep.subr.bf16.mxu0 %v5139_v6 }
0x16bf   :  { %5621 = vmatpush3.bf16.msra.mxu0 %v5139_v6 }
0x1782   :  { %v5604_v55 = vpop.f32.mrb[76].mxu1 }
0x1783   :  { %v4580_v31 = vadd.f32 %v5604_v55, %v4506_v34  ;;  %v4571_v60 = vpop.f32.mrb[77].mxu1 }
0x1784   :  { %v4572_v22 = vadd.f32 %v4571_v60, %v4506_v34  ;;  %v5605_v25 = vpop.f32.mrb[78].mxu1 }
0x1785   :  { %v4592_v5 = vmul.f32 0.70710677, %v4580_v31  ;;  %v4583_v12 = vadd.f32 %v5605_v25, %v4506_v34  ;;  %v4574_v28 = vpop.f32.mrb[79].mxu1  ;;  %v4588_v54 = vmul.f32 0.5, %v4580_v31 }
0x1786   :  { %v4590_v8 = vmul.f32 0.70710677, %v4572_v22  ;;  %v4575_v32 = vadd.f32 %v4574_v28, %v4506_v34  ;;  %v4586_v47 = vmul.f32 0.5, %v4572_v22 }
0x1787   :  { %6011 = verf.f32 %v4592_v5  ;;  %v4593_v0 = vmul.f32 0.70710677, %v4583_v12  ;;  %v4589_v21 = vmul.f32 0.5, %v4583_v12 }
0x1788   :  { %6013 = verf.f32 %v4590_v8  ;;  %v4591_v40 = vmul.f32 0.70710677, %v4575_v32  ;;  %v4587_v11 = vmul.f32 0.5, %v4575_v32  ;;  %v4820_v8 = vld [vmem:[#allocation5 + $0x1c] sm:$0xf] }
0x1789   :  { %6015 = verf.f32 %v4593_v0  ;;  %v4821_v32 = vld [vmem:[#allocation5 + $0x3c] sm:$0xf] }
0x178a   :  { %6017 = verf.f32 %v4591_v40  ;;  %v4822_v0 = vld [vmem:[#allocation5 + $0x5c] sm:$0xf]  ;;  %v5140_v40 = vcombine.low %v4820_v8, %v4821_v32 }
0x178c   :  { %5627 = vmatpush3.bf16.msra.mxu1 %v5140_v40 }
0x178d   :  { %5628 = vmatprep.subr.bf16.mxu1 %v6113_v17 }
0x1791   :  { %v6012_v42 = vpop.eup %6011 }
0x1792   :  { %v6014_v48 = vpop.eup %6013  ;;  %v4600_v61 = vadd.f32 1.0, %v6012_v42  ;;  %v4823_v42 = vld [vmem:[#allocation5 + $0x7c] sm:$0xf] }
0x1793   :  { %v6016_v36 = vpop.eup %6015  ;;  %v4598_v1 = vadd.f32 1.0, %v6014_v48  ;;  %v5141_v48 = vcombine.low %v4822_v0, %v4823_v42 }
0x1794   :  { %v6018_v38 = vpop.eup %6017  ;;  %v4601_v14 = vadd.f32 1.0, %v6016_v36  ;;  %v4604_v15 = vmul.f32 %v4600_v61, %v4588_v54  ;;  %v4824_v61 = vld [vmem:[#allocation5 + $0x9c] sm:$0xf] }
0x1795   :  { %v4599_v52 = vadd.f32 1.0, %v6018_v38  ;;  %v4602_v35 = vmul.f32 %v4598_v1, %v4586_v47  ;;  %v4825_v36 = vld [vmem:[#allocation5 + $0xbc] sm:$0xf]  ;;  %5629 = vmatpush3.bf16.msra.mxu1 %v5141_v48 }
0x1796   :  { %v4605_v33 = vmul.f32 %v4601_v14, %v4589_v21  ;;  %v5142_v1 = vcombine.low %v4824_v61, %v4825_v36  ;;  %5630 = vmatprep.subr.bf16.mxu1 %v6113_v17  ;;  %v4826_v38 = vld [vmem:[#allocation5 + $0xdc] sm:$0xf]  ;;  %v4831_v61 = vrot.slane %v6829_v10, %v6491_v7 }
0x1797   :  { %v4603_v45 = vmul.f32 %v4599_v52, %v4587_v11  ;;  %v4827_v54 = vld [vmem:[#allocation5 + $0xfc] sm:$0xf] }
0x1798   :  { %v4607_v29 = vpack.c.bf16 %v4605_v33, %v4604_v15  ;;  %v5143_v21 = vcombine.low %v4826_v38, %v4827_v54 }
0x1799   :  { %v4606_v26 = vpack.c.bf16 %v4603_v45, %v4602_v35  ;;  %5631 = vmatpush3.bf16.msra.mxu1 %v5142_v1 }
0x179a   :  { %5632 = vmatprep.subr.bf16.mxu1 %v6113_v17  ;;  %v4784_v17 = vrot.slane %v6829_v10, %v6390_v30 }
0x179b   :  { %5622 = vmatprep.mubr.bf16.mxu0 %v4606_v26 }
0x179c   :  { %5623 = vmatmul.mubr.bf16.vlgmr.msra.gmra.mrb[80].mxu0 %v4607_v29 }
0x179d   :  { %5633 = vmatpush3.bf16.msra.mxu1 %v5143_v21 }
0x186f   :  { %v5624_v44 = vpop.f32.mrb[80].mxu0 }
0x1870   :  { %v4710_v57 = vpop.f32.mrb[81].mxu0  ;;  %v4719_v59 = vadd.f32 %v5624_v44, %v4627_v3 }
0x1871   :  { %v4711_v49 = vadd.f32 %v4710_v57, %v4627_v3  ;;  %v5625_v53 = vpop.f32.mrb[82].mxu0 }
0x1872   :  { %v4713_v9 = vpop.f32.mrb[83].mxu0  ;;  %v4722_v4 = vadd.f32 %v5625_v53, %v4627_v3  ;;  %v4727_v2 = vadd.f32 %v4719_v59, %v6844_v51  ;;  %v4792_v59 = vrot.slane %v6829_v10, %v6448_v43 }
0x1873   :  { %v4714_v18 = vadd.f32 %v4713_v9, %v4627_v3  ;;  %v4725_v63 = vadd.f32 %v4711_v49, %v6837_v50 }
0x1874   :  { %v4728_v37 = vadd.f32 %v4722_v4, %v6846_v46  ;;  %v4735_v16 = vsel %vm2951_vm14, %v4727_v2, 0.0 }
0x1875   :  { %v4729_v23 = vsel %vm2951_vm14, %v4725_v63, 0.0  ;;  %v4726_v24 = vadd.f32 %v4714_v18, %v6839_v39 }
0x1876   :  { %4730 = vadd.xlane.f32.xlu1 %v4729_v23  ;;  %v4738_v27 = vsel %vm2951_vm14, %v4728_v37, 0.0 }
0x1877   :  { %v4732_v13 = vsel %vm2951_vm14, %v4726_v24, 0.0 }
0x1878   :  { %4733 = vadd.xlane.f32.xlu0 %v4732_v13 }
0x187a   :  { %4736 = vadd.xlane.f32.xlu1 %v4735_v16 }
0x187c   :  { %4739 = vadd.xlane.f32.xlu0 %v4738_v27 }
0x1903   :  { %v4731_v19 = vpop.xlane.xlu1 %4730 }
0x1904   :  { %v4741_v50 = vmul.f32 0.015625, %v4731_v19 }
0x1905   :  { %v4734_v41 = vpop.xlane.xlu0 %4733 }
0x1906   :  { %v4745_v62 = vsub.f32 %v4725_v63, %v4741_v50  ;;  %v4742_v20 = vmul.f32 0.015625, %v4734_v41 }
0x1907   :  { %v4737_v39 = vpop.xlane.xlu1 %4736 }
0x1908   :  { %v4746_v58 = vsub.f32 %v4726_v24, %v4742_v20  ;;  %v4743_v51 = vmul.f32 0.015625, %v4737_v39  ;;  %v4749_v56 = vmul.f32 %v4745_v62, %v4745_v62 }
0x1909   :  { %v4740_v6 = vpop.xlane.xlu0 %4739 }
0x190a   :  { %v4747_v34 = vsub.f32 %v4727_v2, %v4743_v51  ;;  %v4744_v55 = vmul.f32 0.015625, %v4740_v6  ;;  %v4753_v46 = vsel %vm2951_vm14, %v4749_v56, 0.0  ;;  %v4750_v31 = vmul.f32 %v4746_v58, %v4746_v58 }
0x190b   :  { %4754 = vadd.xlane.f32.xlu1 %v4753_v46 }
0x190c   :  { %v4748_v60 = vsub.f32 %v4728_v37, %v4744_v55  ;;  %v4756_v22 = vsel %vm2951_vm14, %v4750_v31, 0.0  ;;  %v4751_v25 = vmul.f32 %v4747_v34, %v4747_v34 }
0x190d   :  { %4757 = vadd.xlane.f32.xlu0 %v4756_v22 }
0x190e   :  { %v4759_v5 = vsel %vm2951_vm14, %v4751_v25, 0.0  ;;  %v4752_v12 = vmul.f32 %v4748_v60, %v4748_v60 }
0x190f   :  { %4760 = vadd.xlane.f32.xlu1 %v4759_v5 }
0x1910   :  { %v4762_v28 = vsel %vm2951_vm14, %v4752_v12, 0.0 }
0x1911   :  { %4763 = vadd.xlane.f32.xlu0 %v4762_v28 }
0x1998   :  { %v4755_v14 = vpop.xlane.xlu1 %4754 }
0x1999   :  { %v4765_v47 = vmul.f32 0.015625, %v4755_v14 }
0x199a   :  { %v4758_v11 = vpop.xlane.xlu0 %4757 }
0x199b   :  { %v4769_v52 = vadd.f32 1e-05, %v4765_v47  ;;  %v4766_v15 = vmul.f32 0.015625, %v4758_v11 }
0x199c   :  { %v4761_v33 = vpop.xlane.xlu1 %4760 }
0x199d   :  { %6019 = vrsqrt.f32 %v4769_v52  ;;  %v4770_v35 = vadd.f32 1e-05, %v4766_v15  ;;  %v4767_v45 = vmul.f32 0.015625, %v4761_v33 }
0x199e   :  { %v4764_v29 = vpop.xlane.xlu0 %4763 }
0x199f   :  { %6021 = vrsqrt.f32 %v4770_v35  ;;  %v4771_v26 = vadd.f32 1e-05, %v4767_v45  ;;  %v4768_v3 = vmul.f32 0.015625, %v4764_v29 }
0x19a1   :  { %6023 = vrsqrt.f32 %v4771_v26  ;;  %v4772_v44 = vadd.f32 1e-05, %v4768_v3 }
0x19a3   :  { %6025 = vrsqrt.f32 %v4772_v44 }
0x19a7   :  { %v6020_v57 = vpop.eup %6019 }
0x19a8   :  { %v4777_v49 = vmul.f32 %v6020_v57, %v4745_v62 }
0x19a9   :  { %v6022_v53 = vpop.eup %6021 }
0x19aa   :  { %v4785_v9 = vmul.f32 %v4784_v17, %v4777_v49  ;;  %v4778_v4 = vmul.f32 %v6022_v53, %v4746_v58 }
0x19ab   :  { %v6024_v18 = vpop.eup %6023 }
0x19ac   :  { %v4793_v63 = vadd.f32 %v4792_v59, %v4785_v9  ;;  %v4786_v23 = vmul.f32 %v4784_v17, %v4778_v4  ;;  %v4779_v24 = vmul.f32 %v6024_v18, %v4747_v34 }
0x19ad   :  { %v6026_v2 = vpop.eup %6025 }
0x19ae   :  { %v4794_v13 = vadd.f32 %v4792_v59, %v4786_v23  ;;  %v4787_v37 = vmul.f32 %v4784_v17, %v4779_v24  ;;  %v4780_v16 = vmul.f32 %v6026_v2, %v4748_v60  ;;  %v4797_v27 = vsel %vm2951_vm14, %v4793_v63, 0.0 }
0x19b0   :  { %v4798_v30 = vsel %vm2951_vm14, %v4794_v13, 0.0  ;;  %v4795_v19 = vadd.f32 %v4792_v59, %v4787_v37  ;;  %v4788_v50 = vmul.f32 %v4784_v17, %v4780_v16 }
0x19b1   :  { %v4799_v41 = vadd.f32 %v4798_v30, %v4797_v27 }
0x19b2   :  { %v4796_v43 = vadd.f32 %v4792_v59, %v4788_v50  ;;  %v4806_v20 = vsel %vm2951_vm14, %v4795_v19, 0.0 }
0x19b3   :  { %v4800_v62 = vrot.slane %v4799_v41, 4 }
0x19b4   :  { %v4807_v39 = vsel %vm2951_vm14, %v4796_v43, 0.0 }
0x19b5   :  { %v4801_v58 = vadd.f32 %v4800_v62, %v4799_v41  ;;  %v4808_v51 = vadd.f32 %v4807_v39, %v4806_v20 }
0x19b7   :  { %v4809_v56 = vrot.slane %v4808_v51, 4  ;;  %v4802_v6 = vrot.slane %v4801_v58, 2 }
0x19b9   :  { %v4810_v34 = vadd.f32 %v4809_v56, %v4808_v51  ;;  %v4803_v55 = vadd.f32 %v4802_v6, %v4801_v58 }
0x19bb   :  { %v4804_v46 = vrot.slane %v4803_v55, 1  ;;  %v4811_v31 = vrot.slane %v4810_v34, 2 }
0x19bd   :  { %v4805_v60 = vadd.f32 %v4804_v46, %v4803_v55  ;;  %v4812_v22 = vadd.f32 %v4811_v31, %v4810_v34 }
0x19bf   :  { %v4813_v25 = vrot.slane %v4812_v22, 1  ;;  %v4816_v5 = vmul.f32 0.0625, %v4805_v60 }
0x19c1   :  { %v4814_v12 = vadd.f32 %v4813_v25, %v4812_v22  ;;  %v4818_v8 = vpack.c.bf16 %v4816_v5, %v4816_v5 }
0x19c3   :  { %v4817_v28 = vmul.f32 0.0625, %v4814_v12  ;;  %v4834_v0 = vunpack.c.l.b16 %v4818_v8 }
0x19c5   :  { %v4819_v32 = vpack.c.bf16 %v4817_v28, %v4817_v28 }
0x19c7   :  { %v4835_v40 = vunpack.c.l.b16 %v4819_v32 }
0x19c9   :  { %v4837_v42 = vsel %vm4836_vm1, %v4835_v40, %v4834_v0 }
0x19ca   :  { %v4838_v48 = vpack.c.b16 %v4837_v42, %v4837_v42 }
0x19cc   :  { %5635 = vmatmul.mubr.msk.bf16.vlgmr.msra.gmra.mrb[80].mxu1 %vm2951_vm14, %v4838_v48 }
0x1a9f   :  { %v4900_v36 = vpop.f32.mrb[80].mxu1 }
0x1aa0   :  { %v4901_v1 = vadd.f32 %v4900_v36, %v4831_v61  ;;  %v5636_v38 = vpop.f32.mrb[81].mxu1 }
0x1aa1   :  { %v4903_v54 = vpop.f32.mrb[82].mxu1 }
0x1aa2   :  { %v5637_v21 = vpop.f32.mrb[83].mxu1  ;;  %4907 = vst.msk [vmem:[#allocation7] sm:$0x3] %vm4906_vm2, %v4901_v1 }
0x1aa3   :  { %6086 = shalt.err (!%p6083_p6)
}
0x1aa4   :  { %s6087_s4 = scalar_lea.hbm %s6900_s5, 32 }
0x1aa5   :  { %p6088_p7 = scmp.ne.s32.totalorder %s6900_s5, %s6087_s4  ;;  %p6091_p8 = scmp.lt.u32.totalorder %s6087_s4, %s6900_s5 }
0x1aa7   :  { %p6093_p9 = pnand %p6091_p8, %p6088_p7 }
0x1aa9   :  { %6096 = shalt.err (!%p6093_p9)
}
0x1aaa   :  { %4917 = dma.vmem_to_hbm [thread:$0]  %s4915_s20, 32, %s6900_s5, [#allocation4]  }
0x1aab   :  { %6101 = dma.done.wait [#allocation4], 32  }
0x1aac   :  { %6102 = vsyncadd [#allocation4], 4294967264 }
0x1aad   :  { %4921 = vsyncpa [#allocation3], 1 }
0x1aae   :  { %4922 = vsyncpa [#allocation6], 1 }
0x1aaf   :  { %4923 = vsyncpa [#allocation4], 1 }

</bundles_post_ra>
